<compile_context>
chip_gen: v6e
topology: v6e:2x2x1
jax: 0.10.0
libtpu: 0.0.40
codegen_flags: <defaults>
</compile_context>

<pallas_src>
import jax
import jax.numpy as jnp
from jax.experimental import pallas as pl
from jax.experimental.pallas import tpu as pltpu


# ----------------------------------------------------------------------------
# Static layout helpers (shared by wrapper packing and kernel slicing)
# ----------------------------------------------------------------------------
def _round8(n):
    return -(-n // 8) * 8


def _w_slab_layout(In, H, L):
    """Row offsets / true row counts of every weight piece in the packed slab."""
    layout = {}
    off = 0

    def add(name, rows):
        nonlocal off
        layout[name] = (off, rows)
        off += _round8(rows)

    add("enc_wih_0", In)
    add("enc_whh_0", H)
    for l in range(1, L):
        add(f"enc_wih_{l}", H)
        add(f"enc_whh_{l}", H)
    add("dec_wfb", H)       # dense_w @ dec_wih_0 (dense head folded into feedback)
    add("dec_whh_0", H)
    for l in range(1, L):
        add(f"dec_wih_{l}", H)
        add(f"dec_whh_{l}", H)
    return layout, off


def _pick_block(B):
    """Batch/window chunk size for the grid. Full batch if small; else 8-aligned."""
    if B <= 128:
        return B
    for bb in (128, 64, 32, 16, 8):
        if B % bb == 0:
            return bb
    return B


# ----------------------------------------------------------------------------
# Pallas kernel
# ----------------------------------------------------------------------------
def make_encdec_kernel(T, BB, In, H, L):
    layout, _ = _w_slab_layout(In, H, L)
    G = 4 * H

    def wpiece(w_ref, name):
        off, rows = layout[name]
        return w_ref[off:off + rows, :]

    def gate_math(gates, c):
        # kernel gate order (i, f, o, g): 1 sigmoid over 3H lanes + 1 tanh per cell.
        sig = jax.nn.sigmoid(gates[:, :3 * H])
        i = sig[:, 0 * H:1 * H]
        f = sig[:, 1 * H:2 * H]
        o = sig[:, 2 * H:3 * H]
        g = jnp.tanh(gates[:, 3 * H:])
        c_new = f * c + i * g
        h_new = o * jnp.tanh(c_new)
        return h_new, c_new

    def kernel(x_ref, w_ref, b_ref, d_ref, y_ref):
        f32 = jnp.float32
        dot = lambda a, b: jnp.dot(a, b, preferred_element_type=f32)

        # Loop-invariant bias broadcasts hoisted out of the unrolled loops.
        enc_b = [jnp.broadcast_to(b_ref[l:l + 1, :], (BB, G)) for l in range(L)]
        dec_b = [jnp.broadcast_to(b_ref[L + l:L + l + 1, :], (BB, G)) for l in range(L)]

        # ------------------------------ Encoder ------------------------------
        # Layer 0: input projection hoisted over all T steps (single matmul).
        wih0 = wpiece(w_ref, "enc_wih_0")
        whh0 = wpiece(w_ref, "enc_whh_0")
        xproj = dot(x_ref[...], wih0) + jnp.broadcast_to(b_ref[0:1, :], (T * BB, G))

        h = jnp.zeros((BB, H), f32)
        c = jnp.zeros((BB, H), f32)
        prev = []
        for t in range(T):                                   # static, unrolled
            gates = xproj[t * BB:(t + 1) * BB, :] + dot(h, whh0)
            h, c = gate_math(gates, c)
            prev.append(h)
        h_fin, c_fin = [h], [c]

        # Layers >= 1: per-step projections (no cross-layer barrier -> wavefront).
        for l in range(1, L):
            wih = wpiece(w_ref, f"enc_wih_{l}")
            whh = wpiece(w_ref, f"enc_whh_{l}")
            h = jnp.zeros((BB, H), f32)
            c = jnp.zeros((BB, H), f32)
            cur = []
            for t in range(T):
                gates = dot(prev[t], wih) + dot(h, whh) + enc_b[l]
                h, c = gate_math(gates, c)
                cur.append(h)
            prev = cur
            h_fin.append(h)
            c_fin.append(c)

        # ------------------------------ Decoder ------------------------------
        # Dense head folded into layer-0 feedback:
        #   gates0 = h_top_prev @ (dense_w @ wih0) + h0 @ whh0 + (b0 + dense_b @ wih0)
        # so the recurrent chain never touches the (H,In) dense weights.
        wfb = wpiece(w_ref, "dec_wfb")
        dwhh0 = wpiece(w_ref, "dec_whh_0")
        dec_w = [(wpiece(w_ref, f"dec_wih_{l}"), wpiece(w_ref, f"dec_whh_{l}"))
                 for l in range(1, L)]

        hs = list(h_fin)
        cs = list(c_fin)
        h_top = hs[L - 1]                                    # encoder top h_n
        tops = []
        for _t in range(T):                                  # static, unrolled
            gates = dot(h_top, wfb) + dot(hs[0], dwhh0) + dec_b[0]
            hs[0], cs[0] = gate_math(gates, cs[0])
            inp = hs[0]
            for l in range(1, L):
                wih, whh = dec_w[l - 1]
                gates = dot(inp, wih) + dot(hs[l], whh) + dec_b[l]
                hs[l], cs[l] = gate_math(gates, cs[l])
                inp = hs[l]
            h_top = inp
            tops.append(h_top)

        # Dense head once, off the recurrent chain.  The torch Decoder prepends each
        # output, so reverse the time order by static stacking.  Single 2D store.
        h_block = jnp.concatenate(tops[::-1], axis=0)        # (T*BB, H), reversed time
        dw = d_ref[0:H, :]                                   # (H, In)
        db = jnp.broadcast_to(d_ref[H:H + 1, :], (T * BB, In))
        y_ref[...] = dot(h_block, dw) + db                   # (T*BB, In)

    return kernel


# ----------------------------------------------------------------------------
# Wrapper: parameter folding / packing + pallas_call
# ----------------------------------------------------------------------------
@jax.jit
def encdec_ad_forward(x_btf, enc_params, dec_params, dense_w, dense_b):
    """Full EncDecAD.forward.  x_btf: (B, T, In) batch-first, like PyTorch."""
    B, T, In = x_btf.shape
    H = enc_params[0][1].shape[0]
    L = len(enc_params)
    G = 4 * H

    BB = _pick_block(B)
    n_chunks = B // BB

    def reorder(a):
        # torch gate order (i,f,g,o) -> kernel order (i,f,o,g) along the 4H axis
        return jnp.concatenate([a[..., :2 * H], a[..., 3 * H:], a[..., 2 * H:3 * H]],
                               axis=-1)

    def pad8(a):
        r = (-a.shape[0]) % 8
        return jnp.pad(a, ((0, r), (0, 0))) if r else a

    # --- dense-head fold into decoder layer 0 (feedback path) ---
    dec_wih0, dec_whh0, dec_b0 = dec_params[0]
    w_fb = dense_w @ dec_wih0                        # (H, 4H)
    b_fb = dense_b @ dec_wih0                        # (1, 4H)
    dec_b0_f = dec_b0 + b_fb

    # --- packed weight slab (one DMA instead of 13) ---
    layout, total_rows = _w_slab_layout(In, H, L)
    pieces = {
        "enc_wih_0": enc_params[0][0],
        "enc_whh_0": enc_params[0][1],
        "dec_wfb": w_fb,
        "dec_whh_0": dec_whh0,
    }
    for l in range(1, L):
        pieces[f"enc_wih_{l}"] = enc_params[l][0]
        pieces[f"enc_whh_{l}"] = enc_params[l][1]
        pieces[f"dec_wih_{l}"] = dec_params[l][0]
        pieces[f"dec_whh_{l}"] = dec_params[l][1]
    w_slab = jnp.concatenate([pad8(reorder(pieces[name])) for name in layout], axis=0)

    # --- packed bias slab (2L, 4H): enc biases then (folded) dec biases ---
    b_rows = ([enc_params[l][2] for l in range(L)] + [dec_b0_f]
              + [dec_params[l][2] for l in range(1, L)])
    b_slab = jnp.concatenate([reorder(b) for b in b_rows], axis=0)

    # --- dense head slab: rows [0:H) = W, row H = b, padded to 8 sublanes ---
    d_slab = pad8(jnp.concatenate([dense_w, dense_b], axis=0))

    # --- input: chunk-major, time-major within chunk -> 2D (B*T, In) slab ---
    x_c = jnp.transpose(x_btf, (1, 0, 2)).reshape(T, n_chunks, BB, In)
    x_c = jnp.transpose(x_c, (1, 0, 2, 3)).reshape(n_chunks * T * BB, In)

    # --- advisory cost estimate ---
    cells = 2 * L * T * n_chunks
    flops = int(cells * 2 * (2 * BB * H * G) + 2 * T * B * In * G + 2 * T * B * H * In)
    transcendentals = int(cells * 5 * H * BB)
    bytes_accessed = int(4 * (x_c.size + w_slab.size + b_slab.size + d_slab.size
                              + T * B * In))

    kernel = make_encdec_kernel(T, BB, In, H, L)
    y2d = pl.pallas_call(
        kernel,
        out_shape=jax.ShapeDtypeStruct((T * B, In), jnp.float32),
        grid=(n_chunks,),
        in_specs=[
            pl.BlockSpec((T * BB, In), lambda j: (j, 0)),          # x: per-chunk block
            pl.BlockSpec((total_rows, G), lambda j: (0, 0)),       # weights: resident
            pl.BlockSpec((2 * L, G), lambda j: (0, 0)),            # biases: resident
            pl.BlockSpec((d_slab.shape[0], In), lambda j: (0, 0)), # dense: resident
        ],
        out_specs=pl.BlockSpec((T * BB, In), lambda j: (j, 0)),
        compiler_params=pltpu.CompilerParams(dimension_semantics=("parallel",)),
        cost_estimate=pl.CostEstimate(flops=flops, transcendentals=transcendentals,
                                      bytes_accessed=bytes_accessed),
    )(x_c, w_slab, b_slab, d_slab)

    # back to (B, T, In) batch-first (pure layout fix-up, outside the kernel)
    y = y2d.reshape(n_chunks, T, BB, In).transpose(1, 0, 2, 3).reshape(T, B, In)
    return jnp.transpose(y, (1, 0, 2))


# ----------------------------------------------------------------------------
# Pure-JAX reference (torch semantics / torch gate order), HIGHEST matmul precision
# ----------------------------------------------------------------------------
_P = jax.lax.Precision.HIGHEST


def _cell_ref(x, h, c, wih, whh, b):
    gates = jnp.dot(x, wih, precision=_P) + jnp.dot(h, whh, precision=_P) + b
    i, f, g, o = jnp.split(gates, 4, axis=-1)
    c_new = jax.nn.sigmoid(f) * c + jax.nn.sigmoid(i) * jnp.tanh(g)
    h_new = jax.nn.sigmoid(o) * jnp.tanh(c_new)
    return h_new, c_new


def encdec_ad_ref(x_btf, enc_params, dec_params, dense_w, dense_b):
    B, T, _ = x_btf.shape
    H = enc_params[0][1].shape[0]
    L = len(enc_params)
    layer_in = x_btf
    hs, cs = [], []
    for (wih, whh, b) in enc_params:
        h = jnp.zeros((B, H), jnp.float32)
        c = jnp.zeros((B, H), jnp.float32)
        outs = []
        for t in range(T):
            h, c = _cell_ref(layer_in[:, t], h, c, wih, whh, b)
            outs.append(h)
        layer_in = jnp.stack(outs, axis=1)
        hs.append(h)
        cs.append(c)
    y = jnp.dot(hs[L - 1], dense_w, precision=_P) + dense_b
    outputs = []
    for t in range(T):
        inp = y
        for l, (wih, whh, b) in enumerate(dec_params):
            hs[l], cs[l] = _cell_ref(inp, hs[l], cs[l], wih, whh, b)
            inp = hs[l]
        y = jnp.dot(inp, dense_w, precision=_P) + dense_b
        outputs = [y[:, None, :]] + outputs
    return jnp.concatenate(outputs, axis=1)


# ----------------------------------------------------------------------------
# Deterministic parameter construction (torch format: (in,4H)/(H,4H)/(1,4H), i|f|g|o)
# ----------------------------------------------------------------------------
def init_params(key, input_size, hidden_size, lstm_layers):
    k = 1.0 / jnp.sqrt(hidden_size)

    def uniform(key, shape):
        return jax.random.uniform(key, shape, jnp.float32, -k, k)

    keys = iter(jax.random.split(key, 8 * lstm_layers * 2 + 4))

    def make_lstm(num_layers):
        params = []
        for l in range(num_layers):
            in_dim = input_size if l == 0 else hidden_size
            wih = uniform(next(keys), (in_dim, 4 * hidden_size))
            whh = uniform(next(keys), (hidden_size, 4 * hidden_size))
            # torch LSTM has b_ih and b_hh; combine into a single bias row.
            b = (uniform(next(keys), (1, 4 * hidden_size))
                 + uniform(next(keys), (1, 4 * hidden_size)))
            params.append((wih, whh, b))
        return params

    enc_params = make_lstm(lstm_layers)
    dec_params = make_lstm(lstm_layers)
    dense_w = uniform(next(keys), (hidden_size, input_size))
    dense_b = uniform(next(keys), (1, input_size))
    return enc_params, dec_params, dense_w, dense_b


# ----------------------------------------------------------------------------
if __name__ == "__main__":
    # Shapes consistent with the module: batch=2, window(seq)=8, input_size=4,
    # latent(hidden)=32, lstm_layers=2 (so 4H = 128 lanes).
    B, T, IN, H, L = 2, 8, 4, 32, 2

    key = jax.random.PRNGKey(0)
    kx, kp = jax.random.split(key)
    x = jax.random.normal(kx, (B, T, IN), jnp.float32)

    enc_params, dec_params, dense_w, dense_b = init_params(kp, IN, H, L)

    out = encdec_ad_forward(x, enc_params, dec_params, dense_w, dense_b)
    out = jax.block_until_ready(out)

    ref = encdec_ad_ref(x, enc_params, dec_params, dense_w, dense_b)
    assert out.shape == (B, T, IN), out.shape
    err = float(jnp.max(jnp.abs(out - ref)))
    # Tightened vs. previous 5e-3; all-f32 path, reference at HIGHEST matmul precision.
    assert err < 2e-4, f"mismatch vs pure-JAX reference: max abs err {err}"

    print("KERNEL_OK")
</pallas_src>

<mosaic_0001>
module attributes {stable_mosaic.version = 11 : i64} {
  func.func @kernel(%arg0: i32, %arg1: memref<16x4xf32, #tpu.memory_space<vmem>>, %arg2: memref<232x128xf32, #tpu.memory_space<vmem>>, %arg3: memref<4x128xf32, #tpu.memory_space<vmem>>, %arg4: memref<40x4xf32, #tpu.memory_space<vmem>>, %arg5: memref<16x4xf32, #tpu.memory_space<vmem>>) attributes {dimension_semantics = [#tpu.dimension_semantics<parallel>], iteration_bounds = array<i64: 1>, scalar_prefetch = 0 : i64, scratch_operands = 0 : i64, tpu.core_type = #tpu.core_type<tc>, window_params = [{transform_indices = @transform_0, window_bounds = array<i64: 16, 4>}, {pipeline_mode = #tpu.pipeline_mode<synchronous>, transform_indices = @transform_1, window_bounds = array<i64: 232, 128>}, {pipeline_mode = #tpu.pipeline_mode<synchronous>, transform_indices = @transform_2, window_bounds = array<i64: 4, 128>}, {pipeline_mode = #tpu.pipeline_mode<synchronous>, transform_indices = @transform_3, window_bounds = array<i64: 40, 4>}, {transform_indices = @transform_4, window_bounds = array<i64: 16, 4>}]} {
    %c1 = arith.constant 1 : index
    %c0 = arith.constant 0 : index
    %0 = vector.load %arg3[%c1, %c0] : memref<4x128xf32, #tpu.memory_space<vmem>>, vector<1x128xf32>
    %1 = vector.shape_cast %0 : vector<1x128xf32> to vector<1x128xf32>
    %2 = vector.broadcast %1 : vector<1x128xf32> to vector<2x128xf32>
    %c2 = arith.constant 2 : index
    %c0_0 = arith.constant 0 : index
    %3 = vector.load %arg3[%c2, %c0_0] : memref<4x128xf32, #tpu.memory_space<vmem>>, vector<1x128xf32>
    %4 = vector.shape_cast %3 : vector<1x128xf32> to vector<1x128xf32>
    %5 = vector.broadcast %4 : vector<1x128xf32> to vector<2x128xf32>
    %c3 = arith.constant 3 : index
    %c0_1 = arith.constant 0 : index
    %6 = vector.load %arg3[%c3, %c0_1] : memref<4x128xf32, #tpu.memory_space<vmem>>, vector<1x128xf32>
    %7 = vector.shape_cast %6 : vector<1x128xf32> to vector<1x128xf32>
    %8 = vector.broadcast %7 : vector<1x128xf32> to vector<2x128xf32>
    %c0_2 = arith.constant 0 : index
    %c0_3 = arith.constant 0 : index
    %9 = vector.load %arg2[%c0_2, %c0_3] : memref<232x128xf32, #tpu.memory_space<vmem>>, vector<4x128xf32>
    %c8 = arith.constant 8 : index
    %c0_4 = arith.constant 0 : index
    %10 = vector.load %arg2[%c8, %c0_4] : memref<232x128xf32, #tpu.memory_space<vmem>>, vector<32x128xf32>
    %c0_5 = arith.constant 0 : index
    %c0_6 = arith.constant 0 : index
    %11 = vector.load %arg1[%c0_5, %c0_6] : memref<16x4xf32, #tpu.memory_space<vmem>>, vector<16x4xf32>
    %cst = arith.constant dense<0.000000e+00> : vector<16x128xf32>
    %12 = tpu.matmul %11, %9, %cst {dimension_numbers = #tpu.dot_dimension_numbers<[1], [0], [0], [1], [0, 0, 1, 1], [], []>} : vector<16x4xf32>, vector<4x128xf32>, vector<16x128xf32> -> vector<16x128xf32>
    %c0_7 = arith.constant 0 : index
    %c0_8 = arith.constant 0 : index
    %13 = vector.load %arg3[%c0_7, %c0_8] : memref<4x128xf32, #tpu.memory_space<vmem>>, vector<1x128xf32>
    %14 = vector.shape_cast %13 : vector<1x128xf32> to vector<1x128xf32>
    %15 = vector.broadcast %14 : vector<1x128xf32> to vector<16x128xf32>
    %16 = arith.addf %12, %15 : vector<16x128xf32>
    %cst_9 = arith.constant 0.000000e+00 : f32
    %17 = vector.broadcast %cst_9 : f32 to vector<2x32xf32>
    %cst_10 = arith.constant 0.000000e+00 : f32
    %18 = vector.broadcast %cst_10 : f32 to vector<2x32xf32>
    %19 = vector.extract_strided_slice %16 {offsets = [0, 0], sizes = [2, 128], strides = [1, 1]} : vector<16x128xf32> to vector<2x128xf32>
    %cst_11 = arith.constant dense<0.000000e+00> : vector<2x128xf32>
    %20 = tpu.matmul %17, %10, %cst_11 {dimension_numbers = #tpu.dot_dimension_numbers<[1], [0], [0], [1], [0, 0, 1, 1], [], []>} : vector<2x32xf32>, vector<32x128xf32>, vector<2x128xf32> -> vector<2x128xf32>
    %21 = arith.addf %19, %20 : vector<2x128xf32>
    %22 = vector.extract_strided_slice %21 {offsets = [0, 0], sizes = [2, 96], strides = [1, 1]} : vector<2x128xf32> to vector<2x96xf32>
    %23 = arith.negf %22 : vector<2x96xf32>
    %24 = math.exp %23 : vector<2x96xf32>
    %cst_12 = arith.constant 1.000000e+00 : f32
    %25 = vector.broadcast %cst_12 : f32 to vector<2x96xf32>
    %26 = arith.addf %25, %24 : vector<2x96xf32>
    %27 = arith.divf %25, %26 : vector<2x96xf32>
    %28 = vector.extract_strided_slice %27 {offsets = [0, 0], sizes = [2, 32], strides = [1, 1]} : vector<2x96xf32> to vector<2x32xf32>
    %29 = vector.extract_strided_slice %27 {offsets = [0, 32], sizes = [2, 32], strides = [1, 1]} : vector<2x96xf32> to vector<2x32xf32>
    %30 = vector.extract_strided_slice %27 {offsets = [0, 64], sizes = [2, 32], strides = [1, 1]} : vector<2x96xf32> to vector<2x32xf32>
    %31 = vector.extract_strided_slice %21 {offsets = [0, 96], sizes = [2, 32], strides = [1, 1]} : vector<2x128xf32> to vector<2x32xf32>
    %32 = math.tanh %31 : vector<2x32xf32>
    %33 = arith.mulf %29, %18 : vector<2x32xf32>
    %34 = arith.mulf %28, %32 : vector<2x32xf32>
    %35 = arith.addf %33, %34 : vector<2x32xf32>
    %36 = math.tanh %35 : vector<2x32xf32>
    %37 = arith.mulf %30, %36 : vector<2x32xf32>
    %38 = vector.extract_strided_slice %16 {offsets = [2, 0], sizes = [2, 128], strides = [1, 1]} : vector<16x128xf32> to vector<2x128xf32>
    %cst_13 = arith.constant dense<0.000000e+00> : vector<2x128xf32>
    %39 = tpu.matmul %37, %10, %cst_13 {dimension_numbers = #tpu.dot_dimension_numbers<[1], [0], [0], [1], [0, 0, 1, 1], [], []>} : vector<2x32xf32>, vector<32x128xf32>, vector<2x128xf32> -> vector<2x128xf32>
    %40 = arith.addf %38, %39 : vector<2x128xf32>
    %41 = vector.extract_strided_slice %40 {offsets = [0, 0], sizes = [2, 96], strides = [1, 1]} : vector<2x128xf32> to vector<2x96xf32>
    %42 = arith.negf %41 : vector<2x96xf32>
    %43 = math.exp %42 : vector<2x96xf32>
    %cst_14 = arith.constant 1.000000e+00 : f32
    %44 = vector.broadcast %cst_14 : f32 to vector<2x96xf32>
    %45 = arith.addf %44, %43 : vector<2x96xf32>
    %46 = arith.divf %44, %45 : vector<2x96xf32>
    %47 = vector.extract_strided_slice %46 {offsets = [0, 0], sizes = [2, 32], strides = [1, 1]} : vector<2x96xf32> to vector<2x32xf32>
    %48 = vector.extract_strided_slice %46 {offsets = [0, 32], sizes = [2, 32], strides = [1, 1]} : vector<2x96xf32> to vector<2x32xf32>
    %49 = vector.extract_strided_slice %46 {offsets = [0, 64], sizes = [2, 32], strides = [1, 1]} : vector<2x96xf32> to vector<2x32xf32>
    %50 = vector.extract_strided_slice %40 {offsets = [0, 96], sizes = [2, 32], strides = [1, 1]} : vector<2x128xf32> to vector<2x32xf32>
    %51 = math.tanh %50 : vector<2x32xf32>
    %52 = arith.mulf %48, %35 : vector<2x32xf32>
    %53 = arith.mulf %47, %51 : vector<2x32xf32>
    %54 = arith.addf %52, %53 : vector<2x32xf32>
    %55 = math.tanh %54 : vector<2x32xf32>
    %56 = arith.mulf %49, %55 : vector<2x32xf32>
    %57 = vector.extract_strided_slice %16 {offsets = [4, 0], sizes = [2, 128], strides = [1, 1]} : vector<16x128xf32> to vector<2x128xf32>
    %cst_15 = arith.constant dense<0.000000e+00> : vector<2x128xf32>
    %58 = tpu.matmul %56, %10, %cst_15 {dimension_numbers = #tpu.dot_dimension_numbers<[1], [0], [0], [1], [0, 0, 1, 1], [], []>} : vector<2x32xf32>, vector<32x128xf32>, vector<2x128xf32> -> vector<2x128xf32>
    %59 = arith.addf %57, %58 : vector<2x128xf32>
    %60 = vector.extract_strided_slice %59 {offsets = [0, 0], sizes = [2, 96], strides = [1, 1]} : vector<2x128xf32> to vector<2x96xf32>
    %61 = arith.negf %60 : vector<2x96xf32>
    %62 = math.exp %61 : vector<2x96xf32>
    %cst_16 = arith.constant 1.000000e+00 : f32
    %63 = vector.broadcast %cst_16 : f32 to vector<2x96xf32>
    %64 = arith.addf %63, %62 : vector<2x96xf32>
    %65 = arith.divf %63, %64 : vector<2x96xf32>
    %66 = vector.extract_strided_slice %65 {offsets = [0, 0], sizes = [2, 32], strides = [1, 1]} : vector<2x96xf32> to vector<2x32xf32>
    %67 = vector.extract_strided_slice %65 {offsets = [0, 32], sizes = [2, 32], strides = [1, 1]} : vector<2x96xf32> to vector<2x32xf32>
    %68 = vector.extract_strided_slice %65 {offsets = [0, 64], sizes = [2, 32], strides = [1, 1]} : vector<2x96xf32> to vector<2x32xf32>
    %69 = vector.extract_strided_slice %59 {offsets = [0, 96], sizes = [2, 32], strides = [1, 1]} : vector<2x128xf32> to vector<2x32xf32>
    %70 = math.tanh %69 : vector<2x32xf32>
    %71 = arith.mulf %67, %54 : vector<2x32xf32>
    %72 = arith.mulf %66, %70 : vector<2x32xf32>
    %73 = arith.addf %71, %72 : vector<2x32xf32>
    %74 = math.tanh %73 : vector<2x32xf32>
    %75 = arith.mulf %68, %74 : vector<2x32xf32>
    %76 = vector.extract_strided_slice %16 {offsets = [6, 0], sizes = [2, 128], strides = [1, 1]} : vector<16x128xf32> to vector<2x128xf32>
    %cst_17 = arith.constant dense<0.000000e+00> : vector<2x128xf32>
    %77 = tpu.matmul %75, %10, %cst_17 {dimension_numbers = #tpu.dot_dimension_numbers<[1], [0], [0], [1], [0, 0, 1, 1], [], []>} : vector<2x32xf32>, vector<32x128xf32>, vector<2x128xf32> -> vector<2x128xf32>
    %78 = arith.addf %76, %77 : vector<2x128xf32>
    %79 = vector.extract_strided_slice %78 {offsets = [0, 0], sizes = [2, 96], strides = [1, 1]} : vector<2x128xf32> to vector<2x96xf32>
    %80 = arith.negf %79 : vector<2x96xf32>
    %81 = math.exp %80 : vector<2x96xf32>
    %cst_18 = arith.constant 1.000000e+00 : f32
    %82 = vector.broadcast %cst_18 : f32 to vector<2x96xf32>
    %83 = arith.addf %82, %81 : vector<2x96xf32>
    %84 = arith.divf %82, %83 : vector<2x96xf32>
    %85 = vector.extract_strided_slice %84 {offsets = [0, 0], sizes = [2, 32], strides = [1, 1]} : vector<2x96xf32> to vector<2x32xf32>
    %86 = vector.extract_strided_slice %84 {offsets = [0, 32], sizes = [2, 32], strides = [1, 1]} : vector<2x96xf32> to vector<2x32xf32>
    %87 = vector.extract_strided_slice %84 {offsets = [0, 64], sizes = [2, 32], strides = [1, 1]} : vector<2x96xf32> to vector<2x32xf32>
    %88 = vector.extract_strided_slice %78 {offsets = [0, 96], sizes = [2, 32], strides = [1, 1]} : vector<2x128xf32> to vector<2x32xf32>
    %89 = math.tanh %88 : vector<2x32xf32>
    %90 = arith.mulf %86, %73 : vector<2x32xf32>
    %91 = arith.mulf %85, %89 : vector<2x32xf32>
    %92 = arith.addf %90, %91 : vector<2x32xf32>
    %93 = math.tanh %92 : vector<2x32xf32>
    %94 = arith.mulf %87, %93 : vector<2x32xf32>
    %95 = vector.extract_strided_slice %16 {offsets = [8, 0], sizes = [2, 128], strides = [1, 1]} : vector<16x128xf32> to vector<2x128xf32>
    %cst_19 = arith.constant dense<0.000000e+00> : vector<2x128xf32>
    %96 = tpu.matmul %94, %10, %cst_19 {dimension_numbers = #tpu.dot_dimension_numbers<[1], [0], [0], [1], [0, 0, 1, 1], [], []>} : vector<2x32xf32>, vector<32x128xf32>, vector<2x128xf32> -> vector<2x128xf32>
    %97 = arith.addf %95, %96 : vector<2x128xf32>
    %98 = vector.extract_strided_slice %97 {offsets = [0, 0], sizes = [2, 96], strides = [1, 1]} : vector<2x128xf32> to vector<2x96xf32>
    %99 = arith.negf %98 : vector<2x96xf32>
    %100 = math.exp %99 : vector<2x96xf32>
    %cst_20 = arith.constant 1.000000e+00 : f32
    %101 = vector.broadcast %cst_20 : f32 to vector<2x96xf32>
    %102 = arith.addf %101, %100 : vector<2x96xf32>
    %103 = arith.divf %101, %102 : vector<2x96xf32>
    %104 = vector.extract_strided_slice %103 {offsets = [0, 0], sizes = [2, 32], strides = [1, 1]} : vector<2x96xf32> to vector<2x32xf32>
    %105 = vector.extract_strided_slice %103 {offsets = [0, 32], sizes = [2, 32], strides = [1, 1]} : vector<2x96xf32> to vector<2x32xf32>
    %106 = vector.extract_strided_slice %103 {offsets = [0, 64], sizes = [2, 32], strides = [1, 1]} : vector<2x96xf32> to vector<2x32xf32>
    %107 = vector.extract_strided_slice %97 {offsets = [0, 96], sizes = [2, 32], strides = [1, 1]} : vector<2x128xf32> to vector<2x32xf32>
    %108 = math.tanh %107 : vector<2x32xf32>
    %109 = arith.mulf %105, %92 : vector<2x32xf32>
    %110 = arith.mulf %104, %108 : vector<2x32xf32>
    %111 = arith.addf %109, %110 : vector<2x32xf32>
    %112 = math.tanh %111 : vector<2x32xf32>
    %113 = arith.mulf %106, %112 : vector<2x32xf32>
    %114 = vector.extract_strided_slice %16 {offsets = [10, 0], sizes = [2, 128], strides = [1, 1]} : vector<16x128xf32> to vector<2x128xf32>
    %cst_21 = arith.constant dense<0.000000e+00> : vector<2x128xf32>
    %115 = tpu.matmul %113, %10, %cst_21 {dimension_numbers = #tpu.dot_dimension_numbers<[1], [0], [0], [1], [0, 0, 1, 1], [], []>} : vector<2x32xf32>, vector<32x128xf32>, vector<2x128xf32> -> vector<2x128xf32>
    %116 = arith.addf %114, %115 : vector<2x128xf32>
    %117 = vector.extract_strided_slice %116 {offsets = [0, 0], sizes = [2, 96], strides = [1, 1]} : vector<2x128xf32> to vector<2x96xf32>
    %118 = arith.negf %117 : vector<2x96xf32>
    %119 = math.exp %118 : vector<2x96xf32>
    %cst_22 = arith.constant 1.000000e+00 : f32
    %120 = vector.broadcast %cst_22 : f32 to vector<2x96xf32>
    %121 = arith.addf %120, %119 : vector<2x96xf32>
    %122 = arith.divf %120, %121 : vector<2x96xf32>
    %123 = vector.extract_strided_slice %122 {offsets = [0, 0], sizes = [2, 32], strides = [1, 1]} : vector<2x96xf32> to vector<2x32xf32>
    %124 = vector.extract_strided_slice %122 {offsets = [0, 32], sizes = [2, 32], strides = [1, 1]} : vector<2x96xf32> to vector<2x32xf32>
    %125 = vector.extract_strided_slice %122 {offsets = [0, 64], sizes = [2, 32], strides = [1, 1]} : vector<2x96xf32> to vector<2x32xf32>
    %126 = vector.extract_strided_slice %116 {offsets = [0, 96], sizes = [2, 32], strides = [1, 1]} : vector<2x128xf32> to vector<2x32xf32>
    %127 = math.tanh %126 : vector<2x32xf32>
    %128 = arith.mulf %124, %111 : vector<2x32xf32>
    %129 = arith.mulf %123, %127 : vector<2x32xf32>
    %130 = arith.addf %128, %129 : vector<2x32xf32>
    %131 = math.tanh %130 : vector<2x32xf32>
    %132 = arith.mulf %125, %131 : vector<2x32xf32>
    %133 = vector.extract_strided_slice %16 {offsets = [12, 0], sizes = [2, 128], strides = [1, 1]} : vector<16x128xf32> to vector<2x128xf32>
    %cst_23 = arith.constant dense<0.000000e+00> : vector<2x128xf32>
    %134 = tpu.matmul %132, %10, %cst_23 {dimension_numbers = #tpu.dot_dimension_numbers<[1], [0], [0], [1], [0, 0, 1, 1], [], []>} : vector<2x32xf32>, vector<32x128xf32>, vector<2x128xf32> -> vector<2x128xf32>
    %135 = arith.addf %133, %134 : vector<2x128xf32>
    %136 = vector.extract_strided_slice %135 {offsets = [0, 0], sizes = [2, 96], strides = [1, 1]} : vector<2x128xf32> to vector<2x96xf32>
    %137 = arith.negf %136 : vector<2x96xf32>
    %138 = math.exp %137 : vector<2x96xf32>
    %cst_24 = arith.constant 1.000000e+00 : f32
    %139 = vector.broadcast %cst_24 : f32 to vector<2x96xf32>
    %140 = arith.addf %139, %138 : vector<2x96xf32>
    %141 = arith.divf %139, %140 : vector<2x96xf32>
    %142 = vector.extract_strided_slice %141 {offsets = [0, 0], sizes = [2, 32], strides = [1, 1]} : vector<2x96xf32> to vector<2x32xf32>
    %143 = vector.extract_strided_slice %141 {offsets = [0, 32], sizes = [2, 32], strides = [1, 1]} : vector<2x96xf32> to vector<2x32xf32>
    %144 = vector.extract_strided_slice %141 {offsets = [0, 64], sizes = [2, 32], strides = [1, 1]} : vector<2x96xf32> to vector<2x32xf32>
    %145 = vector.extract_strided_slice %135 {offsets = [0, 96], sizes = [2, 32], strides = [1, 1]} : vector<2x128xf32> to vector<2x32xf32>
    %146 = math.tanh %145 : vector<2x32xf32>
    %147 = arith.mulf %143, %130 : vector<2x32xf32>
    %148 = arith.mulf %142, %146 : vector<2x32xf32>
    %149 = arith.addf %147, %148 : vector<2x32xf32>
    %150 = math.tanh %149 : vector<2x32xf32>
    %151 = arith.mulf %144, %150 : vector<2x32xf32>
    %152 = vector.extract_strided_slice %16 {offsets = [14, 0], sizes = [2, 128], strides = [1, 1]} : vector<16x128xf32> to vector<2x128xf32>
    %cst_25 = arith.constant dense<0.000000e+00> : vector<2x128xf32>
    %153 = tpu.matmul %151, %10, %cst_25 {dimension_numbers = #tpu.dot_dimension_numbers<[1], [0], [0], [1], [0, 0, 1, 1], [], []>} : vector<2x32xf32>, vector<32x128xf32>, vector<2x128xf32> -> vector<2x128xf32>
    %154 = arith.addf %152, %153 : vector<2x128xf32>
    %155 = vector.extract_strided_slice %154 {offsets = [0, 0], sizes = [2, 96], strides = [1, 1]} : vector<2x128xf32> to vector<2x96xf32>
    %156 = arith.negf %155 : vector<2x96xf32>
    %157 = math.exp %156 : vector<2x96xf32>
    %cst_26 = arith.constant 1.000000e+00 : f32
    %158 = vector.broadcast %cst_26 : f32 to vector<2x96xf32>
    %159 = arith.addf %158, %157 : vector<2x96xf32>
    %160 = arith.divf %158, %159 : vector<2x96xf32>
    %161 = vector.extract_strided_slice %160 {offsets = [0, 0], sizes = [2, 32], strides = [1, 1]} : vector<2x96xf32> to vector<2x32xf32>
    %162 = vector.extract_strided_slice %160 {offsets = [0, 32], sizes = [2, 32], strides = [1, 1]} : vector<2x96xf32> to vector<2x32xf32>
    %163 = vector.extract_strided_slice %160 {offsets = [0, 64], sizes = [2, 32], strides = [1, 1]} : vector<2x96xf32> to vector<2x32xf32>
    %164 = vector.extract_strided_slice %154 {offsets = [0, 96], sizes = [2, 32], strides = [1, 1]} : vector<2x128xf32> to vector<2x32xf32>
    %165 = math.tanh %164 : vector<2x32xf32>
    %166 = arith.mulf %162, %149 : vector<2x32xf32>
    %167 = arith.mulf %161, %165 : vector<2x32xf32>
    %168 = arith.addf %166, %167 : vector<2x32xf32>
    %169 = math.tanh %168 : vector<2x32xf32>
    %170 = arith.mulf %163, %169 : vector<2x32xf32>
    %c40 = arith.constant 40 : index
    %c0_27 = arith.constant 0 : index
    %171 = vector.load %arg2[%c40, %c0_27] : memref<232x128xf32, #tpu.memory_space<vmem>>, vector<32x128xf32>
    %c72 = arith.constant 72 : index
    %c0_28 = arith.constant 0 : index
    %172 = vector.load %arg2[%c72, %c0_28] : memref<232x128xf32, #tpu.memory_space<vmem>>, vector<32x128xf32>
    %cst_29 = arith.constant 0.000000e+00 : f32
    %173 = vector.broadcast %cst_29 : f32 to vector<2x32xf32>
    %cst_30 = arith.constant 0.000000e+00 : f32
    %174 = vector.broadcast %cst_30 : f32 to vector<2x32xf32>
    %cst_31 = arith.constant dense<0.000000e+00> : vector<2x128xf32>
    %175 = tpu.matmul %37, %171, %cst_31 {dimension_numbers = #tpu.dot_dimension_numbers<[1], [0], [0], [1], [0, 0, 1, 1], [], []>} : vector<2x32xf32>, vector<32x128xf32>, vector<2x128xf32> -> vector<2x128xf32>
    %cst_32 = arith.constant dense<0.000000e+00> : vector<2x128xf32>
    %176 = tpu.matmul %173, %172, %cst_32 {dimension_numbers = #tpu.dot_dimension_numbers<[1], [0], [0], [1], [0, 0, 1, 1], [], []>} : vector<2x32xf32>, vector<32x128xf32>, vector<2x128xf32> -> vector<2x128xf32>
    %177 = arith.addf %175, %176 : vector<2x128xf32>
    %178 = arith.addf %177, %2 : vector<2x128xf32>
    %179 = vector.extract_strided_slice %178 {offsets = [0, 0], sizes = [2, 96], strides = [1, 1]} : vector<2x128xf32> to vector<2x96xf32>
    %180 = arith.negf %179 : vector<2x96xf32>
    %181 = math.exp %180 : vector<2x96xf32>
    %cst_33 = arith.constant 1.000000e+00 : f32
    %182 = vector.broadcast %cst_33 : f32 to vector<2x96xf32>
    %183 = arith.addf %182, %181 : vector<2x96xf32>
    %184 = arith.divf %182, %183 : vector<2x96xf32>
    %185 = vector.extract_strided_slice %184 {offsets = [0, 0], sizes = [2, 32], strides = [1, 1]} : vector<2x96xf32> to vector<2x32xf32>
    %186 = vector.extract_strided_slice %184 {offsets = [0, 32], sizes = [2, 32], strides = [1, 1]} : vector<2x96xf32> to vector<2x32xf32>
    %187 = vector.extract_strided_slice %184 {offsets = [0, 64], sizes = [2, 32], strides = [1, 1]} : vector<2x96xf32> to vector<2x32xf32>
    %188 = vector.extract_strided_slice %178 {offsets = [0, 96], sizes = [2, 32], strides = [1, 1]} : vector<2x128xf32> to vector<2x32xf32>
    %189 = math.tanh %188 : vector<2x32xf32>
    %190 = arith.mulf %186, %174 : vector<2x32xf32>
    %191 = arith.mulf %185, %189 : vector<2x32xf32>
    %192 = arith.addf %190, %191 : vector<2x32xf32>
    %193 = math.tanh %192 : vector<2x32xf32>
    %194 = arith.mulf %187, %193 : vector<2x32xf32>
    %cst_34 = arith.constant dense<0.000000e+00> : vector<2x128xf32>
    %195 = tpu.matmul %56, %171, %cst_34 {dimension_numbers = #tpu.dot_dimension_numbers<[1], [0], [0], [1], [0, 0, 1, 1], [], []>} : vector<2x32xf32>, vector<32x128xf32>, vector<2x128xf32> -> vector<2x128xf32>
    %cst_35 = arith.constant dense<0.000000e+00> : vector<2x128xf32>
    %196 = tpu.matmul %194, %172, %cst_35 {dimension_numbers = #tpu.dot_dimension_numbers<[1], [0], [0], [1], [0, 0, 1, 1], [], []>} : vector<2x32xf32>, vector<32x128xf32>, vector<2x128xf32> -> vector<2x128xf32>
    %197 = arith.addf %195, %196 : vector<2x128xf32>
    %198 = arith.addf %197, %2 : vector<2x128xf32>
    %199 = vector.extract_strided_slice %198 {offsets = [0, 0], sizes = [2, 96], strides = [1, 1]} : vector<2x128xf32> to vector<2x96xf32>
    %200 = arith.negf %199 : vector<2x96xf32>
    %201 = math.exp %200 : vector<2x96xf32>
    %cst_36 = arith.constant 1.000000e+00 : f32
    %202 = vector.broadcast %cst_36 : f32 to vector<2x96xf32>
    %203 = arith.addf %202, %201 : vector<2x96xf32>
    %204 = arith.divf %202, %203 : vector<2x96xf32>
    %205 = vector.extract_strided_slice %204 {offsets = [0, 0], sizes = [2, 32], strides = [1, 1]} : vector<2x96xf32> to vector<2x32xf32>
    %206 = vector.extract_strided_slice %204 {offsets = [0, 32], sizes = [2, 32], strides = [1, 1]} : vector<2x96xf32> to vector<2x32xf32>
    %207 = vector.extract_strided_slice %204 {offsets = [0, 64], sizes = [2, 32], strides = [1, 1]} : vector<2x96xf32> to vector<2x32xf32>
    %208 = vector.extract_strided_slice %198 {offsets = [0, 96], sizes = [2, 32], strides = [1, 1]} : vector<2x128xf32> to vector<2x32xf32>
    %209 = math.tanh %208 : vector<2x32xf32>
    %210 = arith.mulf %206, %192 : vector<2x32xf32>
    %211 = arith.mulf %205, %209 : vector<2x32xf32>
    %212 = arith.addf %210, %211 : vector<2x32xf32>
    %213 = math.tanh %212 : vector<2x32xf32>
    %214 = arith.mulf %207, %213 : vector<2x32xf32>
    %cst_37 = arith.constant dense<0.000000e+00> : vector<2x128xf32>
    %215 = tpu.matmul %75, %171, %cst_37 {dimension_numbers = #tpu.dot_dimension_numbers<[1], [0], [0], [1], [0, 0, 1, 1], [], []>} : vector<2x32xf32>, vector<32x128xf32>, vector<2x128xf32> -> vector<2x128xf32>
    %cst_38 = arith.constant dense<0.000000e+00> : vector<2x128xf32>
    %216 = tpu.matmul %214, %172, %cst_38 {dimension_numbers = #tpu.dot_dimension_numbers<[1], [0], [0], [1], [0, 0, 1, 1], [], []>} : vector<2x32xf32>, vector<32x128xf32>, vector<2x128xf32> -> vector<2x128xf32>
    %217 = arith.addf %215, %216 : vector<2x128xf32>
    %218 = arith.addf %217, %2 : vector<2x128xf32>
    %219 = vector.extract_strided_slice %218 {offsets = [0, 0], sizes = [2, 96], strides = [1, 1]} : vector<2x128xf32> to vector<2x96xf32>
    %220 = arith.negf %219 : vector<2x96xf32>
    %221 = math.exp %220 : vector<2x96xf32>
    %cst_39 = arith.constant 1.000000e+00 : f32
    %222 = vector.broadcast %cst_39 : f32 to vector<2x96xf32>
    %223 = arith.addf %222, %221 : vector<2x96xf32>
    %224 = arith.divf %222, %223 : vector<2x96xf32>
    %225 = vector.extract_strided_slice %224 {offsets = [0, 0], sizes = [2, 32], strides = [1, 1]} : vector<2x96xf32> to vector<2x32xf32>
    %226 = vector.extract_strided_slice %224 {offsets = [0, 32], sizes = [2, 32], strides = [1, 1]} : vector<2x96xf32> to vector<2x32xf32>
    %227 = vector.extract_strided_slice %224 {offsets = [0, 64], sizes = [2, 32], strides = [1, 1]} : vector<2x96xf32> to vector<2x32xf32>
    %228 = vector.extract_strided_slice %218 {offsets = [0, 96], sizes = [2, 32], strides = [1, 1]} : vector<2x128xf32> to vector<2x32xf32>
    %229 = math.tanh %228 : vector<2x32xf32>
    %230 = arith.mulf %226, %212 : vector<2x32xf32>
    %231 = arith.mulf %225, %229 : vector<2x32xf32>
    %232 = arith.addf %230, %231 : vector<2x32xf32>
    %233 = math.tanh %232 : vector<2x32xf32>
    %234 = arith.mulf %227, %233 : vector<2x32xf32>
    %cst_40 = arith.constant dense<0.000000e+00> : vector<2x128xf32>
    %235 = tpu.matmul %94, %171, %cst_40 {dimension_numbers = #tpu.dot_dimension_numbers<[1], [0], [0], [1], [0, 0, 1, 1], [], []>} : vector<2x32xf32>, vector<32x128xf32>, vector<2x128xf32> -> vector<2x128xf32>
    %cst_41 = arith.constant dense<0.000000e+00> : vector<2x128xf32>
    %236 = tpu.matmul %234, %172, %cst_41 {dimension_numbers = #tpu.dot_dimension_numbers<[1], [0], [0], [1], [0, 0, 1, 1], [], []>} : vector<2x32xf32>, vector<32x128xf32>, vector<2x128xf32> -> vector<2x128xf32>
    %237 = arith.addf %235, %236 : vector<2x128xf32>
    %238 = arith.addf %237, %2 : vector<2x128xf32>
    %239 = vector.extract_strided_slice %238 {offsets = [0, 0], sizes = [2, 96], strides = [1, 1]} : vector<2x128xf32> to vector<2x96xf32>
    %240 = arith.negf %239 : vector<2x96xf32>
    %241 = math.exp %240 : vector<2x96xf32>
    %cst_42 = arith.constant 1.000000e+00 : f32
    %242 = vector.broadcast %cst_42 : f32 to vector<2x96xf32>
    %243 = arith.addf %242, %241 : vector<2x96xf32>
    %244 = arith.divf %242, %243 : vector<2x96xf32>
    %245 = vector.extract_strided_slice %244 {offsets = [0, 0], sizes = [2, 32], strides = [1, 1]} : vector<2x96xf32> to vector<2x32xf32>
    %246 = vector.extract_strided_slice %244 {offsets = [0, 32], sizes = [2, 32], strides = [1, 1]} : vector<2x96xf32> to vector<2x32xf32>
    %247 = vector.extract_strided_slice %244 {offsets = [0, 64], sizes = [2, 32], strides = [1, 1]} : vector<2x96xf32> to vector<2x32xf32>
    %248 = vector.extract_strided_slice %238 {offsets = [0, 96], sizes = [2, 32], strides = [1, 1]} : vector<2x128xf32> to vector<2x32xf32>
    %249 = math.tanh %248 : vector<2x32xf32>
    %250 = arith.mulf %246, %232 : vector<2x32xf32>
    %251 = arith.mulf %245, %249 : vector<2x32xf32>
    %252 = arith.addf %250, %251 : vector<2x32xf32>
    %253 = math.tanh %252 : vector<2x32xf32>
    %254 = arith.mulf %247, %253 : vector<2x32xf32>
    %cst_43 = arith.constant dense<0.000000e+00> : vector<2x128xf32>
    %255 = tpu.matmul %113, %171, %cst_43 {dimension_numbers = #tpu.dot_dimension_numbers<[1], [0], [0], [1], [0, 0, 1, 1], [], []>} : vector<2x32xf32>, vector<32x128xf32>, vector<2x128xf32> -> vector<2x128xf32>
    %cst_44 = arith.constant dense<0.000000e+00> : vector<2x128xf32>
    %256 = tpu.matmul %254, %172, %cst_44 {dimension_numbers = #tpu.dot_dimension_numbers<[1], [0], [0], [1], [0, 0, 1, 1], [], []>} : vector<2x32xf32>, vector<32x128xf32>, vector<2x128xf32> -> vector<2x128xf32>
    %257 = arith.addf %255, %256 : vector<2x128xf32>
    %258 = arith.addf %257, %2 : vector<2x128xf32>
    %259 = vector.extract_strided_slice %258 {offsets = [0, 0], sizes = [2, 96], strides = [1, 1]} : vector<2x128xf32> to vector<2x96xf32>
    %260 = arith.negf %259 : vector<2x96xf32>
    %261 = math.exp %260 : vector<2x96xf32>
    %cst_45 = arith.constant 1.000000e+00 : f32
    %262 = vector.broadcast %cst_45 : f32 to vector<2x96xf32>
    %263 = arith.addf %262, %261 : vector<2x96xf32>
    %264 = arith.divf %262, %263 : vector<2x96xf32>
    %265 = vector.extract_strided_slice %264 {offsets = [0, 0], sizes = [2, 32], strides = [1, 1]} : vector<2x96xf32> to vector<2x32xf32>
    %266 = vector.extract_strided_slice %264 {offsets = [0, 32], sizes = [2, 32], strides = [1, 1]} : vector<2x96xf32> to vector<2x32xf32>
    %267 = vector.extract_strided_slice %264 {offsets = [0, 64], sizes = [2, 32], strides = [1, 1]} : vector<2x96xf32> to vector<2x32xf32>
    %268 = vector.extract_strided_slice %258 {offsets = [0, 96], sizes = [2, 32], strides = [1, 1]} : vector<2x128xf32> to vector<2x32xf32>
    %269 = math.tanh %268 : vector<2x32xf32>
    %270 = arith.mulf %266, %252 : vector<2x32xf32>
    %271 = arith.mulf %265, %269 : vector<2x32xf32>
    %272 = arith.addf %270, %271 : vector<2x32xf32>
    %273 = math.tanh %272 : vector<2x32xf32>
    %274 = arith.mulf %267, %273 : vector<2x32xf32>
    %cst_46 = arith.constant dense<0.000000e+00> : vector<2x128xf32>
    %275 = tpu.matmul %132, %171, %cst_46 {dimension_numbers = #tpu.dot_dimension_numbers<[1], [0], [0], [1], [0, 0, 1, 1], [], []>} : vector<2x32xf32>, vector<32x128xf32>, vector<2x128xf32> -> vector<2x128xf32>
    %cst_47 = arith.constant dense<0.000000e+00> : vector<2x128xf32>
    %276 = tpu.matmul %274, %172, %cst_47 {dimension_numbers = #tpu.dot_dimension_numbers<[1], [0], [0], [1], [0, 0, 1, 1], [], []>} : vector<2x32xf32>, vector<32x128xf32>, vector<2x128xf32> -> vector<2x128xf32>
    %277 = arith.addf %275, %276 : vector<2x128xf32>
    %278 = arith.addf %277, %2 : vector<2x128xf32>
    %279 = vector.extract_strided_slice %278 {offsets = [0, 0], sizes = [2, 96], strides = [1, 1]} : vector<2x128xf32> to vector<2x96xf32>
    %280 = arith.negf %279 : vector<2x96xf32>
    %281 = math.exp %280 : vector<2x96xf32>
    %cst_48 = arith.constant 1.000000e+00 : f32
    %282 = vector.broadcast %cst_48 : f32 to vector<2x96xf32>
    %283 = arith.addf %282, %281 : vector<2x96xf32>
    %284 = arith.divf %282, %283 : vector<2x96xf32>
    %285 = vector.extract_strided_slice %284 {offsets = [0, 0], sizes = [2, 32], strides = [1, 1]} : vector<2x96xf32> to vector<2x32xf32>
    %286 = vector.extract_strided_slice %284 {offsets = [0, 32], sizes = [2, 32], strides = [1, 1]} : vector<2x96xf32> to vector<2x32xf32>
    %287 = vector.extract_strided_slice %284 {offsets = [0, 64], sizes = [2, 32], strides = [1, 1]} : vector<2x96xf32> to vector<2x32xf32>
    %288 = vector.extract_strided_slice %278 {offsets = [0, 96], sizes = [2, 32], strides = [1, 1]} : vector<2x128xf32> to vector<2x32xf32>
    %289 = math.tanh %288 : vector<2x32xf32>
    %290 = arith.mulf %286, %272 : vector<2x32xf32>
    %291 = arith.mulf %285, %289 : vector<2x32xf32>
    %292 = arith.addf %290, %291 : vector<2x32xf32>
    %293 = math.tanh %292 : vector<2x32xf32>
    %294 = arith.mulf %287, %293 : vector<2x32xf32>
    %cst_49 = arith.constant dense<0.000000e+00> : vector<2x128xf32>
    %295 = tpu.matmul %151, %171, %cst_49 {dimension_numbers = #tpu.dot_dimension_numbers<[1], [0], [0], [1], [0, 0, 1, 1], [], []>} : vector<2x32xf32>, vector<32x128xf32>, vector<2x128xf32> -> vector<2x128xf32>
    %cst_50 = arith.constant dense<0.000000e+00> : vector<2x128xf32>
    %296 = tpu.matmul %294, %172, %cst_50 {dimension_numbers = #tpu.dot_dimension_numbers<[1], [0], [0], [1], [0, 0, 1, 1], [], []>} : vector<2x32xf32>, vector<32x128xf32>, vector<2x128xf32> -> vector<2x128xf32>
    %297 = arith.addf %295, %296 : vector<2x128xf32>
    %298 = arith.addf %297, %2 : vector<2x128xf32>
    %299 = vector.extract_strided_slice %298 {offsets = [0, 0], sizes = [2, 96], strides = [1, 1]} : vector<2x128xf32> to vector<2x96xf32>
    %300 = arith.negf %299 : vector<2x96xf32>
    %301 = math.exp %300 : vector<2x96xf32>
    %cst_51 = arith.constant 1.000000e+00 : f32
    %302 = vector.broadcast %cst_51 : f32 to vector<2x96xf32>
    %303 = arith.addf %302, %301 : vector<2x96xf32>
    %304 = arith.divf %302, %303 : vector<2x96xf32>
    %305 = vector.extract_strided_slice %304 {offsets = [0, 0], sizes = [2, 32], strides = [1, 1]} : vector<2x96xf32> to vector<2x32xf32>
    %306 = vector.extract_strided_slice %304 {offsets = [0, 32], sizes = [2, 32], strides = [1, 1]} : vector<2x96xf32> to vector<2x32xf32>
    %307 = vector.extract_strided_slice %304 {offsets = [0, 64], sizes = [2, 32], strides = [1, 1]} : vector<2x96xf32> to vector<2x32xf32>
    %308 = vector.extract_strided_slice %298 {offsets = [0, 96], sizes = [2, 32], strides = [1, 1]} : vector<2x128xf32> to vector<2x32xf32>
    %309 = math.tanh %308 : vector<2x32xf32>
    %310 = arith.mulf %306, %292 : vector<2x32xf32>
    %311 = arith.mulf %305, %309 : vector<2x32xf32>
    %312 = arith.addf %310, %311 : vector<2x32xf32>
    %313 = math.tanh %312 : vector<2x32xf32>
    %314 = arith.mulf %307, %313 : vector<2x32xf32>
    %cst_52 = arith.constant dense<0.000000e+00> : vector<2x128xf32>
    %315 = tpu.matmul %170, %171, %cst_52 {dimension_numbers = #tpu.dot_dimension_numbers<[1], [0], [0], [1], [0, 0, 1, 1], [], []>} : vector<2x32xf32>, vector<32x128xf32>, vector<2x128xf32> -> vector<2x128xf32>
    %cst_53 = arith.constant dense<0.000000e+00> : vector<2x128xf32>
    %316 = tpu.matmul %314, %172, %cst_53 {dimension_numbers = #tpu.dot_dimension_numbers<[1], [0], [0], [1], [0, 0, 1, 1], [], []>} : vector<2x32xf32>, vector<32x128xf32>, vector<2x128xf32> -> vector<2x128xf32>
    %317 = arith.addf %315, %316 : vector<2x128xf32>
    %318 = arith.addf %317, %2 : vector<2x128xf32>
    %319 = vector.extract_strided_slice %318 {offsets = [0, 0], sizes = [2, 96], strides = [1, 1]} : vector<2x128xf32> to vector<2x96xf32>
    %320 = arith.negf %319 : vector<2x96xf32>
    %321 = math.exp %320 : vector<2x96xf32>
    %cst_54 = arith.constant 1.000000e+00 : f32
    %322 = vector.broadcast %cst_54 : f32 to vector<2x96xf32>
    %323 = arith.addf %322, %321 : vector<2x96xf32>
    %324 = arith.divf %322, %323 : vector<2x96xf32>
    %325 = vector.extract_strided_slice %324 {offsets = [0, 0], sizes = [2, 32], strides = [1, 1]} : vector<2x96xf32> to vector<2x32xf32>
    %326 = vector.extract_strided_slice %324 {offsets = [0, 32], sizes = [2, 32], strides = [1, 1]} : vector<2x96xf32> to vector<2x32xf32>
    %327 = vector.extract_strided_slice %324 {offsets = [0, 64], sizes = [2, 32], strides = [1, 1]} : vector<2x96xf32> to vector<2x32xf32>
    %328 = vector.extract_strided_slice %318 {offsets = [0, 96], sizes = [2, 32], strides = [1, 1]} : vector<2x128xf32> to vector<2x32xf32>
    %329 = math.tanh %328 : vector<2x32xf32>
    %330 = arith.mulf %326, %312 : vector<2x32xf32>
    %331 = arith.mulf %325, %329 : vector<2x32xf32>
    %332 = arith.addf %330, %331 : vector<2x32xf32>
    %333 = math.tanh %332 : vector<2x32xf32>
    %334 = arith.mulf %327, %333 : vector<2x32xf32>
    %c104 = arith.constant 104 : index
    %c0_55 = arith.constant 0 : index
    %335 = vector.load %arg2[%c104, %c0_55] : memref<232x128xf32, #tpu.memory_space<vmem>>, vector<32x128xf32>
    %c136 = arith.constant 136 : index
    %c0_56 = arith.constant 0 : index
    %336 = vector.load %arg2[%c136, %c0_56] : memref<232x128xf32, #tpu.memory_space<vmem>>, vector<32x128xf32>
    %c168 = arith.constant 168 : index
    %c0_57 = arith.constant 0 : index
    %337 = vector.load %arg2[%c168, %c0_57] : memref<232x128xf32, #tpu.memory_space<vmem>>, vector<32x128xf32>
    %c200 = arith.constant 200 : index
    %c0_58 = arith.constant 0 : index
    %338 = vector.load %arg2[%c200, %c0_58] : memref<232x128xf32, #tpu.memory_space<vmem>>, vector<32x128xf32>
    %cst_59 = arith.constant dense<0.000000e+00> : vector<2x128xf32>
    %339 = tpu.matmul %334, %335, %cst_59 {dimension_numbers = #tpu.dot_dimension_numbers<[1], [0], [0], [1], [0, 0, 1, 1], [], []>} : vector<2x32xf32>, vector<32x128xf32>, vector<2x128xf32> -> vector<2x128xf32>
    %cst_60 = arith.constant dense<0.000000e+00> : vector<2x128xf32>
    %340 = tpu.matmul %170, %336, %cst_60 {dimension_numbers = #tpu.dot_dimension_numbers<[1], [0], [0], [1], [0, 0, 1, 1], [], []>} : vector<2x32xf32>, vector<32x128xf32>, vector<2x128xf32> -> vector<2x128xf32>
    %341 = arith.addf %339, %340 : vector<2x128xf32>
    %342 = arith.addf %341, %5 : vector<2x128xf32>
    %343 = vector.extract_strided_slice %342 {offsets = [0, 0], sizes = [2, 96], strides = [1, 1]} : vector<2x128xf32> to vector<2x96xf32>
    %344 = arith.negf %343 : vector<2x96xf32>
    %345 = math.exp %344 : vector<2x96xf32>
    %cst_61 = arith.constant 1.000000e+00 : f32
    %346 = vector.broadcast %cst_61 : f32 to vector<2x96xf32>
    %347 = arith.addf %346, %345 : vector<2x96xf32>
    %348 = arith.divf %346, %347 : vector<2x96xf32>
    %349 = vector.extract_strided_slice %348 {offsets = [0, 0], sizes = [2, 32], strides = [1, 1]} : vector<2x96xf32> to vector<2x32xf32>
    %350 = vector.extract_strided_slice %348 {offsets = [0, 32], sizes = [2, 32], strides = [1, 1]} : vector<2x96xf32> to vector<2x32xf32>
    %351 = vector.extract_strided_slice %348 {offsets = [0, 64], sizes = [2, 32], strides = [1, 1]} : vector<2x96xf32> to vector<2x32xf32>
    %352 = vector.extract_strided_slice %342 {offsets = [0, 96], sizes = [2, 32], strides = [1, 1]} : vector<2x128xf32> to vector<2x32xf32>
    %353 = math.tanh %352 : vector<2x32xf32>
    %354 = arith.mulf %350, %168 : vector<2x32xf32>
    %355 = arith.mulf %349, %353 : vector<2x32xf32>
    %356 = arith.addf %354, %355 : vector<2x32xf32>
    %357 = math.tanh %356 : vector<2x32xf32>
    %358 = arith.mulf %351, %357 : vector<2x32xf32>
    %cst_62 = arith.constant dense<0.000000e+00> : vector<2x128xf32>
    %359 = tpu.matmul %358, %337, %cst_62 {dimension_numbers = #tpu.dot_dimension_numbers<[1], [0], [0], [1], [0, 0, 1, 1], [], []>} : vector<2x32xf32>, vector<32x128xf32>, vector<2x128xf32> -> vector<2x128xf32>
    %cst_63 = arith.constant dense<0.000000e+00> : vector<2x128xf32>
    %360 = tpu.matmul %334, %338, %cst_63 {dimension_numbers = #tpu.dot_dimension_numbers<[1], [0], [0], [1], [0, 0, 1, 1], [], []>} : vector<2x32xf32>, vector<32x128xf32>, vector<2x128xf32> -> vector<2x128xf32>
    %361 = arith.addf %359, %360 : vector<2x128xf32>
    %362 = arith.addf %361, %8 : vector<2x128xf32>
    %363 = vector.extract_strided_slice %362 {offsets = [0, 0], sizes = [2, 96], strides = [1, 1]} : vector<2x128xf32> to vector<2x96xf32>
    %364 = arith.negf %363 : vector<2x96xf32>
    %365 = math.exp %364 : vector<2x96xf32>
    %cst_64 = arith.constant 1.000000e+00 : f32
    %366 = vector.broadcast %cst_64 : f32 to vector<2x96xf32>
    %367 = arith.addf %366, %365 : vector<2x96xf32>
    %368 = arith.divf %366, %367 : vector<2x96xf32>
    %369 = vector.extract_strided_slice %368 {offsets = [0, 0], sizes = [2, 32], strides = [1, 1]} : vector<2x96xf32> to vector<2x32xf32>
    %370 = vector.extract_strided_slice %368 {offsets = [0, 32], sizes = [2, 32], strides = [1, 1]} : vector<2x96xf32> to vector<2x32xf32>
    %371 = vector.extract_strided_slice %368 {offsets = [0, 64], sizes = [2, 32], strides = [1, 1]} : vector<2x96xf32> to vector<2x32xf32>
    %372 = vector.extract_strided_slice %362 {offsets = [0, 96], sizes = [2, 32], strides = [1, 1]} : vector<2x128xf32> to vector<2x32xf32>
    %373 = math.tanh %372 : vector<2x32xf32>
    %374 = arith.mulf %370, %332 : vector<2x32xf32>
    %375 = arith.mulf %369, %373 : vector<2x32xf32>
    %376 = arith.addf %374, %375 : vector<2x32xf32>
    %377 = math.tanh %376 : vector<2x32xf32>
    %378 = arith.mulf %371, %377 : vector<2x32xf32>
    %cst_65 = arith.constant dense<0.000000e+00> : vector<2x128xf32>
    %379 = tpu.matmul %378, %335, %cst_65 {dimension_numbers = #tpu.dot_dimension_numbers<[1], [0], [0], [1], [0, 0, 1, 1], [], []>} : vector<2x32xf32>, vector<32x128xf32>, vector<2x128xf32> -> vector<2x128xf32>
    %cst_66 = arith.constant dense<0.000000e+00> : vector<2x128xf32>
    %380 = tpu.matmul %358, %336, %cst_66 {dimension_numbers = #tpu.dot_dimension_numbers<[1], [0], [0], [1], [0, 0, 1, 1], [], []>} : vector<2x32xf32>, vector<32x128xf32>, vector<2x128xf32> -> vector<2x128xf32>
    %381 = arith.addf %379, %380 : vector<2x128xf32>
    %382 = arith.addf %381, %5 : vector<2x128xf32>
    %383 = vector.extract_strided_slice %382 {offsets = [0, 0], sizes = [2, 96], strides = [1, 1]} : vector<2x128xf32> to vector<2x96xf32>
    %384 = arith.negf %383 : vector<2x96xf32>
    %385 = math.exp %384 : vector<2x96xf32>
    %cst_67 = arith.constant 1.000000e+00 : f32
    %386 = vector.broadcast %cst_67 : f32 to vector<2x96xf32>
    %387 = arith.addf %386, %385 : vector<2x96xf32>
    %388 = arith.divf %386, %387 : vector<2x96xf32>
    %389 = vector.extract_strided_slice %388 {offsets = [0, 0], sizes = [2, 32], strides = [1, 1]} : vector<2x96xf32> to vector<2x32xf32>
    %390 = vector.extract_strided_slice %388 {offsets = [0, 32], sizes = [2, 32], strides = [1, 1]} : vector<2x96xf32> to vector<2x32xf32>
    %391 = vector.extract_strided_slice %388 {offsets = [0, 64], sizes = [2, 32], strides = [1, 1]} : vector<2x96xf32> to vector<2x32xf32>
    %392 = vector.extract_strided_slice %382 {offsets = [0, 96], sizes = [2, 32], strides = [1, 1]} : vector<2x128xf32> to vector<2x32xf32>
    %393 = math.tanh %392 : vector<2x32xf32>
    %394 = arith.mulf %390, %356 : vector<2x32xf32>
    %395 = arith.mulf %389, %393 : vector<2x32xf32>
    %396 = arith.addf %394, %395 : vector<2x32xf32>
    %397 = math.tanh %396 : vector<2x32xf32>
    %398 = arith.mulf %391, %397 : vector<2x32xf32>
    %cst_68 = arith.constant dense<0.000000e+00> : vector<2x128xf32>
    %399 = tpu.matmul %398, %337, %cst_68 {dimension_numbers = #tpu.dot_dimension_numbers<[1], [0], [0], [1], [0, 0, 1, 1], [], []>} : vector<2x32xf32>, vector<32x128xf32>, vector<2x128xf32> -> vector<2x128xf32>
    %cst_69 = arith.constant dense<0.000000e+00> : vector<2x128xf32>
    %400 = tpu.matmul %378, %338, %cst_69 {dimension_numbers = #tpu.dot_dimension_numbers<[1], [0], [0], [1], [0, 0, 1, 1], [], []>} : vector<2x32xf32>, vector<32x128xf32>, vector<2x128xf32> -> vector<2x128xf32>
    %401 = arith.addf %399, %400 : vector<2x128xf32>
    %402 = arith.addf %401, %8 : vector<2x128xf32>
    %403 = vector.extract_strided_slice %402 {offsets = [0, 0], sizes = [2, 96], strides = [1, 1]} : vector<2x128xf32> to vector<2x96xf32>
    %404 = arith.negf %403 : vector<2x96xf32>
    %405 = math.exp %404 : vector<2x96xf32>
    %cst_70 = arith.constant 1.000000e+00 : f32
    %406 = vector.broadcast %cst_70 : f32 to vector<2x96xf32>
    %407 = arith.addf %406, %405 : vector<2x96xf32>
    %408 = arith.divf %406, %407 : vector<2x96xf32>
    %409 = vector.extract_strided_slice %408 {offsets = [0, 0], sizes = [2, 32], strides = [1, 1]} : vector<2x96xf32> to vector<2x32xf32>
    %410 = vector.extract_strided_slice %408 {offsets = [0, 32], sizes = [2, 32], strides = [1, 1]} : vector<2x96xf32> to vector<2x32xf32>
    %411 = vector.extract_strided_slice %408 {offsets = [0, 64], sizes = [2, 32], strides = [1, 1]} : vector<2x96xf32> to vector<2x32xf32>
    %412 = vector.extract_strided_slice %402 {offsets = [0, 96], sizes = [2, 32], strides = [1, 1]} : vector<2x128xf32> to vector<2x32xf32>
    %413 = math.tanh %412 : vector<2x32xf32>
    %414 = arith.mulf %410, %376 : vector<2x32xf32>
    %415 = arith.mulf %409, %413 : vector<2x32xf32>
    %416 = arith.addf %414, %415 : vector<2x32xf32>
    %417 = math.tanh %416 : vector<2x32xf32>
    %418 = arith.mulf %411, %417 : vector<2x32xf32>
    %cst_71 = arith.constant dense<0.000000e+00> : vector<2x128xf32>
    %419 = tpu.matmul %418, %335, %cst_71 {dimension_numbers = #tpu.dot_dimension_numbers<[1], [0], [0], [1], [0, 0, 1, 1], [], []>} : vector<2x32xf32>, vector<32x128xf32>, vector<2x128xf32> -> vector<2x128xf32>
    %cst_72 = arith.constant dense<0.000000e+00> : vector<2x128xf32>
    %420 = tpu.matmul %398, %336, %cst_72 {dimension_numbers = #tpu.dot_dimension_numbers<[1], [0], [0], [1], [0, 0, 1, 1], [], []>} : vector<2x32xf32>, vector<32x128xf32>, vector<2x128xf32> -> vector<2x128xf32>
    %421 = arith.addf %419, %420 : vector<2x128xf32>
    %422 = arith.addf %421, %5 : vector<2x128xf32>
    %423 = vector.extract_strided_slice %422 {offsets = [0, 0], sizes = [2, 96], strides = [1, 1]} : vector<2x128xf32> to vector<2x96xf32>
    %424 = arith.negf %423 : vector<2x96xf32>
    %425 = math.exp %424 : vector<2x96xf32>
    %cst_73 = arith.constant 1.000000e+00 : f32
    %426 = vector.broadcast %cst_73 : f32 to vector<2x96xf32>
    %427 = arith.addf %426, %425 : vector<2x96xf32>
    %428 = arith.divf %426, %427 : vector<2x96xf32>
    %429 = vector.extract_strided_slice %428 {offsets = [0, 0], sizes = [2, 32], strides = [1, 1]} : vector<2x96xf32> to vector<2x32xf32>
    %430 = vector.extract_strided_slice %428 {offsets = [0, 32], sizes = [2, 32], strides = [1, 1]} : vector<2x96xf32> to vector<2x32xf32>
    %431 = vector.extract_strided_slice %428 {offsets = [0, 64], sizes = [2, 32], strides = [1, 1]} : vector<2x96xf32> to vector<2x32xf32>
    %432 = vector.extract_strided_slice %422 {offsets = [0, 96], sizes = [2, 32], strides = [1, 1]} : vector<2x128xf32> to vector<2x32xf32>
    %433 = math.tanh %432 : vector<2x32xf32>
    %434 = arith.mulf %430, %396 : vector<2x32xf32>
    %435 = arith.mulf %429, %433 : vector<2x32xf32>
    %436 = arith.addf %434, %435 : vector<2x32xf32>
    %437 = math.tanh %436 : vector<2x32xf32>
    %438 = arith.mulf %431, %437 : vector<2x32xf32>
    %cst_74 = arith.constant dense<0.000000e+00> : vector<2x128xf32>
    %439 = tpu.matmul %438, %337, %cst_74 {dimension_numbers = #tpu.dot_dimension_numbers<[1], [0], [0], [1], [0, 0, 1, 1], [], []>} : vector<2x32xf32>, vector<32x128xf32>, vector<2x128xf32> -> vector<2x128xf32>
    %cst_75 = arith.constant dense<0.000000e+00> : vector<2x128xf32>
    %440 = tpu.matmul %418, %338, %cst_75 {dimension_numbers = #tpu.dot_dimension_numbers<[1], [0], [0], [1], [0, 0, 1, 1], [], []>} : vector<2x32xf32>, vector<32x128xf32>, vector<2x128xf32> -> vector<2x128xf32>
    %441 = arith.addf %439, %440 : vector<2x128xf32>
    %442 = arith.addf %441, %8 : vector<2x128xf32>
    %443 = vector.extract_strided_slice %442 {offsets = [0, 0], sizes = [2, 96], strides = [1, 1]} : vector<2x128xf32> to vector<2x96xf32>
    %444 = arith.negf %443 : vector<2x96xf32>
    %445 = math.exp %444 : vector<2x96xf32>
    %cst_76 = arith.constant 1.000000e+00 : f32
    %446 = vector.broadcast %cst_76 : f32 to vector<2x96xf32>
    %447 = arith.addf %446, %445 : vector<2x96xf32>
    %448 = arith.divf %446, %447 : vector<2x96xf32>
    %449 = vector.extract_strided_slice %448 {offsets = [0, 0], sizes = [2, 32], strides = [1, 1]} : vector<2x96xf32> to vector<2x32xf32>
    %450 = vector.extract_strided_slice %448 {offsets = [0, 32], sizes = [2, 32], strides = [1, 1]} : vector<2x96xf32> to vector<2x32xf32>
    %451 = vector.extract_strided_slice %448 {offsets = [0, 64], sizes = [2, 32], strides = [1, 1]} : vector<2x96xf32> to vector<2x32xf32>
    %452 = vector.extract_strided_slice %442 {offsets = [0, 96], sizes = [2, 32], strides = [1, 1]} : vector<2x128xf32> to vector<2x32xf32>
    %453 = math.tanh %452 : vector<2x32xf32>
    %454 = arith.mulf %450, %416 : vector<2x32xf32>
    %455 = arith.mulf %449, %453 : vector<2x32xf32>
    %456 = arith.addf %454, %455 : vector<2x32xf32>
    %457 = math.tanh %456 : vector<2x32xf32>
    %458 = arith.mulf %451, %457 : vector<2x32xf32>
    %cst_77 = arith.constant dense<0.000000e+00> : vector<2x128xf32>
    %459 = tpu.matmul %458, %335, %cst_77 {dimension_numbers = #tpu.dot_dimension_numbers<[1], [0], [0], [1], [0, 0, 1, 1], [], []>} : vector<2x32xf32>, vector<32x128xf32>, vector<2x128xf32> -> vector<2x128xf32>
    %cst_78 = arith.constant dense<0.000000e+00> : vector<2x128xf32>
    %460 = tpu.matmul %438, %336, %cst_78 {dimension_numbers = #tpu.dot_dimension_numbers<[1], [0], [0], [1], [0, 0, 1, 1], [], []>} : vector<2x32xf32>, vector<32x128xf32>, vector<2x128xf32> -> vector<2x128xf32>
    %461 = arith.addf %459, %460 : vector<2x128xf32>
    %462 = arith.addf %461, %5 : vector<2x128xf32>
    %463 = vector.extract_strided_slice %462 {offsets = [0, 0], sizes = [2, 96], strides = [1, 1]} : vector<2x128xf32> to vector<2x96xf32>
    %464 = arith.negf %463 : vector<2x96xf32>
    %465 = math.exp %464 : vector<2x96xf32>
    %cst_79 = arith.constant 1.000000e+00 : f32
    %466 = vector.broadcast %cst_79 : f32 to vector<2x96xf32>
    %467 = arith.addf %466, %465 : vector<2x96xf32>
    %468 = arith.divf %466, %467 : vector<2x96xf32>
    %469 = vector.extract_strided_slice %468 {offsets = [0, 0], sizes = [2, 32], strides = [1, 1]} : vector<2x96xf32> to vector<2x32xf32>
    %470 = vector.extract_strided_slice %468 {offsets = [0, 32], sizes = [2, 32], strides = [1, 1]} : vector<2x96xf32> to vector<2x32xf32>
    %471 = vector.extract_strided_slice %468 {offsets = [0, 64], sizes = [2, 32], strides = [1, 1]} : vector<2x96xf32> to vector<2x32xf32>
    %472 = vector.extract_strided_slice %462 {offsets = [0, 96], sizes = [2, 32], strides = [1, 1]} : vector<2x128xf32> to vector<2x32xf32>
    %473 = math.tanh %472 : vector<2x32xf32>
    %474 = arith.mulf %470, %436 : vector<2x32xf32>
    %475 = arith.mulf %469, %473 : vector<2x32xf32>
    %476 = arith.addf %474, %475 : vector<2x32xf32>
    %477 = math.tanh %476 : vector<2x32xf32>
    %478 = arith.mulf %471, %477 : vector<2x32xf32>
    %cst_80 = arith.constant dense<0.000000e+00> : vector<2x128xf32>
    %479 = tpu.matmul %478, %337, %cst_80 {dimension_numbers = #tpu.dot_dimension_numbers<[1], [0], [0], [1], [0, 0, 1, 1], [], []>} : vector<2x32xf32>, vector<32x128xf32>, vector<2x128xf32> -> vector<2x128xf32>
    %cst_81 = arith.constant dense<0.000000e+00> : vector<2x128xf32>
    %480 = tpu.matmul %458, %338, %cst_81 {dimension_numbers = #tpu.dot_dimension_numbers<[1], [0], [0], [1], [0, 0, 1, 1], [], []>} : vector<2x32xf32>, vector<32x128xf32>, vector<2x128xf32> -> vector<2x128xf32>
    %481 = arith.addf %479, %480 : vector<2x128xf32>
    %482 = arith.addf %481, %8 : vector<2x128xf32>
    %483 = vector.extract_strided_slice %482 {offsets = [0, 0], sizes = [2, 96], strides = [1, 1]} : vector<2x128xf32> to vector<2x96xf32>
    %484 = arith.negf %483 : vector<2x96xf32>
    %485 = math.exp %484 : vector<2x96xf32>
    %cst_82 = arith.constant 1.000000e+00 : f32
    %486 = vector.broadcast %cst_82 : f32 to vector<2x96xf32>
    %487 = arith.addf %486, %485 : vector<2x96xf32>
    %488 = arith.divf %486, %487 : vector<2x96xf32>
    %489 = vector.extract_strided_slice %488 {offsets = [0, 0], sizes = [2, 32], strides = [1, 1]} : vector<2x96xf32> to vector<2x32xf32>
    %490 = vector.extract_strided_slice %488 {offsets = [0, 32], sizes = [2, 32], strides = [1, 1]} : vector<2x96xf32> to vector<2x32xf32>
    %491 = vector.extract_strided_slice %488 {offsets = [0, 64], sizes = [2, 32], strides = [1, 1]} : vector<2x96xf32> to vector<2x32xf32>
    %492 = vector.extract_strided_slice %482 {offsets = [0, 96], sizes = [2, 32], strides = [1, 1]} : vector<2x128xf32> to vector<2x32xf32>
    %493 = math.tanh %492 : vector<2x32xf32>
    %494 = arith.mulf %490, %456 : vector<2x32xf32>
    %495 = arith.mulf %489, %493 : vector<2x32xf32>
    %496 = arith.addf %494, %495 : vector<2x32xf32>
    %497 = math.tanh %496 : vector<2x32xf32>
    %498 = arith.mulf %491, %497 : vector<2x32xf32>
    %cst_83 = arith.constant dense<0.000000e+00> : vector<2x128xf32>
    %499 = tpu.matmul %498, %335, %cst_83 {dimension_numbers = #tpu.dot_dimension_numbers<[1], [0], [0], [1], [0, 0, 1, 1], [], []>} : vector<2x32xf32>, vector<32x128xf32>, vector<2x128xf32> -> vector<2x128xf32>
    %cst_84 = arith.constant dense<0.000000e+00> : vector<2x128xf32>
    %500 = tpu.matmul %478, %336, %cst_84 {dimension_numbers = #tpu.dot_dimension_numbers<[1], [0], [0], [1], [0, 0, 1, 1], [], []>} : vector<2x32xf32>, vector<32x128xf32>, vector<2x128xf32> -> vector<2x128xf32>
    %501 = arith.addf %499, %500 : vector<2x128xf32>
    %502 = arith.addf %501, %5 : vector<2x128xf32>
    %503 = vector.extract_strided_slice %502 {offsets = [0, 0], sizes = [2, 96], strides = [1, 1]} : vector<2x128xf32> to vector<2x96xf32>
    %504 = arith.negf %503 : vector<2x96xf32>
    %505 = math.exp %504 : vector<2x96xf32>
    %cst_85 = arith.constant 1.000000e+00 : f32
    %506 = vector.broadcast %cst_85 : f32 to vector<2x96xf32>
    %507 = arith.addf %506, %505 : vector<2x96xf32>
    %508 = arith.divf %506, %507 : vector<2x96xf32>
    %509 = vector.extract_strided_slice %508 {offsets = [0, 0], sizes = [2, 32], strides = [1, 1]} : vector<2x96xf32> to vector<2x32xf32>
    %510 = vector.extract_strided_slice %508 {offsets = [0, 32], sizes = [2, 32], strides = [1, 1]} : vector<2x96xf32> to vector<2x32xf32>
    %511 = vector.extract_strided_slice %508 {offsets = [0, 64], sizes = [2, 32], strides = [1, 1]} : vector<2x96xf32> to vector<2x32xf32>
    %512 = vector.extract_strided_slice %502 {offsets = [0, 96], sizes = [2, 32], strides = [1, 1]} : vector<2x128xf32> to vector<2x32xf32>
    %513 = math.tanh %512 : vector<2x32xf32>
    %514 = arith.mulf %510, %476 : vector<2x32xf32>
    %515 = arith.mulf %509, %513 : vector<2x32xf32>
    %516 = arith.addf %514, %515 : vector<2x32xf32>
    %517 = math.tanh %516 : vector<2x32xf32>
    %518 = arith.mulf %511, %517 : vector<2x32xf32>
    %cst_86 = arith.constant dense<0.000000e+00> : vector<2x128xf32>
    %519 = tpu.matmul %518, %337, %cst_86 {dimension_numbers = #tpu.dot_dimension_numbers<[1], [0], [0], [1], [0, 0, 1, 1], [], []>} : vector<2x32xf32>, vector<32x128xf32>, vector<2x128xf32> -> vector<2x128xf32>
    %cst_87 = arith.constant dense<0.000000e+00> : vector<2x128xf32>
    %520 = tpu.matmul %498, %338, %cst_87 {dimension_numbers = #tpu.dot_dimension_numbers<[1], [0], [0], [1], [0, 0, 1, 1], [], []>} : vector<2x32xf32>, vector<32x128xf32>, vector<2x128xf32> -> vector<2x128xf32>
    %521 = arith.addf %519, %520 : vector<2x128xf32>
    %522 = arith.addf %521, %8 : vector<2x128xf32>
    %523 = vector.extract_strided_slice %522 {offsets = [0, 0], sizes = [2, 96], strides = [1, 1]} : vector<2x128xf32> to vector<2x96xf32>
    %524 = arith.negf %523 : vector<2x96xf32>
    %525 = math.exp %524 : vector<2x96xf32>
    %cst_88 = arith.constant 1.000000e+00 : f32
    %526 = vector.broadcast %cst_88 : f32 to vector<2x96xf32>
    %527 = arith.addf %526, %525 : vector<2x96xf32>
    %528 = arith.divf %526, %527 : vector<2x96xf32>
    %529 = vector.extract_strided_slice %528 {offsets = [0, 0], sizes = [2, 32], strides = [1, 1]} : vector<2x96xf32> to vector<2x32xf32>
    %530 = vector.extract_strided_slice %528 {offsets = [0, 32], sizes = [2, 32], strides = [1, 1]} : vector<2x96xf32> to vector<2x32xf32>
    %531 = vector.extract_strided_slice %528 {offsets = [0, 64], sizes = [2, 32], strides = [1, 1]} : vector<2x96xf32> to vector<2x32xf32>
    %532 = vector.extract_strided_slice %522 {offsets = [0, 96], sizes = [2, 32], strides = [1, 1]} : vector<2x128xf32> to vector<2x32xf32>
    %533 = math.tanh %532 : vector<2x32xf32>
    %534 = arith.mulf %530, %496 : vector<2x32xf32>
    %535 = arith.mulf %529, %533 : vector<2x32xf32>
    %536 = arith.addf %534, %535 : vector<2x32xf32>
    %537 = math.tanh %536 : vector<2x32xf32>
    %538 = arith.mulf %531, %537 : vector<2x32xf32>
    %cst_89 = arith.constant dense<0.000000e+00> : vector<2x128xf32>
    %539 = tpu.matmul %538, %335, %cst_89 {dimension_numbers = #tpu.dot_dimension_numbers<[1], [0], [0], [1], [0, 0, 1, 1], [], []>} : vector<2x32xf32>, vector<32x128xf32>, vector<2x128xf32> -> vector<2x128xf32>
    %cst_90 = arith.constant dense<0.000000e+00> : vector<2x128xf32>
    %540 = tpu.matmul %518, %336, %cst_90 {dimension_numbers = #tpu.dot_dimension_numbers<[1], [0], [0], [1], [0, 0, 1, 1], [], []>} : vector<2x32xf32>, vector<32x128xf32>, vector<2x128xf32> -> vector<2x128xf32>
    %541 = arith.addf %539, %540 : vector<2x128xf32>
    %542 = arith.addf %541, %5 : vector<2x128xf32>
    %543 = vector.extract_strided_slice %542 {offsets = [0, 0], sizes = [2, 96], strides = [1, 1]} : vector<2x128xf32> to vector<2x96xf32>
    %544 = arith.negf %543 : vector<2x96xf32>
    %545 = math.exp %544 : vector<2x96xf32>
    %cst_91 = arith.constant 1.000000e+00 : f32
    %546 = vector.broadcast %cst_91 : f32 to vector<2x96xf32>
    %547 = arith.addf %546, %545 : vector<2x96xf32>
    %548 = arith.divf %546, %547 : vector<2x96xf32>
    %549 = vector.extract_strided_slice %548 {offsets = [0, 0], sizes = [2, 32], strides = [1, 1]} : vector<2x96xf32> to vector<2x32xf32>
    %550 = vector.extract_strided_slice %548 {offsets = [0, 32], sizes = [2, 32], strides = [1, 1]} : vector<2x96xf32> to vector<2x32xf32>
    %551 = vector.extract_strided_slice %548 {offsets = [0, 64], sizes = [2, 32], strides = [1, 1]} : vector<2x96xf32> to vector<2x32xf32>
    %552 = vector.extract_strided_slice %542 {offsets = [0, 96], sizes = [2, 32], strides = [1, 1]} : vector<2x128xf32> to vector<2x32xf32>
    %553 = math.tanh %552 : vector<2x32xf32>
    %554 = arith.mulf %550, %516 : vector<2x32xf32>
    %555 = arith.mulf %549, %553 : vector<2x32xf32>
    %556 = arith.addf %554, %555 : vector<2x32xf32>
    %557 = math.tanh %556 : vector<2x32xf32>
    %558 = arith.mulf %551, %557 : vector<2x32xf32>
    %cst_92 = arith.constant dense<0.000000e+00> : vector<2x128xf32>
    %559 = tpu.matmul %558, %337, %cst_92 {dimension_numbers = #tpu.dot_dimension_numbers<[1], [0], [0], [1], [0, 0, 1, 1], [], []>} : vector<2x32xf32>, vector<32x128xf32>, vector<2x128xf32> -> vector<2x128xf32>
    %cst_93 = arith.constant dense<0.000000e+00> : vector<2x128xf32>
    %560 = tpu.matmul %538, %338, %cst_93 {dimension_numbers = #tpu.dot_dimension_numbers<[1], [0], [0], [1], [0, 0, 1, 1], [], []>} : vector<2x32xf32>, vector<32x128xf32>, vector<2x128xf32> -> vector<2x128xf32>
    %561 = arith.addf %559, %560 : vector<2x128xf32>
    %562 = arith.addf %561, %8 : vector<2x128xf32>
    %563 = vector.extract_strided_slice %562 {offsets = [0, 0], sizes = [2, 96], strides = [1, 1]} : vector<2x128xf32> to vector<2x96xf32>
    %564 = arith.negf %563 : vector<2x96xf32>
    %565 = math.exp %564 : vector<2x96xf32>
    %cst_94 = arith.constant 1.000000e+00 : f32
    %566 = vector.broadcast %cst_94 : f32 to vector<2x96xf32>
    %567 = arith.addf %566, %565 : vector<2x96xf32>
    %568 = arith.divf %566, %567 : vector<2x96xf32>
    %569 = vector.extract_strided_slice %568 {offsets = [0, 0], sizes = [2, 32], strides = [1, 1]} : vector<2x96xf32> to vector<2x32xf32>
    %570 = vector.extract_strided_slice %568 {offsets = [0, 32], sizes = [2, 32], strides = [1, 1]} : vector<2x96xf32> to vector<2x32xf32>
    %571 = vector.extract_strided_slice %568 {offsets = [0, 64], sizes = [2, 32], strides = [1, 1]} : vector<2x96xf32> to vector<2x32xf32>
    %572 = vector.extract_strided_slice %562 {offsets = [0, 96], sizes = [2, 32], strides = [1, 1]} : vector<2x128xf32> to vector<2x32xf32>
    %573 = math.tanh %572 : vector<2x32xf32>
    %574 = arith.mulf %570, %536 : vector<2x32xf32>
    %575 = arith.mulf %569, %573 : vector<2x32xf32>
    %576 = arith.addf %574, %575 : vector<2x32xf32>
    %577 = math.tanh %576 : vector<2x32xf32>
    %578 = arith.mulf %571, %577 : vector<2x32xf32>
    %cst_95 = arith.constant dense<0.000000e+00> : vector<2x128xf32>
    %579 = tpu.matmul %578, %335, %cst_95 {dimension_numbers = #tpu.dot_dimension_numbers<[1], [0], [0], [1], [0, 0, 1, 1], [], []>} : vector<2x32xf32>, vector<32x128xf32>, vector<2x128xf32> -> vector<2x128xf32>
    %cst_96 = arith.constant dense<0.000000e+00> : vector<2x128xf32>
    %580 = tpu.matmul %558, %336, %cst_96 {dimension_numbers = #tpu.dot_dimension_numbers<[1], [0], [0], [1], [0, 0, 1, 1], [], []>} : vector<2x32xf32>, vector<32x128xf32>, vector<2x128xf32> -> vector<2x128xf32>
    %581 = arith.addf %579, %580 : vector<2x128xf32>
    %582 = arith.addf %581, %5 : vector<2x128xf32>
    %583 = vector.extract_strided_slice %582 {offsets = [0, 0], sizes = [2, 96], strides = [1, 1]} : vector<2x128xf32> to vector<2x96xf32>
    %584 = arith.negf %583 : vector<2x96xf32>
    %585 = math.exp %584 : vector<2x96xf32>
    %cst_97 = arith.constant 1.000000e+00 : f32
    %586 = vector.broadcast %cst_97 : f32 to vector<2x96xf32>
    %587 = arith.addf %586, %585 : vector<2x96xf32>
    %588 = arith.divf %586, %587 : vector<2x96xf32>
    %589 = vector.extract_strided_slice %588 {offsets = [0, 0], sizes = [2, 32], strides = [1, 1]} : vector<2x96xf32> to vector<2x32xf32>
    %590 = vector.extract_strided_slice %588 {offsets = [0, 32], sizes = [2, 32], strides = [1, 1]} : vector<2x96xf32> to vector<2x32xf32>
    %591 = vector.extract_strided_slice %588 {offsets = [0, 64], sizes = [2, 32], strides = [1, 1]} : vector<2x96xf32> to vector<2x32xf32>
    %592 = vector.extract_strided_slice %582 {offsets = [0, 96], sizes = [2, 32], strides = [1, 1]} : vector<2x128xf32> to vector<2x32xf32>
    %593 = math.tanh %592 : vector<2x32xf32>
    %594 = arith.mulf %590, %556 : vector<2x32xf32>
    %595 = arith.mulf %589, %593 : vector<2x32xf32>
    %596 = arith.addf %594, %595 : vector<2x32xf32>
    %597 = math.tanh %596 : vector<2x32xf32>
    %598 = arith.mulf %591, %597 : vector<2x32xf32>
    %cst_98 = arith.constant dense<0.000000e+00> : vector<2x128xf32>
    %599 = tpu.matmul %598, %337, %cst_98 {dimension_numbers = #tpu.dot_dimension_numbers<[1], [0], [0], [1], [0, 0, 1, 1], [], []>} : vector<2x32xf32>, vector<32x128xf32>, vector<2x128xf32> -> vector<2x128xf32>
    %cst_99 = arith.constant dense<0.000000e+00> : vector<2x128xf32>
    %600 = tpu.matmul %578, %338, %cst_99 {dimension_numbers = #tpu.dot_dimension_numbers<[1], [0], [0], [1], [0, 0, 1, 1], [], []>} : vector<2x32xf32>, vector<32x128xf32>, vector<2x128xf32> -> vector<2x128xf32>
    %601 = arith.addf %599, %600 : vector<2x128xf32>
    %602 = arith.addf %601, %8 : vector<2x128xf32>
    %603 = vector.extract_strided_slice %602 {offsets = [0, 0], sizes = [2, 96], strides = [1, 1]} : vector<2x128xf32> to vector<2x96xf32>
    %604 = arith.negf %603 : vector<2x96xf32>
    %605 = math.exp %604 : vector<2x96xf32>
    %cst_100 = arith.constant 1.000000e+00 : f32
    %606 = vector.broadcast %cst_100 : f32 to vector<2x96xf32>
    %607 = arith.addf %606, %605 : vector<2x96xf32>
    %608 = arith.divf %606, %607 : vector<2x96xf32>
    %609 = vector.extract_strided_slice %608 {offsets = [0, 0], sizes = [2, 32], strides = [1, 1]} : vector<2x96xf32> to vector<2x32xf32>
    %610 = vector.extract_strided_slice %608 {offsets = [0, 32], sizes = [2, 32], strides = [1, 1]} : vector<2x96xf32> to vector<2x32xf32>
    %611 = vector.extract_strided_slice %608 {offsets = [0, 64], sizes = [2, 32], strides = [1, 1]} : vector<2x96xf32> to vector<2x32xf32>
    %612 = vector.extract_strided_slice %602 {offsets = [0, 96], sizes = [2, 32], strides = [1, 1]} : vector<2x128xf32> to vector<2x32xf32>
    %613 = math.tanh %612 : vector<2x32xf32>
    %614 = arith.mulf %610, %576 : vector<2x32xf32>
    %615 = arith.mulf %609, %613 : vector<2x32xf32>
    %616 = arith.addf %614, %615 : vector<2x32xf32>
    %617 = math.tanh %616 : vector<2x32xf32>
    %618 = arith.mulf %611, %617 : vector<2x32xf32>
    %cst_101 = arith.constant dense<0.000000e+00> : vector<2x128xf32>
    %619 = tpu.matmul %618, %335, %cst_101 {dimension_numbers = #tpu.dot_dimension_numbers<[1], [0], [0], [1], [0, 0, 1, 1], [], []>} : vector<2x32xf32>, vector<32x128xf32>, vector<2x128xf32> -> vector<2x128xf32>
    %cst_102 = arith.constant dense<0.000000e+00> : vector<2x128xf32>
    %620 = tpu.matmul %598, %336, %cst_102 {dimension_numbers = #tpu.dot_dimension_numbers<[1], [0], [0], [1], [0, 0, 1, 1], [], []>} : vector<2x32xf32>, vector<32x128xf32>, vector<2x128xf32> -> vector<2x128xf32>
    %621 = arith.addf %619, %620 : vector<2x128xf32>
    %622 = arith.addf %621, %5 : vector<2x128xf32>
    %623 = vector.extract_strided_slice %622 {offsets = [0, 0], sizes = [2, 96], strides = [1, 1]} : vector<2x128xf32> to vector<2x96xf32>
    %624 = arith.negf %623 : vector<2x96xf32>
    %625 = math.exp %624 : vector<2x96xf32>
    %cst_103 = arith.constant 1.000000e+00 : f32
    %626 = vector.broadcast %cst_103 : f32 to vector<2x96xf32>
    %627 = arith.addf %626, %625 : vector<2x96xf32>
    %628 = arith.divf %626, %627 : vector<2x96xf32>
    %629 = vector.extract_strided_slice %628 {offsets = [0, 0], sizes = [2, 32], strides = [1, 1]} : vector<2x96xf32> to vector<2x32xf32>
    %630 = vector.extract_strided_slice %628 {offsets = [0, 32], sizes = [2, 32], strides = [1, 1]} : vector<2x96xf32> to vector<2x32xf32>
    %631 = vector.extract_strided_slice %628 {offsets = [0, 64], sizes = [2, 32], strides = [1, 1]} : vector<2x96xf32> to vector<2x32xf32>
    %632 = vector.extract_strided_slice %622 {offsets = [0, 96], sizes = [2, 32], strides = [1, 1]} : vector<2x128xf32> to vector<2x32xf32>
    %633 = math.tanh %632 : vector<2x32xf32>
    %634 = arith.mulf %630, %596 : vector<2x32xf32>
    %635 = arith.mulf %629, %633 : vector<2x32xf32>
    %636 = arith.addf %634, %635 : vector<2x32xf32>
    %637 = math.tanh %636 : vector<2x32xf32>
    %638 = arith.mulf %631, %637 : vector<2x32xf32>
    %cst_104 = arith.constant dense<0.000000e+00> : vector<2x128xf32>
    %639 = tpu.matmul %638, %337, %cst_104 {dimension_numbers = #tpu.dot_dimension_numbers<[1], [0], [0], [1], [0, 0, 1, 1], [], []>} : vector<2x32xf32>, vector<32x128xf32>, vector<2x128xf32> -> vector<2x128xf32>
    %cst_105 = arith.constant dense<0.000000e+00> : vector<2x128xf32>
    %640 = tpu.matmul %618, %338, %cst_105 {dimension_numbers = #tpu.dot_dimension_numbers<[1], [0], [0], [1], [0, 0, 1, 1], [], []>} : vector<2x32xf32>, vector<32x128xf32>, vector<2x128xf32> -> vector<2x128xf32>
    %641 = arith.addf %639, %640 : vector<2x128xf32>
    %642 = arith.addf %641, %8 : vector<2x128xf32>
    %643 = vector.extract_strided_slice %642 {offsets = [0, 0], sizes = [2, 96], strides = [1, 1]} : vector<2x128xf32> to vector<2x96xf32>
    %644 = arith.negf %643 : vector<2x96xf32>
    %645 = math.exp %644 : vector<2x96xf32>
    %cst_106 = arith.constant 1.000000e+00 : f32
    %646 = vector.broadcast %cst_106 : f32 to vector<2x96xf32>
    %647 = arith.addf %646, %645 : vector<2x96xf32>
    %648 = arith.divf %646, %647 : vector<2x96xf32>
    %649 = vector.extract_strided_slice %648 {offsets = [0, 0], sizes = [2, 32], strides = [1, 1]} : vector<2x96xf32> to vector<2x32xf32>
    %650 = vector.extract_strided_slice %648 {offsets = [0, 32], sizes = [2, 32], strides = [1, 1]} : vector<2x96xf32> to vector<2x32xf32>
    %651 = vector.extract_strided_slice %648 {offsets = [0, 64], sizes = [2, 32], strides = [1, 1]} : vector<2x96xf32> to vector<2x32xf32>
    %652 = vector.extract_strided_slice %642 {offsets = [0, 96], sizes = [2, 32], strides = [1, 1]} : vector<2x128xf32> to vector<2x32xf32>
    %653 = math.tanh %652 : vector<2x32xf32>
    %654 = arith.mulf %650, %616 : vector<2x32xf32>
    %655 = arith.mulf %649, %653 : vector<2x32xf32>
    %656 = arith.addf %654, %655 : vector<2x32xf32>
    %657 = math.tanh %656 : vector<2x32xf32>
    %658 = arith.mulf %651, %657 : vector<2x32xf32>
    %659 = tpu.concatenate %658, %618, %578, %538, %498, %458, %418, %378 in 0 : vector<2x32xf32>, vector<2x32xf32>, vector<2x32xf32>, vector<2x32xf32>, vector<2x32xf32>, vector<2x32xf32>, vector<2x32xf32>, vector<2x32xf32> -> vector<16x32xf32>
    %c0_107 = arith.constant 0 : index
    %c0_108 = arith.constant 0 : index
    %660 = vector.load %arg4[%c0_107, %c0_108] : memref<40x4xf32, #tpu.memory_space<vmem>>, vector<32x4xf32>
    %c32 = arith.constant 32 : index
    %c0_109 = arith.constant 0 : index
    %661 = vector.load %arg4[%c32, %c0_109] : memref<40x4xf32, #tpu.memory_space<vmem>>, vector<1x4xf32>
    %662 = vector.shape_cast %661 : vector<1x4xf32> to vector<1x4xf32>
    %663 = vector.broadcast %662 : vector<1x4xf32> to vector<16x4xf32>
    %cst_110 = arith.constant dense<0.000000e+00> : vector<16x4xf32>
    %664 = tpu.matmul %659, %660, %cst_110 {dimension_numbers = #tpu.dot_dimension_numbers<[1], [0], [0], [1], [0, 0, 1, 1], [], []>} : vector<16x32xf32>, vector<32x4xf32>, vector<16x4xf32> -> vector<16x4xf32>
    %665 = arith.addf %664, %663 : vector<16x4xf32>
    %c0_111 = arith.constant 0 : index
    %c0_112 = arith.constant 0 : index
    %666 = vector.load %arg5[%c0_111, %c0_112] : memref<16x4xf32, #tpu.memory_space<vmem>>, vector<16x4xf32>
    tpu.vector_store %arg5[%c0_111, %c0_112], %665 {strides = array<i32>} : memref<16x4xf32, #tpu.memory_space<vmem>>, vector<16x4xf32>,
    return
  }
  func.func @transform_0(%arg0: i32) -> (i32, i32) {
    %c0_i32 = arith.constant 0 : i32
    %c0_i32_0 = arith.constant 0 : i32
    return %arg0, %c0_i32 : i32, i32
  }
  func.func @transform_1(%arg0: i32) -> (i32, i32) {
    %c0_i32 = arith.constant 0 : i32
    %c0_i32_0 = arith.constant 0 : i32
    %c0_i32_1 = arith.constant 0 : i32
    return %c0_i32, %c0_i32_0 : i32, i32
  }
  func.func @transform_2(%arg0: i32) -> (i32, i32) {
    %c0_i32 = arith.constant 0 : i32
    %c0_i32_0 = arith.constant 0 : i32
    %c0_i32_1 = arith.constant 0 : i32
    return %c0_i32, %c0_i32_0 : i32, i32
  }
  func.func @transform_3(%arg0: i32) -> (i32, i32) {
    %c0_i32 = arith.constant 0 : i32
    %c0_i32_0 = arith.constant 0 : i32
    %c0_i32_1 = arith.constant 0 : i32
    return %c0_i32, %c0_i32_0 : i32, i32
  }
  func.func @transform_4(%arg0: i32) -> (i32, i32) {
    %c0_i32 = arith.constant 0 : i32
    %c0_i32_0 = arith.constant 0 : i32
    return %arg0, %c0_i32 : i32, i32
  }
}

</mosaic_0001>

<bundles_post_ra>
// kernel: encdec_ad_forward.1
= control target key start
LH: loop header
LB: loop body
LE: loop exit
PB: predicated region body
PF: predicated region fallthrough
CT: control target
= control target key end

     0   :  { %vm51_vm0 = vcmask 1043456   ;;  %vm44_vm1 = vcmask 31744   ;;  %v6496_v0 = vmov 0.0   ;;  %vm6497_vm2 = vmmov 0   ;;  %s6498_s30 = smov 32   ;;  %s6499_s5 = smov 64   ;;  %s7742_s1 = inlined_call_operand.vmem [shape: f32[232,128], index: 1, kind: input, shape index: {}]   ;;  %s7743_s0 = inlined_call_operand.vmem [shape: f32[16,4], index: 0, kind: input, shape index: {}]   ;;  %s7744_s2 = inlined_call_operand.vmem [shape: f32[4,128], index: 2, kind: input, shape index: {}]   ;;  %s7745_s3 = inlined_call_operand.vmem [shape: f32[40,4], index: 3, kind: input, shape index: {}]   ;;  %s7746_s4 = inlined_call_operand.vmem [shape: f32[16,4], index: 4, kind: output, shape index: {}]  }
   0x1   :  { %5591 = vmatprep.subr.mxu1 %v6496_v0  ;;  %v32_v1 = vld [vmem:[%s7742_s1] sm:$0xf]  ;;  %5599 = vmatprep.mubr.msk.f32.mxu1 %vm6497_vm2, %v6496_v0  ;;  %v38_v4 = vld [vmem:[%s7743_s0 + $0x8] sm:$0xff]  ;;  %v6547_v5 = vld [vmem:[%s7742_s1 + $0x18] sm:$0xff]  ;;  %vm130_vm3 = vcmask 261120   ;;  %vm5093_vm4 = vcmask 1041408  }
   0x2   :  { %v6532_v2 = vld [vmem:[%s7742_s1 + $0x20] sm:$0xff]  ;;  %5586 = vmatprep.subr.msk.mxu0 %vm51_vm0, %v32_v1  ;;  %v6556_v6 = vld [vmem:[%s7742_s1 + $0x10] sm:$0xff]  ;;  %v6564_v7 = vld [vmem:[%s7742_s1 + $0x8] sm:$0xff]  ;;  %vm5096_vm5 = vcmask 1045504  }
   0x3   :  { %v37_v3 = vld [vmem:[%s7743_s0] sm:$0xff]  ;;  %5592 = vmatpush3.msra.mxu1 %v6532_v2  ;;  %5587 = vmatpush3.msk.msra.mxu0 %vm51_vm0, %v32_v1 }
   0x4   :  { %5588 = vmatprep.mubr.msk.f32.mxu0 %vm44_vm1, %v37_v3  ;;  %5593 = vmatprep.subr.mxu1 %v6496_v0  ;;  %v5204_v8 = vld [vmem:[%s7744_s2] ss:$0 sm:$0xff] }
   0x5   :  { %5589 = vmatmul.mubr.msk.f32.vlgmr.msra.gmra.mxu0 %vm44_vm1, %v38_v4  ;;  %5594 = vmatpush3.msra.mxu1 %v6547_v5 }
   0x6   :  { %5602 = vmatprep.subr.mxu0 %v6496_v0  ;;  %5595 = vmatprep.subr.mxu1 %v6496_v0 }
   0x7   :  { %5603 = vmatpush3.msra.mxu0 %v6532_v2  ;;  %5596 = vmatpush3.msra.mxu1 %v6556_v6 }
   0x8   :  { %5604 = vmatprep.subr.mxu0 %v6496_v0  ;;  %5597 = vmatprep.subr.mxu1 %v6496_v0 }
   0x9   :  { %5605 = vmatpush3.msra.mxu0 %v6547_v5  ;;  %5598 = vmatpush3.msra.mxu1 %v6564_v7 }
   0xa   :  { %5606 = vmatprep.subr.mxu0 %v6496_v0  ;;  %5600 = vmatmul.mubr.f32.vlgmr.msra.gmra.mxu1 %v6496_v0 }
   0xb   :  { %5607 = vmatpush3.msra.mxu0 %v6556_v6  ;;  %5610 = vmatprep.mubr.msk.f32.mxu0 %vm6497_vm2, %v6496_v0 }
   0xc   :  { %5608 = vmatprep.subr.mxu0 %v6496_v0  ;;  %5613 = vmatprep.subr.mxu1 %v6496_v0 }
   0xd   :  { %5609 = vmatpush3.msra.mxu0 %v6564_v7  ;;  %5614 = vmatpush3.msra.mxu1 %v6532_v2 }
   0xe   :  { %5621 = vmatprep.mubr.msk.f32.mxu1 %vm6497_vm2, %v6496_v0  ;;  %5615 = vmatprep.subr.mxu1 %v6496_v0 }
   0xf   :  { %5624 = vmatprep.subr.mxu0 %v6496_v0  ;;  %5616 = vmatpush3.msra.mxu1 %v6547_v5 }
  0x10   :  { %5617 = vmatprep.subr.mxu1 %v6496_v0 }
  0x11   :  { %5618 = vmatpush3.msra.mxu1 %v6556_v6 }
  0x12   :  { %5619 = vmatprep.subr.mxu1 %v6496_v0 }
  0x13   :  { %5620 = vmatpush3.msra.mxu1 %v6564_v7 }
  0x14   :  { %5635 = vmatprep.subr.mxu1 %v6496_v0 }
  0xc5   :  { %v5590_v9 = vpop.f32.mrf.mxu0 }
  0xc6   :  { %v6594_v10 = vadd.f32 %v5590_v9, %v5204_v8 }
  0xc7   :  { %v121_v11 = vpop.f32.mrf.mxu0 }
  0xc8   :  { %v6596_v12 = vadd.f32 %v5204_v8, %v121_v11 }
  0xca   :  { %v200_v13 = vpop.f32.mrf.mxu1 }
  0xcb   :  { %v204_v14 = vadd.f32 %v200_v13, %v6596_v12 }
  0xcc   :  { %v5601_v15 = vpop.f32.mrf.mxu1 }
  0xcd   :  { %6222 = vtanh.f32 %v204_v14  ;;  %v5208_v17 = vmul.f32 -1.442695, %v204_v14 }
  0xcf   :  { %6224 = vpow2.f32 %v5208_v17 }
  0xda   :  { %v6223_v16 = vpop.eup %6222 }
  0xdb   :  { %214 = vrot.lane.b32.xlu0 %v6223_v16, %s6498_s30 }
  0xdc   :  { %v6225_v18 = vpop.eup %6224 }
  0xdd   :  { %v208_v19 = vadd.f32 1.0, %v6225_v18 }
  0xdf   :  { %6226 = vrcp.f32 %v208_v19 }
  0xec   :  { %v6227_v20 = vpop.eup %6226 }
  0xed   :  { %v212_v23 = vmul.f32 0.0, %v6227_v20 }
 0x14d   :  { %v215_v21 = vpop.permute.xlu0 %214 }
 0x14e   :  { %v217_v22 = vmul.f32 %v6227_v20, %v215_v21 }
 0x150   :  { %219 = vrot.lane.b32.xlu0 %v217_v22, %s6498_s30 }
 0x1c2   :  { %v220_v24 = vpop.permute.xlu0 %219 }
 0x1c3   :  { %v222_v25 = vadd.f32 %v220_v24, %v212_v23 }
 0x1c5   :  { %6228 = vtanh.f32 %v222_v25  ;;  %v316_v41 = vrot.slane %v222_v25, 6 }
 0x1d2   :  { %v6229_v26 = vpop.eup %6228 }
 0x1d3   :  { %225 = vrot.lane.b32.xlu1 %v6229_v26, %s6498_s30 }
 0x245   :  { %v226_v27 = vpop.permute.xlu1 %225 }
 0x246   :  { %v228_v28 = vmul.f32 %v6227_v20, %v226_v27 }
 0x248   :  { %230 = vrot.lane.b32.xlu1 %v228_v28, %s6499_s5 }
 0x2ba   :  { %v6603_v29 = vpop.permute.xlu1 %230 }
 0x2bb   :  { %5611 = vmatmul.mubr.msk.f32.vlgmr.msra.gmra.mxu0 %vm130_vm3, %v6603_v29 }
 0x2bc   :  { %5625 = vmatpush3.msra.mxu0 %v6532_v2  ;;  %5632 = vmatprep.mubr.msk.f32.mxu0 %vm6497_vm2, %v6496_v0 }
 0x2bd   :  { %5626 = vmatprep.subr.mxu0 %v6496_v0 }
 0x2be   :  { %5627 = vmatpush3.msra.mxu0 %v6547_v5 }
 0x2bf   :  { %5628 = vmatprep.subr.mxu0 %v6496_v0 }
 0x2c0   :  { %5629 = vmatpush3.msra.mxu0 %v6556_v6 }
 0x2c1   :  { %5630 = vmatprep.subr.mxu0 %v6496_v0 }
 0x2c2   :  { %5631 = vmatpush3.msra.mxu0 %v6564_v7 }
 0x2c3   :  { %5646 = vmatprep.subr.mxu0 %v6496_v0 }
 0x37b   :  { %v300_v30 = vpop.f32.mrf.mxu0 }
 0x37c   :  { %v305_v31 = vrot.slane %v300_v30, 6 }
 0x37d   :  { %v5612_v32 = vpop.f32.mrf.mxu0 }
 0x37e   :  { %v307_v33 = vadd.f32 %v305_v31, %v6596_v12 }
 0x380   :  { %6230 = vtanh.f32 %v307_v33  ;;  %v5210_v35 = vmul.f32 -1.442695, %v307_v33 }
 0x382   :  { %6232 = vpow2.f32 %v5210_v35 }
 0x38d   :  { %v6231_v34 = vpop.eup %6230 }
 0x38e   :  { %320 = vrot.lane.b32.xlu0 %v6231_v34, %s6498_s30 }
 0x38f   :  { %v6233_v36 = vpop.eup %6232 }
 0x390   :  { %v311_v37 = vadd.f32 1.0, %v6233_v36 }
 0x392   :  { %6234 = vrcp.f32 %v311_v37 }
 0x39f   :  { %v6235_v38 = vpop.eup %6234 }
 0x3a0   :  { %v318_v42 = vmul.f32 %v6235_v38, %v316_v41 }
 0x400   :  { %v321_v39 = vpop.permute.xlu0 %320 }
 0x401   :  { %v323_v40 = vmul.f32 %v6235_v38, %v321_v39 }
 0x403   :  { %325 = vrot.lane.b32.xlu1 %v323_v40, %s6498_s30 }
 0x475   :  { %v326_v43 = vpop.permute.xlu1 %325 }
 0x476   :  { %v328_v44 = vadd.f32 %v326_v43, %v318_v42 }
 0x478   :  { %6236 = vtanh.f32 %v328_v44  ;;  %v423_v61 = vrot.slane %v328_v44, 6 }
 0x485   :  { %v6237_v45 = vpop.eup %6236 }
 0x486   :  { %331 = vrot.lane.b32.xlu0 %v6237_v45, %s6498_s30 }
 0x4f8   :  { %v332_v46 = vpop.permute.xlu0 %331 }
 0x4f9   :  { %v334_v47 = vmul.f32 %v6235_v38, %v332_v46 }
 0x4fb   :  { %v336_v48 = vrot.slane %v334_v47, 2 }
 0x4fd   :  { %337 = vrot.lane.b32.xlu1 %v336_v48, %s6499_s5 }
 0x56f   :  { %v6622_v49 = vpop.permute.xlu1 %337 }
 0x570   :  { %5622 = vmatmul.mubr.msk.f32.vlgmr.msra.gmra.mxu1 %vm130_vm3, %v6622_v49 }
 0x571   :  { %5636 = vmatpush3.msra.mxu1 %v6532_v2  ;;  %5643 = vmatprep.mubr.msk.f32.mxu1 %vm6497_vm2, %v6496_v0 }
 0x572   :  { %5637 = vmatprep.subr.mxu1 %v6496_v0 }
 0x573   :  { %5638 = vmatpush3.msra.mxu1 %v6547_v5 }
 0x574   :  { %5639 = vmatprep.subr.mxu1 %v6496_v0 }
 0x575   :  { %5640 = vmatpush3.msra.mxu1 %v6556_v6 }
 0x576   :  { %5641 = vmatprep.subr.mxu1 %v6496_v0 }
 0x577   :  { %5642 = vmatpush3.msra.mxu1 %v6564_v7 }
 0x578   :  { %5657 = vmatprep.subr.mxu1 %v6496_v0 }
 0x630   :  { %v407_v50 = vpop.f32.mrf.mxu1 }
 0x631   :  { %v412_v51 = vrot.slane %v407_v50, 4 }
 0x632   :  { %v5623_v52 = vpop.f32.mrf.mxu1 }
 0x633   :  { %v414_v53 = vadd.f32 %v412_v51, %v6596_v12 }
 0x635   :  { %6238 = vtanh.f32 %v414_v53  ;;  %v5212_v55 = vmul.f32 -1.442695, %v414_v53 }
 0x637   :  { %6240 = vpow2.f32 %v5212_v55 }
 0x642   :  { %v6239_v54 = vpop.eup %6238 }
 0x643   :  { %427 = vrot.lane.b32.xlu0 %v6239_v54, %s6498_s30 }
 0x644   :  { %v6241_v56 = vpop.eup %6240 }
 0x645   :  { %v418_v57 = vadd.f32 1.0, %v6241_v56 }
 0x647   :  { %6242 = vrcp.f32 %v418_v57 }
 0x654   :  { %v6243_v58 = vpop.eup %6242 }
 0x655   :  { %v425_v62 = vmul.f32 %v6243_v58, %v423_v61 }
 0x6b5   :  { %v428_v59 = vpop.permute.xlu0 %427 }
 0x6b6   :  { %v430_v60 = vmul.f32 %v6243_v58, %v428_v59 }
 0x6b8   :  { %432 = vrot.lane.b32.xlu1 %v430_v60, %s6498_s30 }
 0x72a   :  { %v433_v63 = vpop.permute.xlu1 %432 }
 0x72b   :  { %v435_v1 = vadd.f32 %v433_v63, %v425_v62 }
 0x72d   :  { %6244 = vtanh.f32 %v435_v1  ;;  %v530_v24 = vrot.slane %v435_v1, 6 }
 0x73a   :  { %v6245_v3 = vpop.eup %6244 }
 0x73b   :  { %438 = vrot.lane.b32.xlu0 %v6245_v3, %s6498_s30 }
 0x7ad   :  { %v439_v4 = vpop.permute.xlu0 %438 }
 0x7ae   :  { %v441_v8 = vmul.f32 %v6243_v58, %v439_v4 }
 0x7b0   :  { %v443_v9 = vrot.slane %v441_v8, 4 }
 0x7b2   :  { %444 = vrot.lane.b32.xlu1 %v443_v9, %s6499_s5 }
 0x824   :  { %v6641_v11 = vpop.permute.xlu1 %444 }
 0x825   :  { %5633 = vmatmul.mubr.msk.f32.vlgmr.msra.gmra.mxu0 %vm130_vm3, %v6641_v11 }
 0x826   :  { %5647 = vmatpush3.msra.mxu0 %v6532_v2  ;;  %5654 = vmatprep.mubr.msk.f32.mxu0 %vm6497_vm2, %v6496_v0 }
 0x827   :  { %5648 = vmatprep.subr.mxu0 %v6496_v0 }
 0x828   :  { %5649 = vmatpush3.msra.mxu0 %v6547_v5 }
 0x829   :  { %5650 = vmatprep.subr.mxu0 %v6496_v0 }
 0x82a   :  { %5651 = vmatpush3.msra.mxu0 %v6556_v6 }
 0x82b   :  { %5652 = vmatprep.subr.mxu0 %v6496_v0 }
 0x82c   :  { %5653 = vmatpush3.msra.mxu0 %v6564_v7 }
 0x82d   :  { %5668 = vmatprep.subr.mxu0 %v6496_v0 }
 0x8e5   :  { %v514_v13 = vpop.f32.mrf.mxu0 }
 0x8e6   :  { %v519_v14 = vrot.slane %v514_v13, 2 }
 0x8e7   :  { %v5634_v15 = vpop.f32.mrf.mxu0 }
 0x8e8   :  { %v521_v16 = vadd.f32 %v519_v14, %v6596_v12 }
 0x8ea   :  { %6246 = vtanh.f32 %v521_v16  ;;  %v5214_v18 = vmul.f32 -1.442695, %v521_v16 }
 0x8ec   :  { %6248 = vpow2.f32 %v5214_v18 }
 0x8f7   :  { %v6247_v17 = vpop.eup %6246 }
 0x8f8   :  { %534 = vrot.lane.b32.xlu0 %v6247_v17, %s6498_s30 }
 0x8f9   :  { %v6249_v19 = vpop.eup %6248 }
 0x8fa   :  { %v525_v20 = vadd.f32 1.0, %v6249_v19 }
 0x8fc   :  { %6250 = vrcp.f32 %v525_v20 }
 0x909   :  { %v6251_v21 = vpop.eup %6250 }
 0x90a   :  { %v532_v25 = vmul.f32 %v6251_v21, %v530_v24 }
 0x96a   :  { %v535_v22 = vpop.permute.xlu0 %534 }
 0x96b   :  { %v537_v23 = vmul.f32 %v6251_v21, %v535_v22 }
 0x96d   :  { %539 = vrot.lane.b32.xlu1 %v537_v23, %s6498_s30 }
 0x9df   :  { %v540_v26 = vpop.permute.xlu1 %539 }
 0x9e0   :  { %v542_v27 = vadd.f32 %v540_v26, %v532_v25 }
 0x9e2   :  { %6252 = vtanh.f32 %v542_v27  ;;  %v634_v43 = vrot.slane %v542_v27, 6  ;;  %v6713_v27 = vld [vmem:[%s7742_s1 + $0x60] sm:$0xff] }
 0x9ef   :  { %v6253_v12 = vpop.eup %6252 }
 0x9f0   :  { %545 = vrot.lane.b32.xlu0 %v6253_v12, %s6498_s30 }
 0xa62   :  { %v546_v28 = vpop.permute.xlu0 %545 }
 0xa63   :  { %v548_v30 = vmul.f32 %v6251_v21, %v546_v28  ;;  %v6721_v28 = vld [vmem:[%s7742_s1 + $0x58] sm:$0xff] }
 0xa65   :  { %v550_v31 = vrot.slane %v548_v30, 6  ;;  %v6728_v30 = vld [vmem:[%s7742_s1 + $0x50] sm:$0xff] }
 0xa67   :  { %551 = vrot.lane.b32.xlu1 %v550_v31, %s6499_s5  ;;  %v6735_v31 = vld [vmem:[%s7742_s1 + $0x48] sm:$0xff] }
 0xad9   :  { %v6660_v32 = vpop.permute.xlu1 %551 }
 0xada   :  { %5644 = vmatmul.mubr.msk.f32.vlgmr.msra.gmra.mxu1 %vm130_vm3, %v6660_v32 }
 0xadb   :  { %5658 = vmatpush3.msra.mxu1 %v6532_v2  ;;  %5665 = vmatprep.mubr.msk.f32.mxu1 %vm6497_vm2, %v6496_v0 }
 0xadc   :  { %5659 = vmatprep.subr.mxu1 %v6496_v0 }
 0xadd   :  { %5660 = vmatpush3.msra.mxu1 %v6547_v5 }
 0xade   :  { %5661 = vmatprep.subr.mxu1 %v6496_v0 }
 0xadf   :  { %5662 = vmatpush3.msra.mxu1 %v6556_v6 }
 0xae0   :  { %5663 = vmatprep.subr.mxu1 %v6496_v0 }
 0xae1   :  { %5664 = vmatpush3.msra.mxu1 %v6564_v7 }
 0xae2   :  { %5679 = vmatprep.subr.mxu1 %v6496_v0 }
 0xb9a   :  { %v621_v33 = vpop.f32.mrf.mxu1 }
 0xb9b   :  { %v625_v34 = vadd.f32 %v621_v33, %v6594_v10 }
 0xb9c   :  { %v5645_v35 = vpop.f32.mrf.mxu1 }
 0xb9d   :  { %6254 = vtanh.f32 %v625_v34  ;;  %v5216_v37 = vmul.f32 -1.442695, %v625_v34 }
 0xb9f   :  { %6256 = vpow2.f32 %v5216_v37 }
 0xbaa   :  { %v6255_v36 = vpop.eup %6254 }
 0xbab   :  { %638 = vrot.lane.b32.xlu0 %v6255_v36, %s6498_s30  ;;  %v6754_v36 = vld [vmem:[%s7742_s1 + $0x40] sm:$0xff] }
 0xbac   :  { %v6257_v38 = vpop.eup %6256 }
 0xbad   :  { %v629_v39 = vadd.f32 1.0, %v6257_v38  ;;  %v6763_v38 = vld [vmem:[%s7742_s1 + $0x38] sm:$0xff] }
 0xbaf   :  { %6258 = vrcp.f32 %v629_v39  ;;  %v6772_v39 = vld [vmem:[%s7742_s1 + $0x30] sm:$0xff] }
 0xbbc   :  { %v6259_v40 = vpop.eup %6258 }
 0xbbd   :  { %v636_v44 = vmul.f32 %v6259_v40, %v634_v43 }
 0xc1d   :  { %v639_v41 = vpop.permute.xlu0 %638 }
 0xc1e   :  { %v641_v42 = vmul.f32 %v6259_v40, %v639_v41  ;;  %v6874_v41 = vld [vmem:[%s7744_s2 + $0x1] ss:$0 sm:$0xff] }
 0xc20   :  { %643 = vrot.lane.b32.xlu1 %v641_v42, %s6498_s30 }
 0xc92   :  { %v644_v45 = vpop.permute.xlu1 %643 }
 0xc93   :  { %v646_v46 = vadd.f32 %v644_v45, %v636_v44 }
 0xc95   :  { %6260 = vtanh.f32 %v646_v46 }
 0xca2   :  { %v6261_v47 = vpop.eup %6260 }
 0xca3   :  { %649 = vrot.lane.b32.xlu0 %v6261_v47, %s6498_s30 }
 0xd15   :  { %v650_v48 = vpop.permute.xlu0 %649 }
 0xd16   :  { %v652_v50 = vmul.f32 %v6259_v40, %v650_v48  ;;  %v6779_v40 = vld [vmem:[%s7742_s1 + $0x28] sm:$0xff] }
 0xd18   :  { %654 = vrot.lane.b32.xlu1 %v652_v50, %s6499_s5 }
 0xd8a   :  { %v6679_v51 = vpop.permute.xlu1 %654 }
 0xd8b   :  { %5655 = vmatmul.mubr.msk.f32.vlgmr.msra.gmra.mxu0 %vm130_vm3, %v6679_v51 }
 0xd8c   :  { %5669 = vmatpush3.msra.mxu0 %v6532_v2  ;;  %5676 = vmatprep.mubr.msk.f32.mxu0 %vm6497_vm2, %v6496_v0 }
 0xd8d   :  { %5670 = vmatprep.subr.mxu0 %v6496_v0 }
 0xd8e   :  { %5671 = vmatpush3.msra.mxu0 %v6547_v5 }
 0xd8f   :  { %5672 = vmatprep.subr.mxu0 %v6496_v0 }
 0xd90   :  { %5673 = vmatpush3.msra.mxu0 %v6556_v6 }
 0xd91   :  { %5674 = vmatprep.subr.mxu0 %v6496_v0 }
 0xd92   :  { %5675 = vmatpush3.msra.mxu0 %v6564_v7  ;;  %v740_v7 = vrot.slane %v646_v46, 6 }
 0xd93   :  { %5690 = vmatprep.subr.mxu0 %v6496_v0 }
 0xe4b   :  { %v724_v52 = vpop.f32.mrf.mxu0 }
 0xe4c   :  { %v729_v53 = vrot.slane %v724_v52, 6 }
 0xe4d   :  { %v5656_v2 = vpop.f32.mrf.mxu0 }
 0xe4e   :  { %v731_v54 = vadd.f32 %v729_v53, %v6594_v10 }
 0xe50   :  { %6262 = vtanh.f32 %v731_v54  ;;  %v5218_v5 = vmul.f32 -1.442695, %v731_v54 }
 0xe52   :  { %6264 = vpow2.f32 %v5218_v5 }
 0xe5d   :  { %v6263_v55 = vpop.eup %6262 }
 0xe5e   :  { %744 = vrot.lane.b32.xlu0 %v6263_v55, %s6498_s30 }
 0xe5f   :  { %v6265_v56 = vpop.eup %6264 }
 0xe60   :  { %v735_v57 = vadd.f32 1.0, %v6265_v56 }
 0xe62   :  { %6266 = vrcp.f32 %v735_v57 }
 0xe6f   :  { %v6267_v6 = vpop.eup %6266 }
 0xe70   :  { %v742_v60 = vmul.f32 %v6267_v6, %v740_v7 }
 0xed0   :  { %v745_v58 = vpop.permute.xlu0 %744 }
 0xed1   :  { %v747_v59 = vmul.f32 %v6267_v6, %v745_v58 }
 0xed3   :  { %749 = vrot.lane.b32.xlu1 %v747_v59, %s6498_s30 }
 0xf45   :  { %v750_v61 = vpop.permute.xlu1 %749 }
 0xf46   :  { %v752_v62 = vadd.f32 %v750_v61, %v742_v60 }
 0xf48   :  { %6268 = vtanh.f32 %v752_v62  ;;  %v847_v23 = vrot.slane %v752_v62, 6 }
 0xf55   :  { %v6269_v63 = vpop.eup %6268 }
 0xf56   :  { %755 = vrot.lane.b32.xlu0 %v6269_v63, %s6498_s30 }
 0xfc8   :  { %v756_v1 = vpop.permute.xlu0 %755 }
 0xfc9   :  { %v758_v3 = vmul.f32 %v6267_v6, %v756_v1 }
 0xfcb   :  { %v760_v4 = vrot.slane %v758_v3, 2 }
 0xfcd   :  { %761 = vrot.lane.b32.xlu1 %v760_v4, %s6499_s5 }
0x103f   :  { %v6698_v8 = vpop.permute.xlu1 %761 }
0x1040   :  { %5666 = vmatmul.mubr.msk.f32.vlgmr.msra.gmra.mxu1 %vm130_vm3, %v6698_v8 }
0x1041   :  { %5687 = vmatprep.mubr.msk.f32.mxu1 %vm6497_vm2, %v6496_v0  ;;  %5680 = vmatpush3.msra.mxu1 %v6713_v27 }
0x1042   :  { %5681 = vmatprep.subr.mxu1 %v6496_v0 }
0x1043   :  { %5682 = vmatpush3.msra.mxu1 %v6721_v28 }
0x1044   :  { %5683 = vmatprep.subr.mxu1 %v6496_v0 }
0x1045   :  { %5684 = vmatpush3.msra.mxu1 %v6728_v30 }
0x1046   :  { %5685 = vmatprep.subr.mxu1 %v6496_v0 }
0x1047   :  { %5686 = vmatpush3.msra.mxu1 %v6735_v31 }
0x1048   :  { %5688 = vmatmul.mubr.f32.vlgmr.msra.gmra.mxu1 %v6496_v0  ;;  %5701 = vmatprep.subr.mxu1 %v6496_v0 }
0x1049   :  { %5702 = vmatpush3.msra.mxu1 %v6713_v27  ;;  %5709 = vmatprep.mubr.msk.f32.mxu1 %vm6497_vm2, %v6496_v0 }
0x104a   :  { %5703 = vmatprep.subr.mxu1 %v6496_v0 }
0x104b   :  { %5704 = vmatpush3.msra.mxu1 %v6721_v28 }
0x104c   :  { %5705 = vmatprep.subr.mxu1 %v6496_v0 }
0x104d   :  { %5706 = vmatpush3.msra.mxu1 %v6728_v30 }
0x104e   :  { %5707 = vmatprep.subr.mxu1 %v6496_v0 }
0x104f   :  { %5708 = vmatpush3.msra.mxu1 %v6735_v31 }
0x1050   :  { %5723 = vmatprep.subr.mxu1 %v6496_v0 }
0x1100   :  { %v831_v9 = vpop.f32.mrf.mxu1 }
0x1101   :  { %v836_v13 = vrot.slane %v831_v9, 4 }
0x1102   :  { %v5667_v14 = vpop.f32.mrf.mxu1 }
0x1103   :  { %v838_v15 = vadd.f32 %v836_v13, %v6594_v10 }
0x1105   :  { %6270 = vtanh.f32 %v838_v15  ;;  %v5220_v17 = vmul.f32 -1.442695, %v838_v15 }
0x1107   :  { %6272 = vpow2.f32 %v5220_v17 }
0x1112   :  { %v6271_v16 = vpop.eup %6270 }
0x1113   :  { %851 = vrot.lane.b32.xlu0 %v6271_v16, %s6498_s30 }
0x1114   :  { %v6273_v18 = vpop.eup %6272 }
0x1115   :  { %v842_v19 = vadd.f32 1.0, %v6273_v18 }
0x1117   :  { %6274 = vrcp.f32 %v842_v19 }
0x1124   :  { %v6275_v20 = vpop.eup %6274 }
0x1125   :  { %v849_v24 = vmul.f32 %v6275_v20, %v847_v23 }
0x1185   :  { %v852_v21 = vpop.permute.xlu0 %851 }
0x1186   :  { %v854_v22 = vmul.f32 %v6275_v20, %v852_v21 }
0x1188   :  { %856 = vrot.lane.b32.xlu1 %v854_v22, %s6498_s30 }
0x11fa   :  { %v857_v25 = vpop.permute.xlu1 %856 }
0x11fb   :  { %v6707_v26 = vadd.f32 %v857_v25, %v849_v24 }
0x11fd   :  { %6276 = vtanh.f32 %v6707_v26 }
0x120a   :  { %v6277_v12 = vpop.eup %6276 }
0x120b   :  { %862 = vrot.lane.b32.xlu0 %v6277_v12, %s6498_s30 }
0x127d   :  { %v863_v33 = vpop.permute.xlu0 %862 }
0x127e   :  { %v865_v34 = vmul.f32 %v6275_v20, %v863_v33 }
0x1280   :  { %v867_v35 = vrot.slane %v865_v34, 4 }
0x1282   :  { %868 = vrot.lane.b32.xlu1 %v867_v35, %s6499_s5 }
0x12f4   :  { %v6756_v37 = vpop.permute.xlu1 %868 }
0x12f5   :  { %5677 = vmatmul.mubr.msk.f32.vlgmr.msra.gmra.mxu0 %vm130_vm3, %v6756_v37 }
0x12f6   :  { %5691 = vmatpush3.msra.mxu0 %v6754_v36  ;;  %5698 = vmatprep.mubr.msk.f32.mxu0 %vm6497_vm2, %v6496_v0 }
0x12f7   :  { %5692 = vmatprep.subr.mxu0 %v6496_v0 }
0x12f8   :  { %5693 = vmatpush3.msra.mxu0 %v6763_v38 }
0x12f9   :  { %5694 = vmatprep.subr.mxu0 %v6496_v0 }
0x12fa   :  { %5695 = vmatpush3.msra.mxu0 %v6772_v39 }
0x12fb   :  { %5696 = vmatprep.subr.mxu0 %v6496_v0 }
0x12fc   :  { %5697 = vmatpush3.msra.mxu0 %v6779_v40 }
0x12fd   :  { %5699 = vmatmul.mubr.msk.f32.vlgmr.msra.gmra.mxu0 %vm130_vm3, %v6603_v29  ;;  %5712 = vmatprep.subr.mxu0 %v6496_v0  ;;  %v1047_v29 = vpop.f32.mrf.mxu1 }
0x12fe   :  { %5713 = vmatpush3.msra.mxu0 %v6754_v36  ;;  %5720 = vmatprep.mubr.msk.f32.mxu0 %vm6497_vm2, %v6496_v0 }
0x12ff   :  { %5714 = vmatprep.subr.mxu0 %v6496_v0 }
0x1300   :  { %5715 = vmatpush3.msra.mxu0 %v6763_v38 }
0x1301   :  { %5716 = vmatprep.subr.mxu0 %v6496_v0 }
0x1302   :  { %5717 = vmatpush3.msra.mxu0 %v6772_v39 }
0x1303   :  { %5718 = vmatprep.subr.mxu0 %v6496_v0 }
0x1304   :  { %5719 = vmatpush3.msra.mxu0 %v6779_v40 }
0x1305   :  { %5721 = vmatmul.mubr.msk.f32.vlgmr.msra.gmra.mxu0 %vm130_vm3, %v6622_v49  ;;  %5734 = vmatprep.subr.mxu0 %v6496_v0  ;;  %v5689_v49 = vpop.f32.mrf.mxu1 }
0x1306   :  { %5735 = vmatpush3.msra.mxu0 %v6754_v36  ;;  %5742 = vmatprep.mubr.msk.f32.mxu0 %vm6497_vm2, %v6496_v0 }
0x1307   :  { %5736 = vmatprep.subr.mxu0 %v6496_v0 }
0x1308   :  { %5737 = vmatpush3.msra.mxu0 %v6763_v38 }
0x1309   :  { %5738 = vmatprep.subr.mxu0 %v6496_v0 }
0x130a   :  { %5739 = vmatpush3.msra.mxu0 %v6772_v39 }
0x130b   :  { %5740 = vmatprep.subr.mxu0 %v6496_v0 }
0x130c   :  { %5741 = vmatpush3.msra.mxu0 %v6779_v40 }
0x130d   :  { %5743 = vmatmul.mubr.msk.f32.vlgmr.msra.gmra.mxu0 %vm130_vm3, %v6641_v11  ;;  %5756 = vmatprep.subr.mxu0 %v6496_v0 }
0x130e   :  { %5757 = vmatpush3.msra.mxu0 %v6754_v36  ;;  %5764 = vmatprep.mubr.msk.f32.mxu0 %vm6497_vm2, %v6496_v0 }
0x130f   :  { %5758 = vmatprep.subr.mxu0 %v6496_v0 }
0x1310   :  { %5759 = vmatpush3.msra.mxu0 %v6763_v38 }
0x1311   :  { %5760 = vmatprep.subr.mxu0 %v6496_v0 }
0x1312   :  { %5761 = vmatpush3.msra.mxu0 %v6772_v39 }
0x1313   :  { %5762 = vmatprep.subr.mxu0 %v6496_v0 }
0x1314   :  { %5763 = vmatpush3.msra.mxu0 %v6779_v40 }
0x1315   :  { %5765 = vmatmul.mubr.msk.f32.vlgmr.msra.gmra.mxu0 %vm130_vm3, %v6660_v32  ;;  %5778 = vmatprep.subr.mxu0 %v6496_v0 }
0x1316   :  { %5779 = vmatpush3.msra.mxu0 %v6754_v36  ;;  %5786 = vmatprep.mubr.msk.f32.mxu0 %vm6497_vm2, %v6496_v0 }
0x1317   :  { %5780 = vmatprep.subr.mxu0 %v6496_v0 }
0x1318   :  { %5781 = vmatpush3.msra.mxu0 %v6763_v38 }
0x1319   :  { %5782 = vmatprep.subr.mxu0 %v6496_v0 }
0x131a   :  { %5783 = vmatpush3.msra.mxu0 %v6772_v39 }
0x131b   :  { %5784 = vmatprep.subr.mxu0 %v6496_v0 }
0x131c   :  { %5785 = vmatpush3.msra.mxu0 %v6779_v40 }
0x131d   :  { %5787 = vmatmul.mubr.msk.f32.vlgmr.msra.gmra.mxu0 %vm130_vm3, %v6679_v51  ;;  %5800 = vmatprep.subr.mxu0 %v6496_v0 }
0x131e   :  { %5801 = vmatpush3.msra.mxu0 %v6754_v36  ;;  %5808 = vmatprep.mubr.msk.f32.mxu0 %vm6497_vm2, %v6496_v0 }
0x131f   :  { %5802 = vmatprep.subr.mxu0 %v6496_v0 }
0x1320   :  { %5803 = vmatpush3.msra.mxu0 %v6763_v38 }
0x1321   :  { %5804 = vmatprep.subr.mxu0 %v6496_v0 }
0x1322   :  { %5805 = vmatpush3.msra.mxu0 %v6772_v39 }
0x1323   :  { %5806 = vmatprep.subr.mxu0 %v6496_v0 }
0x1324   :  { %5807 = vmatpush3.msra.mxu0 %v6779_v40 }
0x1325   :  { %5809 = vmatmul.mubr.msk.f32.vlgmr.msra.gmra.mxu0 %vm130_vm3, %v6698_v8  ;;  %5822 = vmatprep.subr.mxu0 %v6496_v0 }
0x1326   :  { %5823 = vmatpush3.msra.mxu0 %v6754_v36  ;;  %5830 = vmatprep.mubr.msk.f32.mxu0 %vm6497_vm2, %v6496_v0 }
0x1327   :  { %5824 = vmatprep.subr.mxu0 %v6496_v0 }
0x1328   :  { %5825 = vmatpush3.msra.mxu0 %v6763_v38 }
0x1329   :  { %5826 = vmatprep.subr.mxu0 %v6496_v0 }
0x132a   :  { %5827 = vmatpush3.msra.mxu0 %v6772_v39 }
0x132b   :  { %5828 = vmatprep.subr.mxu0 %v6496_v0 }
0x132c   :  { %5829 = vmatpush3.msra.mxu0 %v6779_v40 }
0x132d   :  { %5831 = vmatmul.mubr.msk.f32.vlgmr.msra.gmra.mxu0 %vm130_vm3, %v6756_v37  ;;  %5844 = vmatprep.subr.mxu0 %v6496_v0 }
0x132e   :  { %5845 = vmatpush3.msra.mxu0 %v6754_v36  ;;  %5852 = vmatprep.mubr.msk.f32.mxu0 %vm6497_vm2, %v6496_v0 }
0x132f   :  { %5846 = vmatprep.subr.mxu0 %v6496_v0 }
0x1330   :  { %5847 = vmatpush3.msra.mxu0 %v6763_v38 }
0x1331   :  { %5848 = vmatprep.subr.mxu0 %v6496_v0 }
0x1332   :  { %5849 = vmatpush3.msra.mxu0 %v6772_v39 }
0x1333   :  { %5850 = vmatprep.subr.mxu0 %v6496_v0 }
0x1334   :  { %5851 = vmatpush3.msra.mxu0 %v6779_v40 }
0x1335   :  { %5866 = vmatprep.subr.mxu0 %v6496_v0 }
0x13b5   :  { %v6869_v11 = vpop.f32.mrf.mxu0 }
0x13b7   :  { %v5678_v32 = vpop.f32.mrf.mxu0 }
0x13bd   :  { %v1117_v42 = vpop.f32.mrf.mxu0 }
0x13be   :  { %v1118_v43 = vadd.f32 %v1117_v42, %v1047_v29 }
0x13bf   :  { %v5700_v44 = vpop.f32.mrf.mxu0 }
0x13c0   :  { %v1121_v45 = vadd.f32 %v6874_v41, %v1118_v43 }
0x13c2   :  { %6278 = vtanh.f32 %v1121_v45  ;;  %v5224_v6 = vmul.f32 -1.442695, %v1121_v45 }
0x13c4   :  { %6280 = vpow2.f32 %v5224_v6 }
0x13c5   :  { %v1287_v46 = vpop.f32.mrf.mxu0 }
0x13c7   :  { %v5722_v47 = vpop.f32.mrf.mxu0 }
0x13cd   :  { %v6877_v48 = vpop.f32.mrf.mxu0 }
0x13cf   :  { %v6279_v50 = vpop.eup %6278  ;;  %v5744_v51 = vpop.f32.mrf.mxu0 }
0x13d0   :  { %1131 = vrot.lane.b32.xlu0 %v6279_v50, %s6498_s30 }
0x13d1   :  { %v6281_v58 = vpop.eup %6280 }
0x13d2   :  { %v1125_v59 = vadd.f32 1.0, %v6281_v58 }
0x13d4   :  { %6282 = vrcp.f32 %v1125_v59 }
0x13d5   :  { %v6880_v52 = vpop.f32.mrf.mxu0 }
0x13d7   :  { %v5766_v53 = vpop.f32.mrf.mxu0 }
0x13dd   :  { %v6882_v2 = vpop.f32.mrf.mxu0 }
0x13df   :  { %v5788_v54 = vpop.f32.mrf.mxu0 }
0x13e1   :  { %v6283_v7 = vpop.eup %6282 }
0x13e2   :  { %v1129_v62 = vmul.f32 0.0, %v6283_v7 }
0x13e5   :  { %v6884_v55 = vpop.f32.mrf.mxu0 }
0x13e7   :  { %v5810_v5 = vpop.f32.mrf.mxu0 }
0x13ed   :  { %v6886_v56 = vpop.f32.mrf.mxu0 }
0x13ef   :  { %v5832_v57 = vpop.f32.mrf.mxu0 }
0x1442   :  { %v1132_v60 = vpop.permute.xlu0 %1131 }
0x1443   :  { %v1134_v61 = vmul.f32 %v6283_v7, %v1132_v60 }
0x1445   :  { %1136 = vrot.lane.b32.xlu1 %v1134_v61, %s6498_s30 }
0x14b7   :  { %v1137_v63 = vpop.permute.xlu1 %1136 }
0x14b8   :  { %v1139_v1 = vadd.f32 %v1137_v63, %v1129_v62 }
0x14ba   :  { %6284 = vtanh.f32 %v1139_v1 }
0x14c7   :  { %v6285_v3 = vpop.eup %6284 }
0x14c8   :  { %1142 = vrot.lane.b32.xlu0 %v6285_v3, %s6498_s30 }
0x153a   :  { %v1143_v4 = vpop.permute.xlu0 %1142 }
0x153b   :  { %v1145_v8 = vmul.f32 %v6283_v7, %v1143_v4 }
0x153d   :  { %1147 = vrot.lane.b32.xlu1 %v1145_v8, %s6499_s5 }
0x15af   :  { %v1148_v9 = vpop.permute.xlu1 %1147 }
0x15b0   :  { %5710 = vmatmul.mubr.msk.f32.vlgmr.msra.gmra.mxu1 %vm130_vm3, %v1148_v9 }
0x15b1   :  { %5724 = vmatpush3.msra.mxu1 %v6713_v27  ;;  %5731 = vmatprep.mubr.msk.f32.mxu1 %vm6497_vm2, %v6496_v0 }
0x15b2   :  { %5725 = vmatprep.subr.mxu1 %v6496_v0 }
0x15b3   :  { %5726 = vmatpush3.msra.mxu1 %v6721_v28 }
0x15b4   :  { %5727 = vmatprep.subr.mxu1 %v6496_v0 }
0x15b5   :  { %5728 = vmatpush3.msra.mxu1 %v6728_v30 }
0x15b6   :  { %5729 = vmatprep.subr.mxu1 %v6496_v0 }
0x15b7   :  { %5730 = vmatpush3.msra.mxu1 %v6735_v31 }
0x15b8   :  { %5745 = vmatprep.subr.mxu1 %v6496_v0 }
0x1670   :  { %v1217_v13 = vpop.f32.mrf.mxu1 }
0x1671   :  { %v1288_v14 = vadd.f32 %v1287_v46, %v1217_v13 }
0x1672   :  { %v5711_v15 = vpop.f32.mrf.mxu1 }
0x1673   :  { %v1291_v16 = vadd.f32 %v6874_v41, %v1288_v14 }
0x1675   :  { %6286 = vtanh.f32 %v1291_v16  ;;  %v5227_v18 = vmul.f32 -1.442695, %v1291_v16 }
0x1677   :  { %6288 = vpow2.f32 %v5227_v18 }
0x1682   :  { %v6287_v17 = vpop.eup %6286 }
0x1683   :  { %1301 = vrot.lane.b32.xlu0 %v6287_v17, %s6498_s30 }
0x1684   :  { %v6289_v19 = vpop.eup %6288 }
0x1685   :  { %v1295_v20 = vadd.f32 1.0, %v6289_v19 }
0x1687   :  { %6290 = vrcp.f32 %v1295_v20 }
0x1694   :  { %v6291_v21 = vpop.eup %6290 }
0x1695   :  { %v1299_v24 = vmul.f32 %v6291_v21, %v1139_v1 }
0x16f5   :  { %v1302_v22 = vpop.permute.xlu0 %1301 }
0x16f6   :  { %v1304_v23 = vmul.f32 %v6291_v21, %v1302_v22 }
0x16f8   :  { %1306 = vrot.lane.b32.xlu1 %v1304_v23, %s6498_s30 }
0x176a   :  { %v1307_v25 = vpop.permute.xlu1 %1306 }
0x176b   :  { %v1309_v12 = vadd.f32 %v1307_v25, %v1299_v24 }
0x176d   :  { %6292 = vtanh.f32 %v1309_v12 }
0x177a   :  { %v6293_v33 = vpop.eup %6292 }
0x177b   :  { %1312 = vrot.lane.b32.xlu0 %v6293_v33, %s6498_s30 }
0x17ed   :  { %v1313_v34 = vpop.permute.xlu0 %1312 }
0x17ee   :  { %v1315_v35 = vmul.f32 %v6291_v21, %v1313_v34 }
0x17f0   :  { %1317 = vrot.lane.b32.xlu1 %v1315_v35, %s6499_s5 }
0x1862   :  { %v1318_v36 = vpop.permute.xlu1 %1317 }
0x1863   :  { %5732 = vmatmul.mubr.msk.f32.vlgmr.msra.gmra.mxu1 %vm130_vm3, %v1318_v36 }
0x1864   :  { %5746 = vmatpush3.msra.mxu1 %v6713_v27  ;;  %5753 = vmatprep.mubr.msk.f32.mxu1 %vm6497_vm2, %v6496_v0 }
0x1865   :  { %5747 = vmatprep.subr.mxu1 %v6496_v0 }
0x1866   :  { %5748 = vmatpush3.msra.mxu1 %v6721_v28 }
0x1867   :  { %5749 = vmatprep.subr.mxu1 %v6496_v0 }
0x1868   :  { %5750 = vmatpush3.msra.mxu1 %v6728_v30 }
0x1869   :  { %5751 = vmatprep.subr.mxu1 %v6496_v0 }
0x186a   :  { %5752 = vmatpush3.msra.mxu1 %v6735_v31 }
0x186b   :  { %5767 = vmatprep.subr.mxu1 %v6496_v0 }
0x1923   :  { %v1387_v37 = vpop.f32.mrf.mxu1 }
0x1924   :  { %v1458_v38 = vadd.f32 %v6877_v48, %v1387_v37 }
0x1925   :  { %v5733_v39 = vpop.f32.mrf.mxu1 }
0x1926   :  { %v1461_v40 = vadd.f32 %v6874_v41, %v1458_v38 }
0x1928   :  { %6294 = vtanh.f32 %v1461_v40  ;;  %v5230_v49 = vmul.f32 -1.442695, %v1461_v40 }
0x192a   :  { %6296 = vpow2.f32 %v5230_v49 }
0x1935   :  { %v6295_v29 = vpop.eup %6294 }
0x1936   :  { %1471 = vrot.lane.b32.xlu0 %v6295_v29, %s6498_s30 }
0x1937   :  { %v6297_v32 = vpop.eup %6296 }
0x1938   :  { %v1465_v42 = vadd.f32 1.0, %v6297_v32 }
0x193a   :  { %6298 = vrcp.f32 %v1465_v42 }
0x1947   :  { %v6299_v43 = vpop.eup %6298 }
0x1948   :  { %v1469_v46 = vmul.f32 %v6299_v43, %v1309_v12 }
0x19a8   :  { %v1472_v44 = vpop.permute.xlu0 %1471 }
0x19a9   :  { %v1474_v45 = vmul.f32 %v6299_v43, %v1472_v44 }
0x19ab   :  { %1476 = vrot.lane.b32.xlu1 %v1474_v45, %s6498_s30 }
0x1a1d   :  { %v1477_v47 = vpop.permute.xlu1 %1476 }
0x1a1e   :  { %v1479_v48 = vadd.f32 %v1477_v47, %v1469_v46  ;;  %v943_v47 = vrot.slane %v6869_v11, 2 }
0x1a20   :  { %6300 = vtanh.f32 %v1479_v48 }
0x1a2d   :  { %v6301_v50 = vpop.eup %6300 }
0x1a2e   :  { %1482 = vrot.lane.b32.xlu0 %v6301_v50, %s6498_s30 }
0x1aa0   :  { %v1483_v51 = vpop.permute.xlu0 %1482 }
0x1aa1   :  { %v1485_v53 = vmul.f32 %v6299_v43, %v1483_v51  ;;  %v945_v51 = vadd.f32 %v943_v47, %v6594_v10 }
0x1aa3   :  { %1487 = vrot.lane.b32.xlu1 %v1485_v53, %s6499_s5 }
0x1b15   :  { %v1488_v54 = vpop.permute.xlu1 %1487 }
0x1b16   :  { %5754 = vmatmul.mubr.msk.f32.vlgmr.msra.gmra.mxu1 %vm130_vm3, %v1488_v54 }
0x1b17   :  { %5768 = vmatpush3.msra.mxu1 %v6713_v27  ;;  %5775 = vmatprep.mubr.msk.f32.mxu1 %vm6497_vm2, %v6496_v0 }
0x1b18   :  { %5769 = vmatprep.subr.mxu1 %v6496_v0 }
0x1b19   :  { %5770 = vmatpush3.msra.mxu1 %v6721_v28 }
0x1b1a   :  { %5771 = vmatprep.subr.mxu1 %v6496_v0 }
0x1b1b   :  { %5772 = vmatpush3.msra.mxu1 %v6728_v30 }
0x1b1c   :  { %5773 = vmatprep.subr.mxu1 %v6496_v0 }
0x1b1d   :  { %5774 = vmatpush3.msra.mxu1 %v6735_v31 }
0x1b1e   :  { %5789 = vmatprep.subr.mxu1 %v6496_v0 }
0x1bd6   :  { %v1557_v5 = vpop.f32.mrf.mxu1 }
0x1bd7   :  { %v1628_v57 = vadd.f32 %v6880_v52, %v1557_v5  ;;  %v5222_v5 = vmul.f32 -1.442695, %v945_v51 }
0x1bd8   :  { %v5755_v6 = vpop.f32.mrf.mxu1 }
0x1bd9   :  { %v1631_v58 = vadd.f32 %v6874_v41, %v1628_v57 }
0x1bdb   :  { %6302 = vtanh.f32 %v1631_v58  ;;  %v5233_v7 = vmul.f32 -1.442695, %v1631_v58 }
0x1bdd   :  { %6304 = vpow2.f32 %v5233_v7 }
0x1be8   :  { %v6303_v59 = vpop.eup %6302 }
0x1be9   :  { %1641 = vrot.lane.b32.xlu0 %v6303_v59, %s6498_s30 }
0x1bea   :  { %v6305_v60 = vpop.eup %6304 }
0x1beb   :  { %v1635_v61 = vadd.f32 1.0, %v6305_v60 }
0x1bed   :  { %6306 = vrcp.f32 %v1635_v61  ;;  %v954_v61 = vrot.slane %v6707_v26, 6 }
0x1bfa   :  { %v6307_v62 = vpop.eup %6306 }
0x1bfb   :  { %v1639_v3 = vmul.f32 %v6307_v62, %v1479_v48 }
0x1c5b   :  { %v1642_v63 = vpop.permute.xlu0 %1641 }
0x1c5c   :  { %v1644_v1 = vmul.f32 %v6307_v62, %v1642_v63 }
0x1c5e   :  { %1646 = vrot.lane.b32.xlu1 %v1644_v1, %s6498_s30 }
0x1cd0   :  { %v1647_v4 = vpop.permute.xlu1 %1646 }
0x1cd1   :  { %v1649_v52 = vadd.f32 %v1647_v4, %v1639_v3 }
0x1cd3   :  { %6308 = vtanh.f32 %v1649_v52 }
0x1ce0   :  { %v6309_v8 = vpop.eup %6308 }
0x1ce1   :  { %1652 = vrot.lane.b32.xlu0 %v6309_v8, %s6498_s30 }
0x1d53   :  { %v1653_v9 = vpop.permute.xlu0 %1652 }
0x1d54   :  { %v1655_v13 = vmul.f32 %v6307_v62, %v1653_v9 }
0x1d56   :  { %1657 = vrot.lane.b32.xlu1 %v1655_v13, %s6499_s5 }
0x1dc8   :  { %v1658_v14 = vpop.permute.xlu1 %1657 }
0x1dc9   :  { %5776 = vmatmul.mubr.msk.f32.vlgmr.msra.gmra.mxu1 %vm130_vm3, %v1658_v14 }
0x1dca   :  { %5790 = vmatpush3.msra.mxu1 %v6713_v27  ;;  %5797 = vmatprep.mubr.msk.f32.mxu1 %vm6497_vm2, %v6496_v0 }
0x1dcb   :  { %5791 = vmatprep.subr.mxu1 %v6496_v0 }
0x1dcc   :  { %5792 = vmatpush3.msra.mxu1 %v6721_v28 }
0x1dcd   :  { %5793 = vmatprep.subr.mxu1 %v6496_v0 }
0x1dce   :  { %5794 = vmatpush3.msra.mxu1 %v6728_v30 }
0x1dcf   :  { %5795 = vmatprep.subr.mxu1 %v6496_v0 }
0x1dd0   :  { %5796 = vmatpush3.msra.mxu1 %v6735_v31 }
0x1dd1   :  { %5811 = vmatprep.subr.mxu1 %v6496_v0 }
0x1e89   :  { %v1727_v15 = vpop.f32.mrf.mxu1 }
0x1e8a   :  { %v1798_v16 = vadd.f32 %v6882_v2, %v1727_v15 }
0x1e8b   :  { %v5777_v17 = vpop.f32.mrf.mxu1 }
0x1e8c   :  { %v1801_v18 = vadd.f32 %v6874_v41, %v1798_v16 }
0x1e8e   :  { %6310 = vtanh.f32 %v1801_v18  ;;  %v5236_v20 = vmul.f32 -1.442695, %v1801_v18 }
0x1e90   :  { %6312 = vpow2.f32 %v5236_v20 }
0x1e9b   :  { %v6311_v19 = vpop.eup %6310 }
0x1e9c   :  { %1811 = vrot.lane.b32.xlu0 %v6311_v19, %s6498_s30 }
0x1e9d   :  { %v6313_v21 = vpop.eup %6312 }
0x1e9e   :  { %v1805_v22 = vadd.f32 1.0, %v6313_v21 }
0x1ea0   :  { %6314 = vrcp.f32 %v1805_v22 }
0x1ead   :  { %v6315_v23 = vpop.eup %6314 }
0x1eae   :  { %v1809_v12 = vmul.f32 %v6315_v23, %v1649_v52 }
0x1f0e   :  { %v1812_v24 = vpop.permute.xlu0 %1811 }
0x1f0f   :  { %v1814_v25 = vmul.f32 %v6315_v23, %v1812_v24  ;;  %v7008_v24 = vld [vmem:[%s7742_s1 + $0xa0] sm:$0xff] }
0x1f11   :  { %1816 = vrot.lane.b32.xlu1 %v1814_v25, %s6498_s30 }
0x1f83   :  { %v1817_v33 = vpop.permute.xlu1 %1816 }
0x1f84   :  { %v1819_v2 = vadd.f32 %v1817_v33, %v1809_v12  ;;  %v7014_v12 = vld [vmem:[%s7742_s1 + $0x98] sm:$0xff]  ;;  %v7023_v33 = vld [vmem:[%s7742_s1 + $0x90] sm:$0xff] }
0x1f86   :  { %6316 = vtanh.f32 %v1819_v2 }
0x1f93   :  { %v6317_v34 = vpop.eup %6316 }
0x1f94   :  { %1822 = vrot.lane.b32.xlu0 %v6317_v34, %s6498_s30 }
0x2006   :  { %v1823_v35 = vpop.permute.xlu0 %1822 }
0x2007   :  { %v1825_v36 = vmul.f32 %v6315_v23, %v1823_v35 }
0x2009   :  { %1827 = vrot.lane.b32.xlu1 %v1825_v36, %s6499_s5 }
0x207b   :  { %v1828_v37 = vpop.permute.xlu1 %1827 }
0x207c   :  { %5798 = vmatmul.mubr.msk.f32.vlgmr.msra.gmra.mxu1 %vm130_vm3, %v1828_v37 }
0x207d   :  { %5812 = vmatpush3.msra.mxu1 %v6713_v27  ;;  %5819 = vmatprep.mubr.msk.f32.mxu1 %vm6497_vm2, %v6496_v0 }
0x207e   :  { %5813 = vmatprep.subr.mxu1 %v6496_v0 }
0x207f   :  { %5814 = vmatpush3.msra.mxu1 %v6721_v28 }
0x2080   :  { %5815 = vmatprep.subr.mxu1 %v6496_v0 }
0x2081   :  { %5816 = vmatpush3.msra.mxu1 %v6728_v30 }
0x2082   :  { %5817 = vmatprep.subr.mxu1 %v6496_v0 }
0x2083   :  { %5818 = vmatpush3.msra.mxu1 %v6735_v31 }
0x2084   :  { %5833 = vmatprep.subr.mxu1 %v6496_v0 }
0x213c   :  { %v1897_v38 = vpop.f32.mrf.mxu1 }
0x213d   :  { %v1968_v39 = vadd.f32 %v6884_v55, %v1897_v38 }
0x213e   :  { %v5799_v40 = vpop.f32.mrf.mxu1 }
0x213f   :  { %v1971_v29 = vadd.f32 %v6874_v41, %v1968_v39 }
0x2141   :  { %6318 = vtanh.f32 %v1971_v29  ;;  %v5239_v32 = vmul.f32 -1.442695, %v1971_v29 }
0x2143   :  { %6320 = vpow2.f32 %v5239_v32 }
0x214e   :  { %v6319_v49 = vpop.eup %6318 }
0x214f   :  { %1981 = vrot.lane.b32.xlu0 %v6319_v49, %s6498_s30 }
0x2150   :  { %v6321_v42 = vpop.eup %6320 }
0x2151   :  { %v1975_v43 = vadd.f32 1.0, %v6321_v42 }
0x2153   :  { %6322 = vrcp.f32 %v1975_v43 }
0x2160   :  { %v6323_v44 = vpop.eup %6322 }
0x2161   :  { %v1979_v55 = vmul.f32 %v6323_v44, %v1819_v2  ;;  %v7030_v2 = vld [vmem:[%s7742_s1 + $0x88] sm:$0xff] }
0x21c1   :  { %v1982_v45 = vpop.permute.xlu0 %1981 }
0x21c2   :  { %v1984_v46 = vmul.f32 %v6323_v44, %v1982_v45 }
0x21c4   :  { %1986 = vrot.lane.b32.xlu1 %v1984_v46, %s6498_s30 }
0x2236   :  { %v1987_v48 = vpop.permute.xlu1 %1986 }
0x2237   :  { %v1989_v50 = vadd.f32 %v1987_v48, %v1979_v55 }
0x2239   :  { %6324 = vtanh.f32 %v1989_v50 }
0x223a   :  { %6326 = vtanh.f32 %v945_v51  ;;  %v7058_v51 = vld [vmem:[%s7742_s1 + $0x78] sm:$0xff] }
0x223b   :  { %6328 = vpow2.f32 %v5222_v5  ;;  %v7077_v5 = vld [vmem:[%s7742_s1 + $0xd0] sm:$0xff] }
0x2246   :  { %v6325_v53 = vpop.eup %6324 }
0x2247   :  { %1992 = vrot.lane.b32.xlu0 %v6325_v53, %s6498_s30  ;;  %v6327_v54 = vpop.eup %6326  ;;  %v7065_v53 = vld [vmem:[%s7742_s1 + $0xd8] sm:$0xff] }
0x2248   :  { %v6329_v57 = vpop.eup %6328 }
0x2249   :  { %v949_v6 = vadd.f32 1.0, %v6329_v57  ;;  %v7086_v57 = vld [vmem:[%s7742_s1 + $0x68] sm:$0xff] }
0x224b   :  { %958 = vrot.lane.b32.xlu0 %v6327_v54, %s6498_s30  ;;  %6330 = vrcp.f32 %v949_v6  ;;  %v7072_v54 = vld [vmem:[%s7742_s1 + $0x70] sm:$0xff]  ;;  %v7091_v6 = vld [vmem:[%s7742_s1 + $0xc8] sm:$0xff] }
0x2258   :  { %v6331_v59 = vpop.eup %6330 }
0x2259   :  { %v956_v62 = vmul.f32 %v6331_v59, %v954_v61 }
0x22b9   :  { %v1993_v58 = vpop.permute.xlu0 %1992 }
0x22ba   :  { %v1995_v11 = vmul.f32 %v6323_v44, %v1993_v58 }
0x22bc   :  { %1997 = vrot.lane.b32.xlu1 %v1995_v11, %s6499_s5 }
0x22bd   :  { %v959_v7 = vpop.permute.xlu0 %958 }
0x22be   :  { %v961_v10 = vmul.f32 %v6331_v59, %v959_v7 }
0x22c0   :  { %963 = vrot.lane.b32.xlu0 %v961_v10, %s6498_s30  ;;  %v7120_v10 = vld [vmem:[%s7744_s2 + $0x2] ss:$0 sm:$0xff] }
0x232e   :  { %v1998_v60 = vpop.permute.xlu1 %1997 }
0x232f   :  { %5820 = vmatmul.mubr.msk.f32.vlgmr.msra.gmra.mxu1 %vm130_vm3, %v1998_v60 }
0x2330   :  { %5834 = vmatpush3.msra.mxu1 %v6713_v27  ;;  %5841 = vmatprep.mubr.msk.f32.mxu1 %vm6497_vm2, %v6496_v0 }
0x2331   :  { %5835 = vmatprep.subr.mxu1 %v6496_v0 }
0x2332   :  { %v964_v63 = vpop.permute.xlu0 %963  ;;  %5836 = vmatpush3.msra.mxu1 %v6721_v28 }
0x2333   :  { %v6986_v1 = vadd.f32 %v964_v63, %v956_v62  ;;  %5837 = vmatprep.subr.mxu1 %v6496_v0 }
0x2334   :  { %5838 = vmatpush3.msra.mxu1 %v6728_v30 }
0x2335   :  { %6332 = vtanh.f32 %v6986_v1  ;;  %5839 = vmatprep.subr.mxu1 %v6496_v0 }
0x2336   :  { %5840 = vmatpush3.msra.mxu1 %v6735_v31 }
0x2337   :  { %5855 = vmatprep.subr.mxu1 %v6496_v0 }
0x2342   :  { %v6333_v26 = vpop.eup %6332 }
0x2343   :  { %969 = vrot.lane.b32.xlu0 %v6333_v26, %s6498_s30 }
0x23b5   :  { %v970_v17 = vpop.permute.xlu0 %969 }
0x23b6   :  { %v972_v18 = vmul.f32 %v6331_v59, %v970_v17  ;;  %v7153_v17 = vld [vmem:[%s7742_s1 + $0xa8] sm:$0xff] }
0x23b8   :  { %v2242_v20 = vrot.slane %v972_v18, 6 }
0x23ef   :  { %v2067_v27 = vpop.f32.mrf.mxu1 }
0x23f0   :  { %v2138_v28 = vadd.f32 %v6886_v56, %v2067_v27 }
0x23f1   :  { %v5821_v3 = vpop.f32.mrf.mxu1 }
0x23f2   :  { %v2141_v4 = vadd.f32 %v6874_v41, %v2138_v28 }
0x23f4   :  { %6334 = vtanh.f32 %v2141_v4  ;;  %v5242_v30 = vmul.f32 -1.442695, %v2141_v4 }
0x23f6   :  { %6336 = vpow2.f32 %v5242_v30 }
0x2401   :  { %v6335_v52 = vpop.eup %6334 }
0x2402   :  { %2151 = vrot.lane.b32.xlu1 %v6335_v52, %s6498_s30 }
0x2403   :  { %v6337_v8 = vpop.eup %6336 }
0x2404   :  { %v2145_v9 = vadd.f32 1.0, %v6337_v8 }
0x2406   :  { %6338 = vrcp.f32 %v2145_v9 }
0x2413   :  { %v6339_v31 = vpop.eup %6338 }
0x2414   :  { %v2149_v15 = vmul.f32 %v6339_v31, %v1989_v50  ;;  %v7053_v50 = vld [vmem:[%s7742_s1 + $0xe0] sm:$0xff] }
0x2474   :  { %v2152_v13 = vpop.permute.xlu1 %2151 }
0x2475   :  { %v2154_v14 = vmul.f32 %v6339_v31, %v2152_v13 }
0x2477   :  { %2156 = vrot.lane.b32.xlu1 %v2154_v14, %s6498_s30 }
0x24e9   :  { %v2157_v16 = vpop.permute.xlu1 %2156 }
0x24ea   :  { %v2159_v56 = vadd.f32 %v2157_v16, %v2149_v15  ;;  %v7134_v16 = vld [vmem:[%s7742_s1 + $0xc0] sm:$0xff] }
0x24ec   :  { %6340 = vtanh.f32 %v2159_v56 }
0x24f9   :  { %v6341_v19 = vpop.eup %6340 }
0x24fa   :  { %2162 = vrot.lane.b32.xlu1 %v6341_v19, %s6498_s30 }
0x24fe   :  { %2243 = vrot.lane.b32.xlu1 %v2242_v20, %s6499_s5 }
0x256c   :  { %v2163_v21 = vpop.permute.xlu1 %2162 }
0x256d   :  { %v2165_v22 = vmul.f32 %v6339_v31, %v2163_v21  ;;  %v2512_v31 = vrot.slane %v6986_v1, 6  ;;  %v7146_v1 = vld [vmem:[%s7742_s1 + $0xb0] sm:$0xff] }
0x256f   :  { %2167 = vrot.lane.b32.xlu0 %v2165_v22, %s6499_s5  ;;  %v7186_v22 = vld [vmem:[%s7744_s2 + $0x3] ss:$0 sm:$0xff] }
0x2570   :  { %v2244_v23 = vpop.permute.xlu1 %2243 }
0x2571   :  { %5853 = vmatmul.mubr.msk.f32.vlgmr.msra.gmra.mxu0 %vm130_vm3, %v2244_v23 }
0x2572   :  { %5874 = vmatprep.mubr.msk.f32.mxu0 %vm6497_vm2, %v6496_v0 }
0x25e1   :  { %v2168_v25 = vpop.permute.xlu0 %2167 }
0x25e2   :  { %5842 = vmatmul.mubr.msk.f32.vlgmr.msra.gmra.mxu1 %vm130_vm3, %v2168_v25 }
0x25e3   :  { %5856 = vmatpush3.msra.mxu1 %v7008_v24  ;;  %5863 = vmatprep.mubr.msk.f32.mxu1 %vm6497_vm2, %v6496_v0 }
0x25e4   :  { %5857 = vmatprep.subr.mxu1 %v6496_v0 }
0x25e5   :  { %5858 = vmatpush3.msra.mxu1 %v7014_v12 }
0x25e6   :  { %5859 = vmatprep.subr.mxu1 %v6496_v0 }
0x25e7   :  { %5860 = vmatpush3.msra.mxu1 %v7023_v33 }
0x25e8   :  { %5861 = vmatprep.subr.mxu1 %v6496_v0 }
0x25e9   :  { %5862 = vmatpush3.msra.mxu1 %v7030_v2 }
0x25ea   :  { %5864 = vmatmul.mubr.msk.f32.vlgmr.msra.gmra.mxu1 %vm130_vm3, %v2244_v23  ;;  %5877 = vmatprep.subr.mxu1 %v6496_v0 }
0x25eb   :  { %5885 = vmatprep.mubr.msk.f32.mxu1 %vm6497_vm2, %v6496_v0  ;;  %5878 = vmatpush3.msra.mxu1 %v7053_v50 }
0x25ec   :  { %5879 = vmatprep.subr.mxu1 %v6496_v0 }
0x25ed   :  { %5880 = vmatpush3.msra.mxu1 %v7065_v53 }
0x25ee   :  { %5881 = vmatprep.subr.mxu1 %v6496_v0 }
0x25ef   :  { %5882 = vmatpush3.msra.mxu1 %v7077_v5 }
0x25f0   :  { %5883 = vmatprep.subr.mxu1 %v6496_v0 }
0x25f1   :  { %5884 = vmatpush3.msra.mxu1 %v7091_v6 }
0x25f2   :  { %5899 = vmatprep.subr.mxu1 %v6496_v0 }
0x2631   :  { %v2313_v34 = vpop.f32.mrf.mxu0 }
0x2633   :  { %v5854_v35 = vpop.f32.mrf.mxu0 }
0x26a2   :  { %v2237_v36 = vpop.f32.mrf.mxu1 }
0x26a3   :  { %v2314_v37 = vadd.f32 %v2313_v34, %v2237_v36 }
0x26a4   :  { %v5843_v38 = vpop.f32.mrf.mxu1 }
0x26a5   :  { %v2317_v39 = vadd.f32 %v6874_v41, %v2314_v37  ;;  %v7048_v41 = vld [vmem:[%s7742_s1 + $0x80] sm:$0xff] }
0x26a6   :  { %5867 = vmatpush3.msra.mxu0 %v7048_v41 }
0x26a7   :  { %6342 = vtanh.f32 %v2317_v39  ;;  %v5245_v32 = vmul.f32 -1.442695, %v2317_v39  ;;  %5868 = vmatprep.subr.mxu0 %v6496_v0 }
0x26a8   :  { %5869 = vmatpush3.msra.mxu0 %v7058_v51 }
0x26a9   :  { %6344 = vpow2.f32 %v5245_v32  ;;  %5870 = vmatprep.subr.mxu0 %v6496_v0 }
0x26aa   :  { %v2424_v40 = vpop.f32.mrf.mxu1  ;;  %5871 = vmatpush3.msra.mxu0 %v7072_v54 }
0x26ab   :  { %5872 = vmatprep.subr.mxu0 %v6496_v0 }
0x26ac   :  { %v5865_v29 = vpop.f32.mrf.mxu1  ;;  %5873 = vmatpush3.msra.mxu0 %v7086_v57 }
0x26ad   :  { %5888 = vmatprep.subr.mxu0 %v6496_v0 }
0x26b4   :  { %v6343_v49 = vpop.eup %6342 }
0x26b5   :  { %2327 = vrot.lane.b32.xlu0 %v6343_v49, %s6498_s30 }
0x26b6   :  { %v6345_v42 = vpop.eup %6344 }
0x26b7   :  { %v2321_v43 = vadd.f32 1.0, %v6345_v42 }
0x26b9   :  { %6346 = vrcp.f32 %v2321_v43 }
0x26c6   :  { %v6347_v44 = vpop.eup %6346 }
0x26c7   :  { %v2325_v47 = vmul.f32 %v6347_v44, %v2159_v56  ;;  %v7139_v56 = vld [vmem:[%s7742_s1 + $0xb8] sm:$0xff] }
0x2727   :  { %v2328_v45 = vpop.permute.xlu0 %2327 }
0x2728   :  { %v2330_v46 = vmul.f32 %v6347_v44, %v2328_v45 }
0x272a   :  { %2332 = vrot.lane.b32.xlu1 %v2330_v46, %s6498_s30 }
0x279c   :  { %v2333_v55 = vpop.permute.xlu1 %2332 }
0x279d   :  { %v7042_v48 = vadd.f32 %v2333_v55, %v2325_v47 }
0x279f   :  { %6348 = vtanh.f32 %v7042_v48 }
0x27ac   :  { %v6349_v58 = vpop.eup %6348 }
0x27ad   :  { %2338 = vrot.lane.b32.xlu0 %v6349_v58, %s6498_s30 }
0x281f   :  { %v2339_v11 = vpop.permute.xlu0 %2338 }
0x2820   :  { %v2341_v59 = vmul.f32 %v6347_v44, %v2339_v11 }
0x2822   :  { %2429 = vrot.lane.b32.xlu1 %v2341_v59, %s6499_s5 }
0x2894   :  { %v2430_v7 = vpop.permute.xlu1 %2429 }
0x2895   :  { %5875 = vmatmul.mubr.msk.f32.vlgmr.msra.gmra.mxu0 %vm130_vm3, %v2430_v7  ;;  %5886 = vmatmul.mubr.msk.f32.vlgmr.msra.gmra.mxu1 %vm130_vm3, %v2430_v7 }
0x2896   :  { %5900 = vmatpush3.msra.mxu1 %v7008_v24  ;;  %5896 = vmatprep.mubr.msk.f32.mxu0 %vm6497_vm2, %v6496_v0 }
0x2897   :  { %5901 = vmatprep.subr.mxu1 %v6496_v0  ;;  %5907 = vmatprep.mubr.msk.f32.mxu1 %vm6497_vm2, %v6496_v0 }
0x2898   :  { %5902 = vmatpush3.msra.mxu1 %v7014_v12  ;;  %5889 = vmatpush3.msra.mxu0 %v7134_v16 }
0x2899   :  { %5903 = vmatprep.subr.mxu1 %v6496_v0  ;;  %5890 = vmatprep.subr.mxu0 %v6496_v0 }
0x289a   :  { %5904 = vmatpush3.msra.mxu1 %v7023_v33  ;;  %5891 = vmatpush3.msra.mxu0 %v7139_v56 }
0x289b   :  { %5905 = vmatprep.subr.mxu1 %v6496_v0  ;;  %5892 = vmatprep.subr.mxu0 %v6496_v0 }
0x289c   :  { %5906 = vmatpush3.msra.mxu1 %v7030_v2  ;;  %5893 = vmatpush3.msra.mxu0 %v7146_v1 }
0x289d   :  { %5921 = vmatprep.subr.mxu1 %v6496_v0  ;;  %5894 = vmatprep.subr.mxu0 %v6496_v0 }
0x289e   :  { %5895 = vmatpush3.msra.mxu0 %v7153_v17 }
0x289f   :  { %5910 = vmatprep.subr.mxu0 %v6496_v0 }
0x2955   :  { %v2499_v60 = vpop.f32.mrf.mxu0  ;;  %v7122_v61 = vpop.f32.mrf.mxu1 }
0x2956   :  { %v2500_v62 = vadd.f32 %v2499_v60, %v2424_v40 }
0x2957   :  { %v5876_v63 = vpop.f32.mrf.mxu0  ;;  %v5887_v26 = vpop.f32.mrf.mxu1 }
0x2958   :  { %v2503_v27 = vadd.f32 %v7120_v10, %v2500_v62 }
0x295a   :  { %6350 = vtanh.f32 %v2503_v27  ;;  %v5248_v3 = vmul.f32 -1.442695, %v2503_v27 }
0x295c   :  { %6352 = vpow2.f32 %v5248_v3 }
0x2967   :  { %v6351_v28 = vpop.eup %6350 }
0x2968   :  { %2516 = vrot.lane.b32.xlu0 %v6351_v28, %s6498_s30 }
0x2969   :  { %v6353_v4 = vpop.eup %6352 }
0x296a   :  { %v2507_v52 = vadd.f32 1.0, %v6353_v4 }
0x296c   :  { %6354 = vrcp.f32 %v2507_v52 }
0x2979   :  { %v6355_v30 = vpop.eup %6354 }
0x297a   :  { %v2514_v13 = vmul.f32 %v6355_v30, %v2512_v31 }
0x29da   :  { %v2517_v8 = vpop.permute.xlu0 %2516 }
0x29db   :  { %v2519_v9 = vmul.f32 %v6355_v30, %v2517_v8 }
0x29dd   :  { %2521 = vrot.lane.b32.xlu1 %v2519_v9, %s6498_s30 }
0x2a4f   :  { %v2522_v14 = vpop.permute.xlu1 %2521 }
0x2a50   :  { %v7128_v15 = vadd.f32 %v2522_v14, %v2514_v13 }
0x2a52   :  { %6356 = vtanh.f32 %v7128_v15 }
0x2a5f   :  { %v6357_v18 = vpop.eup %6356 }
0x2a60   :  { %2527 = vrot.lane.b32.xlu0 %v6357_v18, %s6498_s30 }
0x2ad2   :  { %v2528_v19 = vpop.permute.xlu0 %2527 }
0x2ad3   :  { %v2530_v20 = vmul.f32 %v6355_v30, %v2528_v19 }
0x2ad5   :  { %2602 = vrot.lane.b32.xlu1 %v2530_v20, %s6499_s5 }
0x2b47   :  { %v2603_v21 = vpop.permute.xlu1 %2602 }
0x2b48   :  { %5897 = vmatmul.mubr.msk.f32.vlgmr.msra.gmra.mxu0 %vm130_vm3, %v2603_v21  ;;  %5908 = vmatmul.mubr.msk.f32.vlgmr.msra.gmra.mxu1 %vm130_vm3, %v2603_v21 }
0x2b49   :  { %5911 = vmatpush3.msra.mxu0 %v7048_v41  ;;  %5922 = vmatpush3.msra.mxu1 %v7053_v50 }
0x2b4a   :  { %5912 = vmatprep.subr.mxu0 %v6496_v0  ;;  %5923 = vmatprep.subr.mxu1 %v6496_v0 }
0x2b4b   :  { %5913 = vmatpush3.msra.mxu0 %v7058_v51  ;;  %5924 = vmatpush3.msra.mxu1 %v7065_v53 }
0x2b4c   :  { %5914 = vmatprep.subr.mxu0 %v6496_v0  ;;  %5925 = vmatprep.subr.mxu1 %v6496_v0 }
0x2b4d   :  { %5915 = vmatpush3.msra.mxu0 %v7072_v54  ;;  %5926 = vmatpush3.msra.mxu1 %v7077_v5 }
0x2b4e   :  { %5916 = vmatprep.subr.mxu0 %v6496_v0  ;;  %5927 = vmatprep.subr.mxu1 %v6496_v0 }
0x2b4f   :  { %5917 = vmatpush3.msra.mxu0 %v7086_v57  ;;  %5918 = vmatprep.mubr.msk.f32.mxu0 %vm6497_vm2, %v6496_v0 }
0x2b50   :  { %5928 = vmatpush3.msra.mxu1 %v7091_v6  ;;  %5929 = vmatprep.mubr.msk.f32.mxu1 %vm6497_vm2, %v6496_v0 }
0x2b51   :  { %5932 = vmatprep.subr.mxu0 %v6496_v0  ;;  %5943 = vmatprep.subr.mxu1 %v6496_v0 }
0x2c08   :  { %v2672_v23 = vpop.f32.mrf.mxu0  ;;  %v2767_v25 = vpop.f32.mrf.mxu1 }
0x2c09   :  { %v2673_v34 = vadd.f32 %v2672_v23, %v7122_v61 }
0x2c0a   :  { %v5898_v35 = vpop.f32.mrf.mxu0  ;;  %v5909_v36 = vpop.f32.mrf.mxu1 }
0x2c0b   :  { %v2676_v37 = vadd.f32 %v7186_v22, %v2673_v34 }
0x2c0d   :  { %6358 = vtanh.f32 %v2676_v37  ;;  %v5251_v39 = vmul.f32 -1.442695, %v2676_v37 }
0x2c0f   :  { %6360 = vpow2.f32 %v5251_v39 }
0x2c1a   :  { %v6359_v38 = vpop.eup %6358 }
0x2c1b   :  { %2686 = vrot.lane.b32.xlu0 %v6359_v38, %s6498_s30 }
0x2c1c   :  { %v6361_v40 = vpop.eup %6360 }
0x2c1d   :  { %v2680_v29 = vadd.f32 1.0, %v6361_v40 }
0x2c1f   :  { %6362 = vrcp.f32 %v2680_v29 }
0x2c2c   :  { %v6363_v49 = vpop.eup %6362 }
0x2c2d   :  { %v2684_v43 = vmul.f32 %v6363_v49, %v7042_v48 }
0x2c8d   :  { %v2687_v32 = vpop.permute.xlu0 %2686 }
0x2c8e   :  { %v2689_v42 = vmul.f32 %v6363_v49, %v2687_v32 }
0x2c90   :  { %2691 = vrot.lane.b32.xlu1 %v2689_v42, %s6498_s30 }
0x2d02   :  { %v2692_v44 = vpop.permute.xlu1 %2691 }
0x2d03   :  { %v7193_v45 = vadd.f32 %v2692_v44, %v2684_v43 }
0x2d05   :  { %6364 = vtanh.f32 %v7193_v45 }
0x2d12   :  { %v6365_v46 = vpop.eup %6364 }
0x2d13   :  { %2697 = vrot.lane.b32.xlu0 %v6365_v46, %s6498_s30 }
0x2d85   :  { %v2698_v47 = vpop.permute.xlu0 %2697 }
0x2d86   :  { %v7197_v55 = vmul.f32 %v6363_v49, %v2698_v47 }
0x2d88   :  { %2772 = vrot.lane.b32.xlu1 %v7197_v55, %s6499_s5 }
0x2dfa   :  { %v2773_v58 = vpop.permute.xlu1 %2772 }
0x2dfb   :  { %5919 = vmatmul.mubr.msk.f32.vlgmr.msra.gmra.mxu0 %vm130_vm3, %v2773_v58  ;;  %5930 = vmatmul.mubr.msk.f32.vlgmr.msra.gmra.mxu1 %vm130_vm3, %v2773_v58 }
0x2dfc   :  { %5933 = vmatpush3.msra.mxu0 %v7134_v16  ;;  %5944 = vmatpush3.msra.mxu1 %v7008_v24 }
0x2dfd   :  { %5934 = vmatprep.subr.mxu0 %v6496_v0  ;;  %5945 = vmatprep.subr.mxu1 %v6496_v0 }
0x2dfe   :  { %5935 = vmatpush3.msra.mxu0 %v7139_v56  ;;  %5946 = vmatpush3.msra.mxu1 %v7014_v12 }
0x2dff   :  { %5936 = vmatprep.subr.mxu0 %v6496_v0  ;;  %5947 = vmatprep.subr.mxu1 %v6496_v0 }
0x2e00   :  { %5937 = vmatpush3.msra.mxu0 %v7146_v1  ;;  %5948 = vmatpush3.msra.mxu1 %v7023_v33 }
0x2e01   :  { %5938 = vmatprep.subr.mxu0 %v6496_v0  ;;  %5949 = vmatprep.subr.mxu1 %v6496_v0 }
0x2e02   :  { %5939 = vmatpush3.msra.mxu0 %v7153_v17  ;;  %5940 = vmatprep.mubr.msk.f32.mxu0 %vm6497_vm2, %v6496_v0 }
0x2e03   :  { %5950 = vmatpush3.msra.mxu1 %v7030_v2  ;;  %5951 = vmatprep.mubr.msk.f32.mxu1 %vm6497_vm2, %v6496_v0 }
0x2e04   :  { %5954 = vmatprep.subr.mxu0 %v6496_v0  ;;  %5965 = vmatprep.subr.mxu1 %v6496_v0 }
0x2ebb   :  { %v2842_v48 = vpop.f32.mrf.mxu0  ;;  %v2937_v11 = vpop.f32.mrf.mxu1 }
0x2ebc   :  { %v2843_v59 = vadd.f32 %v2842_v48, %v2767_v25 }
0x2ebd   :  { %v5920_v7 = vpop.f32.mrf.mxu0  ;;  %v5931_v60 = vpop.f32.mrf.mxu1 }
0x2ebe   :  { %v2846_v61 = vadd.f32 %v7120_v10, %v2843_v59 }
0x2ec0   :  { %6366 = vtanh.f32 %v2846_v61  ;;  %v5254_v63 = vmul.f32 -1.442695, %v2846_v61 }
0x2ec2   :  { %6368 = vpow2.f32 %v5254_v63 }
0x2ecd   :  { %v6367_v62 = vpop.eup %6366 }
0x2ece   :  { %2856 = vrot.lane.b32.xlu0 %v6367_v62, %s6498_s30 }
0x2ecf   :  { %v6369_v26 = vpop.eup %6368 }
0x2ed0   :  { %v2850_v27 = vadd.f32 1.0, %v6369_v26 }
0x2ed2   :  { %6370 = vrcp.f32 %v2850_v27 }
0x2edf   :  { %v6371_v28 = vpop.eup %6370 }
0x2ee0   :  { %v2854_v52 = vmul.f32 %v6371_v28, %v7128_v15 }
0x2f40   :  { %v2857_v3 = vpop.permute.xlu0 %2856 }
0x2f41   :  { %v2859_v4 = vmul.f32 %v6371_v28, %v2857_v3 }
0x2f43   :  { %2861 = vrot.lane.b32.xlu1 %v2859_v4, %s6498_s30 }
0x2fb5   :  { %v2862_v30 = vpop.permute.xlu1 %2861 }
0x2fb6   :  { %v7227_v8 = vadd.f32 %v2862_v30, %v2854_v52 }
0x2fb8   :  { %6372 = vtanh.f32 %v7227_v8 }
0x2fc5   :  { %v6373_v9 = vpop.eup %6372 }
0x2fc6   :  { %2867 = vrot.lane.b32.xlu0 %v6373_v9, %s6498_s30 }
0x3038   :  { %v2868_v31 = vpop.permute.xlu0 %2867 }
0x3039   :  { %v2870_v13 = vmul.f32 %v6371_v28, %v2868_v31 }
0x303b   :  { %2942 = vrot.lane.b32.xlu1 %v2870_v13, %s6499_s5 }
0x30ad   :  { %v2943_v14 = vpop.permute.xlu1 %2942 }
0x30ae   :  { %5941 = vmatmul.mubr.msk.f32.vlgmr.msra.gmra.mxu0 %vm130_vm3, %v2943_v14  ;;  %5952 = vmatmul.mubr.msk.f32.vlgmr.msra.gmra.mxu1 %vm130_vm3, %v2943_v14 }
0x30af   :  { %5955 = vmatpush3.msra.mxu0 %v7048_v41  ;;  %5966 = vmatpush3.msra.mxu1 %v7053_v50 }
0x30b0   :  { %5956 = vmatprep.subr.mxu0 %v6496_v0  ;;  %5967 = vmatprep.subr.mxu1 %v6496_v0 }
0x30b1   :  { %5957 = vmatpush3.msra.mxu0 %v7058_v51  ;;  %5968 = vmatpush3.msra.mxu1 %v7065_v53 }
0x30b2   :  { %5958 = vmatprep.subr.mxu0 %v6496_v0  ;;  %5969 = vmatprep.subr.mxu1 %v6496_v0 }
0x30b3   :  { %5959 = vmatpush3.msra.mxu0 %v7072_v54  ;;  %5970 = vmatpush3.msra.mxu1 %v7077_v5 }
0x30b4   :  { %5960 = vmatprep.subr.mxu0 %v6496_v0  ;;  %5971 = vmatprep.subr.mxu1 %v6496_v0 }
0x30b5   :  { %5961 = vmatpush3.msra.mxu0 %v7086_v57  ;;  %5962 = vmatprep.mubr.msk.f32.mxu0 %vm6497_vm2, %v6496_v0 }
0x30b6   :  { %5972 = vmatpush3.msra.mxu1 %v7091_v6  ;;  %5973 = vmatprep.mubr.msk.f32.mxu1 %vm6497_vm2, %v6496_v0 }
0x30b7   :  { %5976 = vmatprep.subr.mxu0 %v6496_v0  ;;  %5987 = vmatprep.subr.mxu1 %v6496_v0 }
0x316e   :  { %v3012_v15 = vpop.f32.mrf.mxu0  ;;  %v3107_v18 = vpop.f32.mrf.mxu1 }
0x316f   :  { %v3013_v19 = vadd.f32 %v3012_v15, %v2937_v11 }
0x3170   :  { %v5942_v20 = vpop.f32.mrf.mxu0  ;;  %v5953_v21 = vpop.f32.mrf.mxu1 }
0x3171   :  { %v3016_v23 = vadd.f32 %v7186_v22, %v3013_v19 }
0x3173   :  { %6374 = vtanh.f32 %v3016_v23  ;;  %v5257_v34 = vmul.f32 -1.442695, %v3016_v23 }
0x3175   :  { %6376 = vpow2.f32 %v5257_v34 }
0x3180   :  { %v6375_v25 = vpop.eup %6374 }
0x3181   :  { %3026 = vrot.lane.b32.xlu0 %v6375_v25, %s6498_s30 }
0x3182   :  { %v6377_v35 = vpop.eup %6376 }
0x3183   :  { %v3020_v36 = vadd.f32 1.0, %v6377_v35 }
0x3185   :  { %6378 = vrcp.f32 %v3020_v36 }
0x3192   :  { %v6379_v37 = vpop.eup %6378 }
0x3193   :  { %v3024_v40 = vmul.f32 %v6379_v37, %v7193_v45 }
0x31f3   :  { %v3027_v38 = vpop.permute.xlu0 %3026 }
0x31f4   :  { %v3029_v39 = vmul.f32 %v6379_v37, %v3027_v38 }
0x31f6   :  { %3031 = vrot.lane.b32.xlu1 %v3029_v39, %s6498_s30 }
0x3268   :  { %v3032_v29 = vpop.permute.xlu1 %3031 }
0x3269   :  { %v7258_v49 = vadd.f32 %v3032_v29, %v3024_v40 }
0x326b   :  { %6380 = vtanh.f32 %v7258_v49 }
0x3278   :  { %v6381_v32 = vpop.eup %6380 }
0x3279   :  { %3037 = vrot.lane.b32.xlu0 %v6381_v32, %s6498_s30 }
0x32eb   :  { %v3038_v42 = vpop.permute.xlu0 %3037 }
0x32ec   :  { %v7262_v43 = vmul.f32 %v6379_v37, %v3038_v42 }
0x32ee   :  { %3112 = vrot.lane.b32.xlu1 %v7262_v43, %s6499_s5 }
0x3360   :  { %v3113_v44 = vpop.permute.xlu1 %3112 }
0x3361   :  { %5963 = vmatmul.mubr.msk.f32.vlgmr.msra.gmra.mxu0 %vm130_vm3, %v3113_v44  ;;  %5974 = vmatmul.mubr.msk.f32.vlgmr.msra.gmra.mxu1 %vm130_vm3, %v3113_v44 }
0x3362   :  { %5977 = vmatpush3.msra.mxu0 %v7134_v16  ;;  %5988 = vmatpush3.msra.mxu1 %v7008_v24 }
0x3363   :  { %5978 = vmatprep.subr.mxu0 %v6496_v0  ;;  %5989 = vmatprep.subr.mxu1 %v6496_v0 }
0x3364   :  { %5979 = vmatpush3.msra.mxu0 %v7139_v56  ;;  %5990 = vmatpush3.msra.mxu1 %v7014_v12 }
0x3365   :  { %5980 = vmatprep.subr.mxu0 %v6496_v0  ;;  %5991 = vmatprep.subr.mxu1 %v6496_v0 }
0x3366   :  { %5981 = vmatpush3.msra.mxu0 %v7146_v1  ;;  %5992 = vmatpush3.msra.mxu1 %v7023_v33 }
0x3367   :  { %5982 = vmatprep.subr.mxu0 %v6496_v0  ;;  %5993 = vmatprep.subr.mxu1 %v6496_v0 }
0x3368   :  { %5983 = vmatpush3.msra.mxu0 %v7153_v17  ;;  %5984 = vmatprep.mubr.msk.f32.mxu0 %vm6497_vm2, %v6496_v0 }
0x3369   :  { %5994 = vmatpush3.msra.mxu1 %v7030_v2  ;;  %5995 = vmatprep.mubr.msk.f32.mxu1 %vm6497_vm2, %v6496_v0 }
0x336a   :  { %5998 = vmatprep.subr.mxu0 %v6496_v0  ;;  %6009 = vmatprep.subr.mxu1 %v6496_v0 }
0x3421   :  { %v3182_v45 = vpop.f32.mrf.mxu0  ;;  %v3277_v46 = vpop.f32.mrf.mxu1 }
0x3422   :  { %v3183_v47 = vadd.f32 %v3182_v45, %v3107_v18 }
0x3423   :  { %v5964_v58 = vpop.f32.mrf.mxu0  ;;  %v5975_v48 = vpop.f32.mrf.mxu1 }
0x3424   :  { %v3186_v11 = vadd.f32 %v7120_v10, %v3183_v47 }
0x3426   :  { %6382 = vtanh.f32 %v3186_v11  ;;  %v5260_v7 = vmul.f32 -1.442695, %v3186_v11 }
0x3428   :  { %6384 = vpow2.f32 %v5260_v7 }
0x3433   :  { %v6383_v59 = vpop.eup %6382 }
0x3434   :  { %3196 = vrot.lane.b32.xlu0 %v6383_v59, %s6498_s30 }
0x3435   :  { %v6385_v60 = vpop.eup %6384 }
0x3436   :  { %v3190_v61 = vadd.f32 1.0, %v6385_v60 }
0x3438   :  { %6386 = vrcp.f32 %v3190_v61 }
0x3445   :  { %v6387_v62 = vpop.eup %6386 }
0x3446   :  { %v3194_v27 = vmul.f32 %v6387_v62, %v7227_v8 }
0x34a6   :  { %v3197_v63 = vpop.permute.xlu0 %3196 }
0x34a7   :  { %v3199_v26 = vmul.f32 %v6387_v62, %v3197_v63 }
0x34a9   :  { %3201 = vrot.lane.b32.xlu1 %v3199_v26, %s6498_s30 }
0x351b   :  { %v3202_v28 = vpop.permute.xlu1 %3201 }
0x351c   :  { %v7292_v3 = vadd.f32 %v3202_v28, %v3194_v27 }
0x351e   :  { %6388 = vtanh.f32 %v7292_v3 }
0x352b   :  { %v6389_v4 = vpop.eup %6388 }
0x352c   :  { %3207 = vrot.lane.b32.xlu0 %v6389_v4, %s6498_s30 }
0x359e   :  { %v3208_v52 = vpop.permute.xlu0 %3207 }
0x359f   :  { %v3210_v30 = vmul.f32 %v6387_v62, %v3208_v52 }
0x35a1   :  { %3282 = vrot.lane.b32.xlu1 %v3210_v30, %s6499_s5 }
0x3613   :  { %v3283_v9 = vpop.permute.xlu1 %3282 }
0x3614   :  { %5985 = vmatmul.mubr.msk.f32.vlgmr.msra.gmra.mxu0 %vm130_vm3, %v3283_v9  ;;  %5996 = vmatmul.mubr.msk.f32.vlgmr.msra.gmra.mxu1 %vm130_vm3, %v3283_v9 }
0x3615   :  { %5999 = vmatpush3.msra.mxu0 %v7048_v41  ;;  %6010 = vmatpush3.msra.mxu1 %v7053_v50 }
0x3616   :  { %6000 = vmatprep.subr.mxu0 %v6496_v0  ;;  %6011 = vmatprep.subr.mxu1 %v6496_v0 }
0x3617   :  { %6001 = vmatpush3.msra.mxu0 %v7058_v51  ;;  %6012 = vmatpush3.msra.mxu1 %v7065_v53 }
0x3618   :  { %6002 = vmatprep.subr.mxu0 %v6496_v0  ;;  %6013 = vmatprep.subr.mxu1 %v6496_v0 }
0x3619   :  { %6003 = vmatpush3.msra.mxu0 %v7072_v54  ;;  %6014 = vmatpush3.msra.mxu1 %v7077_v5 }
0x361a   :  { %6004 = vmatprep.subr.mxu0 %v6496_v0  ;;  %6015 = vmatprep.subr.mxu1 %v6496_v0 }
0x361b   :  { %6005 = vmatpush3.msra.mxu0 %v7086_v57  ;;  %6006 = vmatprep.mubr.msk.f32.mxu0 %vm6497_vm2, %v6496_v0 }
0x361c   :  { %6016 = vmatpush3.msra.mxu1 %v7091_v6  ;;  %6017 = vmatprep.mubr.msk.f32.mxu1 %vm6497_vm2, %v6496_v0 }
0x361d   :  { %6020 = vmatprep.subr.mxu0 %v6496_v0  ;;  %6031 = vmatprep.subr.mxu1 %v6496_v0 }
0x36d4   :  { %v3352_v8 = vpop.f32.mrf.mxu0  ;;  %v3447_v31 = vpop.f32.mrf.mxu1 }
0x36d5   :  { %v3353_v13 = vadd.f32 %v3352_v8, %v3277_v46 }
0x36d6   :  { %v5986_v14 = vpop.f32.mrf.mxu0  ;;  %v5997_v15 = vpop.f32.mrf.mxu1 }
0x36d7   :  { %v3356_v18 = vadd.f32 %v7186_v22, %v3353_v13 }
0x36d9   :  { %6390 = vtanh.f32 %v3356_v18  ;;  %v5263_v20 = vmul.f32 -1.442695, %v3356_v18 }
0x36db   :  { %6392 = vpow2.f32 %v5263_v20 }
0x36e6   :  { %v6391_v19 = vpop.eup %6390 }
0x36e7   :  { %3366 = vrot.lane.b32.xlu0 %v6391_v19, %s6498_s30 }
0x36e8   :  { %v6393_v21 = vpop.eup %6392 }
0x36e9   :  { %v3360_v23 = vadd.f32 1.0, %v6393_v21 }
0x36eb   :  { %6394 = vrcp.f32 %v3360_v23 }
0x36f8   :  { %v6395_v25 = vpop.eup %6394 }
0x36f9   :  { %v3364_v36 = vmul.f32 %v6395_v25, %v7258_v49 }
0x3759   :  { %v3367_v34 = vpop.permute.xlu0 %3366 }
0x375a   :  { %v3369_v35 = vmul.f32 %v6395_v25, %v3367_v34 }
0x375c   :  { %3371 = vrot.lane.b32.xlu1 %v3369_v35, %s6498_s30 }
0x37ce   :  { %v3372_v37 = vpop.permute.xlu1 %3371 }
0x37cf   :  { %v7323_v38 = vadd.f32 %v3372_v37, %v3364_v36 }
0x37d1   :  { %6396 = vtanh.f32 %v7323_v38 }
0x37de   :  { %v6397_v39 = vpop.eup %6396 }
0x37df   :  { %3377 = vrot.lane.b32.xlu0 %v6397_v39, %s6498_s30 }
0x3851   :  { %v3378_v40 = vpop.permute.xlu0 %3377 }
0x3852   :  { %v7327_v29 = vmul.f32 %v6395_v25, %v3378_v40 }
0x3854   :  { %3452 = vrot.lane.b32.xlu1 %v7327_v29, %s6499_s5  ;;  %v5087_v39 = vrot.slane %v7327_v29, 6 }
0x38c6   :  { %v3453_v32 = vpop.permute.xlu1 %3452 }
0x38c7   :  { %6007 = vmatmul.mubr.msk.f32.vlgmr.msra.gmra.mxu0 %vm130_vm3, %v3453_v32  ;;  %6018 = vmatmul.mubr.msk.f32.vlgmr.msra.gmra.mxu1 %vm130_vm3, %v3453_v32  ;;  %v5089_v32 = vrot.slane %v7262_v43, 4 }
0x38c8   :  { %6021 = vmatpush3.msra.mxu0 %v7134_v16  ;;  %6032 = vmatpush3.msra.mxu1 %v7008_v24 }
0x38c9   :  { %6022 = vmatprep.subr.mxu0 %v6496_v0  ;;  %6033 = vmatprep.subr.mxu1 %v6496_v0 }
0x38ca   :  { %6023 = vmatpush3.msra.mxu0 %v7139_v56  ;;  %6034 = vmatpush3.msra.mxu1 %v7014_v12 }
0x38cb   :  { %6024 = vmatprep.subr.mxu0 %v6496_v0  ;;  %6035 = vmatprep.subr.mxu1 %v6496_v0 }
0x38cc   :  { %6025 = vmatpush3.msra.mxu0 %v7146_v1  ;;  %6036 = vmatpush3.msra.mxu1 %v7023_v33 }
0x38cd   :  { %6026 = vmatprep.subr.mxu0 %v6496_v0  ;;  %6037 = vmatprep.subr.mxu1 %v6496_v0 }
0x38ce   :  { %6027 = vmatpush3.msra.mxu0 %v7153_v17  ;;  %6028 = vmatprep.mubr.msk.f32.mxu0 %vm6497_vm2, %v6496_v0 }
0x38cf   :  { %6038 = vmatpush3.msra.mxu1 %v7030_v2  ;;  %6039 = vmatprep.mubr.msk.f32.mxu1 %vm6497_vm2, %v6496_v0 }
0x38d0   :  { %6042 = vmatprep.subr.mxu0 %v6496_v0  ;;  %6053 = vmatprep.subr.mxu1 %v6496_v0 }
0x3987   :  { %v3522_v49 = vpop.f32.mrf.mxu0  ;;  %v3617_v42 = vpop.f32.mrf.mxu1 }
0x3988   :  { %v3523_v44 = vadd.f32 %v3522_v49, %v3447_v31  ;;  %v5091_v49 = vrot.slane %v7197_v55, 2 }
0x3989   :  { %v6008_v45 = vpop.f32.mrf.mxu0  ;;  %v6019_v46 = vpop.f32.mrf.mxu1 }
0x398a   :  { %v3526_v47 = vadd.f32 %v7120_v10, %v3523_v44 }
0x398c   :  { %6398 = vtanh.f32 %v3526_v47  ;;  %v5266_v48 = vmul.f32 -1.442695, %v3526_v47 }
0x398e   :  { %6400 = vpow2.f32 %v5266_v48 }
0x3999   :  { %v6399_v58 = vpop.eup %6398 }
0x399a   :  { %3536 = vrot.lane.b32.xlu0 %v6399_v58, %s6498_s30 }
0x399b   :  { %v6401_v11 = vpop.eup %6400 }
0x399c   :  { %v3530_v59 = vadd.f32 1.0, %v6401_v11 }
0x399e   :  { %6402 = vrcp.f32 %v3530_v59 }
0x39ab   :  { %v6403_v7 = vpop.eup %6402 }
0x39ac   :  { %v3534_v62 = vmul.f32 %v6403_v7, %v7292_v3 }
0x3a0c   :  { %v3537_v60 = vpop.permute.xlu0 %3536 }
0x3a0d   :  { %v3539_v61 = vmul.f32 %v6403_v7, %v3537_v60 }
0x3a0f   :  { %3541 = vrot.lane.b32.xlu1 %v3539_v61, %s6498_s30 }
0x3a81   :  { %v3542_v63 = vpop.permute.xlu1 %3541 }
0x3a82   :  { %v7357_v26 = vadd.f32 %v3542_v63, %v3534_v62 }
0x3a84   :  { %6404 = vtanh.f32 %v7357_v26 }
0x3a91   :  { %v6405_v27 = vpop.eup %6404 }
0x3a92   :  { %3547 = vrot.lane.b32.xlu0 %v6405_v27, %s6498_s30 }
0x3b04   :  { %v3548_v28 = vpop.permute.xlu0 %3547 }
0x3b05   :  { %v3550_v4 = vmul.f32 %v6403_v7, %v3548_v28 }
0x3b07   :  { %3622 = vrot.lane.b32.xlu1 %v3550_v4, %s6499_s5 }
0x3b79   :  { %v3623_v52 = vpop.permute.xlu1 %3622 }
0x3b7a   :  { %6029 = vmatmul.mubr.msk.f32.vlgmr.msra.gmra.mxu0 %vm130_vm3, %v3623_v52  ;;  %6040 = vmatmul.mubr.msk.f32.vlgmr.msra.gmra.mxu1 %vm130_vm3, %v3623_v52 }
0x3b7b   :  { %6043 = vmatpush3.msra.mxu0 %v7048_v41  ;;  %6054 = vmatpush3.msra.mxu1 %v7053_v50 }
0x3b7c   :  { %6044 = vmatprep.subr.mxu0 %v6496_v0  ;;  %6055 = vmatprep.subr.mxu1 %v6496_v0 }
0x3b7d   :  { %6045 = vmatpush3.msra.mxu0 %v7058_v51  ;;  %6056 = vmatpush3.msra.mxu1 %v7065_v53 }
0x3b7e   :  { %6046 = vmatprep.subr.mxu0 %v6496_v0  ;;  %6057 = vmatprep.subr.mxu1 %v6496_v0 }
0x3b7f   :  { %6047 = vmatpush3.msra.mxu0 %v7072_v54  ;;  %6058 = vmatpush3.msra.mxu1 %v7077_v5 }
0x3b80   :  { %6048 = vmatprep.subr.mxu0 %v6496_v0  ;;  %6059 = vmatprep.subr.mxu1 %v6496_v0 }
0x3b81   :  { %6049 = vmatpush3.msra.mxu0 %v7086_v57  ;;  %6050 = vmatprep.mubr.msk.f32.mxu0 %vm6497_vm2, %v6496_v0 }
0x3b82   :  { %6060 = vmatpush3.msra.mxu1 %v7091_v6  ;;  %6061 = vmatprep.mubr.msk.f32.mxu1 %vm6497_vm2, %v6496_v0 }
0x3b83   :  { %6064 = vmatprep.subr.mxu0 %v6496_v0  ;;  %6075 = vmatprep.subr.mxu1 %v6496_v0 }
0x3c3a   :  { %v3692_v3 = vpop.f32.mrf.mxu0  ;;  %v3787_v30 = vpop.f32.mrf.mxu1 }
0x3c3b   :  { %v3693_v9 = vadd.f32 %v3692_v3, %v3617_v42 }
0x3c3c   :  { %v6030_v8 = vpop.f32.mrf.mxu0  ;;  %v6041_v31 = vpop.f32.mrf.mxu1 }
0x3c3d   :  { %v3696_v13 = vadd.f32 %v7186_v22, %v3693_v9 }
0x3c3f   :  { %6406 = vtanh.f32 %v3696_v13  ;;  %v5269_v15 = vmul.f32 -1.442695, %v3696_v13 }
0x3c41   :  { %6408 = vpow2.f32 %v5269_v15 }
0x3c4c   :  { %v6407_v14 = vpop.eup %6406 }
0x3c4d   :  { %3706 = vrot.lane.b32.xlu0 %v6407_v14, %s6498_s30 }
0x3c4e   :  { %v6409_v18 = vpop.eup %6408 }
0x3c4f   :  { %v3700_v19 = vadd.f32 1.0, %v6409_v18 }
0x3c51   :  { %6410 = vrcp.f32 %v3700_v19  ;;  %v7472_v19 = vld [vmem:[%s7742_s1 + $0xa0] sm:$0xff] }
0x3c5e   :  { %v6411_v20 = vpop.eup %6410 }
0x3c5f   :  { %v3704_v25 = vmul.f32 %v6411_v20, %v7323_v38 }
0x3cbf   :  { %v3707_v21 = vpop.permute.xlu0 %3706 }
0x3cc0   :  { %v3709_v23 = vmul.f32 %v6411_v20, %v3707_v21 }
0x3cc2   :  { %3711 = vrot.lane.b32.xlu1 %v3709_v23, %s6498_s30 }
0x3d34   :  { %v3712_v34 = vpop.permute.xlu1 %3711 }
0x3d35   :  { %v7388_v35 = vadd.f32 %v3712_v34, %v3704_v25 }
0x3d37   :  { %6412 = vtanh.f32 %v7388_v35 }
0x3d44   :  { %v6413_v36 = vpop.eup %6412 }
0x3d45   :  { %3717 = vrot.lane.b32.xlu0 %v6413_v36, %s6498_s30 }
0x3db7   :  { %v3718_v37 = vpop.permute.xlu0 %3717 }
0x3db8   :  { %v3720_v40 = vmul.f32 %v6411_v20, %v3718_v37  ;;  %v7481_v20 = vld [vmem:[%s7742_s1 + $0x98] sm:$0xff] }
0x3dba   :  { %v5098_v38 = vsel %vm5093_vm4, %v3720_v40, %v5087_v39  ;;  %3792 = vrot.lane.b32.xlu1 %v3720_v40, %s6499_s5 }
0x3dbb   :  { %v5099_v42 = vsel %vm51_vm0, %v5098_v38, %v5089_v32 }
0x3dbc   :  { %v7399_v44 = vsel %vm5096_vm5, %v5099_v42, %v5091_v49 }
0x3e2c   :  { %v3793_v45 = vpop.permute.xlu1 %3792 }
0x3e2d   :  { %6051 = vmatmul.mubr.msk.f32.vlgmr.msra.gmra.mxu0 %vm130_vm3, %v3793_v45  ;;  %6062 = vmatmul.mubr.msk.f32.vlgmr.msra.gmra.mxu1 %vm130_vm3, %v3793_v45 }
0x3e2e   :  { %6065 = vmatpush3.msra.mxu0 %v7134_v16  ;;  %6076 = vmatpush3.msra.mxu1 %v7008_v24 }
0x3e2f   :  { %6066 = vmatprep.subr.mxu0 %v6496_v0  ;;  %6077 = vmatprep.subr.mxu1 %v6496_v0 }
0x3e30   :  { %6067 = vmatpush3.msra.mxu0 %v7139_v56  ;;  %6078 = vmatpush3.msra.mxu1 %v7014_v12 }
0x3e31   :  { %6068 = vmatprep.subr.mxu0 %v6496_v0  ;;  %6079 = vmatprep.subr.mxu1 %v6496_v0 }
0x3e32   :  { %6069 = vmatpush3.msra.mxu0 %v7146_v1  ;;  %6080 = vmatpush3.msra.mxu1 %v7023_v33 }
0x3e33   :  { %6070 = vmatprep.subr.mxu0 %v6496_v0  ;;  %6081 = vmatprep.subr.mxu1 %v6496_v0 }
0x3e34   :  { %6071 = vmatpush3.msra.mxu0 %v7153_v17  ;;  %6072 = vmatprep.mubr.msk.f32.mxu0 %vm6497_vm2, %v6496_v0 }
0x3e35   :  { %6082 = vmatpush3.msra.mxu1 %v7030_v2  ;;  %6083 = vmatprep.mubr.msk.f32.mxu1 %vm6497_vm2, %v6496_v0 }
0x3e36   :  { %6086 = vmatprep.subr.mxu0 %v6496_v0  ;;  %6097 = vmatprep.subr.mxu1 %v6496_v0 }
0x3eed   :  { %v3862_v24 = vpop.f32.mrf.mxu0  ;;  %v3957_v12 = vpop.f32.mrf.mxu1 }
0x3eee   :  { %v3863_v33 = vadd.f32 %v3862_v24, %v3787_v30 }
0x3eef   :  { %v6052_v55 = vpop.f32.mrf.mxu0  ;;  %v6063_v43 = vpop.f32.mrf.mxu1 }
0x3ef0   :  { %v3866_v29 = vadd.f32 %v7120_v10, %v3863_v33  ;;  %v7522_v55 = vld [vmem:[%s7742_s1 + $0x80] sm:$0xff] }
0x3ef1   :  { %v7528_v43 = vld [vmem:[%s7742_s1 + $0xe0] sm:$0xff] }
0x3ef2   :  { %6414 = vtanh.f32 %v3866_v29  ;;  %v5272_v47 = vmul.f32 -1.442695, %v3866_v29  ;;  %v7536_v29 = vld [vmem:[%s7742_s1 + $0x78] sm:$0xff] }
0x3ef4   :  { %6416 = vpow2.f32 %v5272_v47  ;;  %v7550_v47 = vld [vmem:[%s7742_s1 + $0x70] sm:$0xff] }
0x3eff   :  { %v6415_v46 = vpop.eup %6414 }
0x3f00   :  { %3876 = vrot.lane.b32.xlu0 %v6415_v46, %s6498_s30  ;;  %v7542_v46 = vld [vmem:[%s7742_s1 + $0xd8] sm:$0xff] }
0x3f01   :  { %v6417_v2 = vpop.eup %6416 }
0x3f02   :  { %v3870_v58 = vadd.f32 1.0, %v6417_v2  ;;  %v7556_v2 = vld [vmem:[%s7742_s1 + $0xd0] sm:$0xff] }
0x3f04   :  { %6418 = vrcp.f32 %v3870_v58  ;;  %v7564_v58 = vld [vmem:[%s7742_s1 + $0x68] sm:$0xff] }
0x3f11   :  { %v6419_v48 = vpop.eup %6418 }
0x3f12   :  { %v3874_v7 = vmul.f32 %v6419_v48, %v7357_v26 }
0x3f72   :  { %v3877_v11 = vpop.permute.xlu0 %3876 }
0x3f73   :  { %v3879_v59 = vmul.f32 %v6419_v48, %v3877_v11 }
0x3f75   :  { %3881 = vrot.lane.b32.xlu1 %v3879_v59, %s6498_s30 }
0x3fe7   :  { %v3882_v60 = vpop.permute.xlu1 %3881 }
0x3fe8   :  { %v7427_v61 = vadd.f32 %v3882_v60, %v3874_v7 }
0x3fea   :  { %6420 = vtanh.f32 %v7427_v61 }
0x3ff7   :  { %v6421_v62 = vpop.eup %6420 }
0x3ff8   :  { %3887 = vrot.lane.b32.xlu0 %v6421_v62, %s6498_s30 }
0x406a   :  { %v3888_v63 = vpop.permute.xlu0 %3887 }
0x406b   :  { %v3890_v27 = vmul.f32 %v6419_v48, %v3888_v63  ;;  %v7572_v48 = vld [vmem:[%s7742_s1 + $0xc8] sm:$0xff] }
0x406d   :  { %3962 = vrot.lane.b32.xlu1 %v3890_v27, %s6499_s5 }
0x40df   :  { %v3963_v28 = vpop.permute.xlu1 %3962 }
0x40e0   :  { %6073 = vmatmul.mubr.msk.f32.vlgmr.msra.gmra.mxu0 %vm130_vm3, %v3963_v28  ;;  %6084 = vmatmul.mubr.msk.f32.vlgmr.msra.gmra.mxu1 %vm130_vm3, %v3963_v28 }
0x40e1   :  { %6087 = vmatpush3.msra.mxu0 %v7048_v41  ;;  %6098 = vmatpush3.msra.mxu1 %v7053_v50 }
0x40e2   :  { %6088 = vmatprep.subr.mxu0 %v6496_v0  ;;  %6099 = vmatprep.subr.mxu1 %v6496_v0 }
0x40e3   :  { %6089 = vmatpush3.msra.mxu0 %v7058_v51  ;;  %6100 = vmatpush3.msra.mxu1 %v7065_v53 }
0x40e4   :  { %6090 = vmatprep.subr.mxu0 %v6496_v0  ;;  %6101 = vmatprep.subr.mxu1 %v6496_v0 }
0x40e5   :  { %6091 = vmatpush3.msra.mxu0 %v7072_v54  ;;  %6102 = vmatpush3.msra.mxu1 %v7077_v5 }
0x40e6   :  { %6092 = vmatprep.subr.mxu0 %v6496_v0  ;;  %6103 = vmatprep.subr.mxu1 %v6496_v0 }
0x40e7   :  { %6093 = vmatpush3.msra.mxu0 %v7086_v57  ;;  %6094 = vmatprep.mubr.msk.f32.mxu0 %vm6497_vm2, %v6496_v0 }
0x40e8   :  { %6104 = vmatpush3.msra.mxu1 %v7091_v6  ;;  %6105 = vmatprep.mubr.msk.f32.mxu1 %vm6497_vm2, %v6496_v0 }
0x40e9   :  { %6108 = vmatprep.subr.mxu0 %v6496_v0  ;;  %6119 = vmatprep.subr.mxu1 %v6496_v0 }
0x41a0   :  { %v4032_v41 = vpop.f32.mrf.mxu0  ;;  %v4127_v50 = vpop.f32.mrf.mxu1 }
0x41a1   :  { %v4033_v51 = vadd.f32 %v4032_v41, %v3957_v12 }
0x41a2   :  { %v6074_v53 = vpop.f32.mrf.mxu0  ;;  %v6085_v54 = vpop.f32.mrf.mxu1 }
0x41a3   :  { %v4036_v5 = vadd.f32 %v7186_v22, %v4033_v51 }
0x41a5   :  { %6422 = vtanh.f32 %v4036_v5  ;;  %v5275_v26 = vmul.f32 -1.442695, %v4036_v5 }
0x41a7   :  { %6424 = vpow2.f32 %v5275_v26 }
0x41b2   :  { %v6423_v57 = vpop.eup %6422 }
0x41b3   :  { %4046 = vrot.lane.b32.xlu0 %v6423_v57, %s6498_s30 }
0x41b4   :  { %v6425_v6 = vpop.eup %6424 }
0x41b5   :  { %v4040_v4 = vadd.f32 1.0, %v6425_v6 }
0x41b7   :  { %6426 = vrcp.f32 %v4040_v4 }
0x41c4   :  { %v6427_v52 = vpop.eup %6426 }
0x41c5   :  { %v4044_v9 = vmul.f32 %v6427_v52, %v7388_v35 }
0x4225   :  { %v4047_v3 = vpop.permute.xlu0 %4046 }
0x4226   :  { %v4049_v30 = vmul.f32 %v6427_v52, %v4047_v3  ;;  %v7605_v3 = vld [vmem:[%s7742_s1 + $0xb8] sm:$0xff] }
0x4228   :  { %4051 = vrot.lane.b32.xlu1 %v4049_v30, %s6498_s30  ;;  %v7614_v30 = vld [vmem:[%s7742_s1 + $0xb0] sm:$0xff] }
0x429a   :  { %v4052_v8 = vpop.permute.xlu1 %4051 }
0x429b   :  { %v7458_v31 = vadd.f32 %v4052_v8, %v4044_v9  ;;  %v7623_v9 = vld [vmem:[%s7742_s1 + $0xa8] sm:$0xff] }
0x429d   :  { %6428 = vtanh.f32 %v7458_v31 }
0x42aa   :  { %v6429_v13 = vpop.eup %6428 }
0x42ab   :  { %4057 = vrot.lane.b32.xlu0 %v6429_v13, %s6498_s30 }
0x431d   :  { %v4058_v14 = vpop.permute.xlu0 %4057 }
0x431e   :  { %v7462_v15 = vmul.f32 %v6427_v52, %v4058_v14  ;;  %v7596_v52 = vld [vmem:[%s7742_s1 + $0xc0] sm:$0xff] }
0x4320   :  { %4132 = vrot.lane.b32.xlu1 %v7462_v15, %s6499_s5 }
0x4392   :  { %v4133_v18 = vpop.permute.xlu1 %4132 }
0x4393   :  { %6095 = vmatmul.mubr.msk.f32.vlgmr.msra.gmra.mxu0 %vm130_vm3, %v4133_v18  ;;  %6106 = vmatmul.mubr.msk.f32.vlgmr.msra.gmra.mxu1 %vm130_vm3, %v4133_v18 }
0x4394   :  { %6109 = vmatpush3.msra.mxu0 %v7134_v16  ;;  %6120 = vmatpush3.msra.mxu1 %v7472_v19  ;;  %v7490_v16 = vld [vmem:[%s7742_s1 + $0x90] sm:$0xff] }
0x4395   :  { %6110 = vmatprep.subr.mxu0 %v6496_v0  ;;  %6121 = vmatprep.subr.mxu1 %v6496_v0 }
0x4396   :  { %6111 = vmatpush3.msra.mxu0 %v7139_v56  ;;  %6122 = vmatpush3.msra.mxu1 %v7481_v20  ;;  %v7501_v56 = vld [vmem:[%s7742_s1 + $0x88] sm:$0xff] }
0x4397   :  { %6112 = vmatprep.subr.mxu0 %v6496_v0  ;;  %6123 = vmatprep.subr.mxu1 %v6496_v0 }
0x4398   :  { %6113 = vmatpush3.msra.mxu0 %v7146_v1  ;;  %6124 = vmatpush3.msra.mxu1 %v7490_v16 }
0x4399   :  { %6114 = vmatprep.subr.mxu0 %v6496_v0  ;;  %6125 = vmatprep.subr.mxu1 %v6496_v0 }
0x439a   :  { %6115 = vmatpush3.msra.mxu0 %v7153_v17  ;;  %6116 = vmatprep.mubr.msk.f32.mxu0 %vm6497_vm2, %v6496_v0 }
0x439b   :  { %6126 = vmatpush3.msra.mxu1 %v7501_v56  ;;  %6127 = vmatprep.mubr.msk.f32.mxu1 %vm6497_vm2, %v6496_v0 }
0x439c   :  { %6130 = vmatprep.subr.mxu0 %v6496_v0  ;;  %6141 = vmatprep.subr.mxu1 %v6496_v0 }
0x4453   :  { %v4202_v1 = vpop.f32.mrf.mxu0  ;;  %v4297_v21 = vpop.f32.mrf.mxu1 }
0x4454   :  { %v4203_v17 = vadd.f32 %v4202_v1, %v4127_v50 }
0x4455   :  { %v6096_v23 = vpop.f32.mrf.mxu0  ;;  %v6107_v25 = vpop.f32.mrf.mxu1 }
0x4456   :  { %v4206_v34 = vadd.f32 %v7120_v10, %v4203_v17 }
0x4458   :  { %6430 = vtanh.f32 %v4206_v34  ;;  %v5278_v36 = vmul.f32 -1.442695, %v4206_v34 }
0x445a   :  { %6432 = vpow2.f32 %v5278_v36 }
0x4465   :  { %v6431_v35 = vpop.eup %6430 }
0x4466   :  { %4216 = vrot.lane.b32.xlu0 %v6431_v35, %s6498_s30 }
0x4467   :  { %v6433_v37 = vpop.eup %6432 }
0x4468   :  { %v4210_v39 = vadd.f32 1.0, %v6433_v37 }
0x446a   :  { %6434 = vrcp.f32 %v4210_v39 }
0x4477   :  { %v6435_v40 = vpop.eup %6434 }
0x4478   :  { %v4214_v38 = vmul.f32 %v6435_v40, %v7427_v61 }
0x44d8   :  { %v4217_v32 = vpop.permute.xlu0 %4216 }
0x44d9   :  { %v4219_v49 = vmul.f32 %v6435_v40, %v4217_v32 }
0x44db   :  { %4221 = vrot.lane.b32.xlu1 %v4219_v49, %s6498_s30 }
0x454d   :  { %v4222_v42 = vpop.permute.xlu1 %4221 }
0x454e   :  { %v7512_v45 = vadd.f32 %v4222_v42, %v4214_v38 }
0x4550   :  { %6436 = vtanh.f32 %v7512_v45 }
0x455d   :  { %v6437_v10 = vpop.eup %6436 }
0x455e   :  { %4227 = vrot.lane.b32.xlu0 %v6437_v10, %s6498_s30 }
0x45d0   :  { %v4228_v24 = vpop.permute.xlu0 %4227 }
0x45d1   :  { %v4230_v12 = vmul.f32 %v6435_v40, %v4228_v24  ;;  %v7671_v24 = vld [vmem:[%s7744_s2 + $0x3] ss:$0 sm:$0xff] }
0x45d3   :  { %4302 = vrot.lane.b32.xlu1 %v4230_v12, %s6499_s5 }
0x4645   :  { %v4303_v33 = vpop.permute.xlu1 %4302 }
0x4646   :  { %6117 = vmatmul.mubr.msk.f32.vlgmr.msra.gmra.mxu0 %vm130_vm3, %v4303_v33  ;;  %6128 = vmatmul.mubr.msk.f32.vlgmr.msra.gmra.mxu1 %vm130_vm3, %v4303_v33 }
0x4647   :  { %6131 = vmatpush3.msra.mxu0 %v7522_v55  ;;  %6142 = vmatpush3.msra.mxu1 %v7528_v43 }
0x4648   :  { %6132 = vmatprep.subr.mxu0 %v6496_v0  ;;  %6143 = vmatprep.subr.mxu1 %v6496_v0 }
0x4649   :  { %6133 = vmatpush3.msra.mxu0 %v7536_v29  ;;  %6144 = vmatpush3.msra.mxu1 %v7542_v46 }
0x464a   :  { %6134 = vmatprep.subr.mxu0 %v6496_v0  ;;  %6145 = vmatprep.subr.mxu1 %v6496_v0 }
0x464b   :  { %6135 = vmatpush3.msra.mxu0 %v7550_v47  ;;  %6146 = vmatpush3.msra.mxu1 %v7556_v2 }
0x464c   :  { %6136 = vmatprep.subr.mxu0 %v6496_v0  ;;  %6147 = vmatprep.subr.mxu1 %v6496_v0 }
0x464d   :  { %6137 = vmatpush3.msra.mxu0 %v7564_v58  ;;  %6138 = vmatprep.mubr.msk.f32.mxu0 %vm6497_vm2, %v6496_v0 }
0x464e   :  { %6148 = vmatpush3.msra.mxu1 %v7572_v48  ;;  %6149 = vmatprep.mubr.msk.f32.mxu1 %vm6497_vm2, %v6496_v0 }
0x464f   :  { %6152 = vmatprep.subr.mxu0 %v6496_v0  ;;  %6163 = vmatprep.subr.mxu1 %v6496_v0 }
0x4706   :  { %v4372_v11 = vpop.f32.mrf.mxu0  ;;  %v4467_v59 = vpop.f32.mrf.mxu1 }
0x4707   :  { %v4373_v7 = vadd.f32 %v4372_v11, %v4297_v21 }
0x4708   :  { %v6118_v60 = vpop.f32.mrf.mxu0  ;;  %v6129_v61 = vpop.f32.mrf.mxu1 }
0x4709   :  { %v4376_v62 = vadd.f32 %v7186_v22, %v4373_v7 }
0x470b   :  { %6438 = vtanh.f32 %v4376_v62  ;;  %v5281_v27 = vmul.f32 -1.442695, %v4376_v62 }
0x470d   :  { %6440 = vpow2.f32 %v5281_v27 }
0x4718   :  { %v6439_v63 = vpop.eup %6438 }
0x4719   :  { %4386 = vrot.lane.b32.xlu0 %v6439_v63, %s6498_s30 }
0x471a   :  { %v6441_v28 = vpop.eup %6440 }
0x471b   :  { %v4380_v41 = vadd.f32 1.0, %v6441_v28 }
0x471d   :  { %6442 = vrcp.f32 %v4380_v41 }
0x472a   :  { %v6443_v50 = vpop.eup %6442 }
0x472b   :  { %v4384_v54 = vmul.f32 %v6443_v50, %v7458_v31 }
0x478b   :  { %v4387_v51 = vpop.permute.xlu0 %4386 }
0x478c   :  { %v4389_v53 = vmul.f32 %v6443_v50, %v4387_v51 }
0x478e   :  { %4391 = vrot.lane.b32.xlu1 %v4389_v53, %s6498_s30 }
0x4800   :  { %v4392_v5 = vpop.permute.xlu1 %4391 }
0x4801   :  { %v7583_v57 = vadd.f32 %v4392_v5, %v4384_v54 }
0x4803   :  { %6444 = vtanh.f32 %v7583_v57 }
0x4810   :  { %v6445_v22 = vpop.eup %6444 }
0x4811   :  { %4397 = vrot.lane.b32.xlu0 %v6445_v22, %s6498_s30 }
0x4883   :  { %v4398_v26 = vpop.permute.xlu0 %4397 }
0x4884   :  { %v7587_v6 = vmul.f32 %v6443_v50, %v4398_v26 }
0x4886   :  { %4472 = vrot.lane.b32.xlu1 %v7587_v6, %s6499_s5 }
0x48f8   :  { %v4473_v4 = vpop.permute.xlu1 %4472 }
0x48f9   :  { %6139 = vmatmul.mubr.msk.f32.vlgmr.msra.gmra.mxu0 %vm130_vm3, %v4473_v4  ;;  %6150 = vmatmul.mubr.msk.f32.vlgmr.msra.gmra.mxu1 %vm130_vm3, %v4473_v4 }
0x48fa   :  { %6153 = vmatpush3.msra.mxu0 %v7596_v52  ;;  %6164 = vmatpush3.msra.mxu1 %v7472_v19  ;;  %v7636_v19 = vld [vmem:[%s7744_s2 + $0x2] ss:$0 sm:$0xff] }
0x48fb   :  { %6154 = vmatprep.subr.mxu0 %v6496_v0  ;;  %6165 = vmatprep.subr.mxu1 %v6496_v0 }
0x48fc   :  { %6155 = vmatpush3.msra.mxu0 %v7605_v3  ;;  %6166 = vmatpush3.msra.mxu1 %v7481_v20 }
0x48fd   :  { %6156 = vmatprep.subr.mxu0 %v6496_v0  ;;  %6167 = vmatprep.subr.mxu1 %v6496_v0 }
0x48fe   :  { %6157 = vmatpush3.msra.mxu0 %v7614_v30  ;;  %6168 = vmatpush3.msra.mxu1 %v7490_v16 }
0x48ff   :  { %6158 = vmatprep.subr.mxu0 %v6496_v0  ;;  %6169 = vmatprep.subr.mxu1 %v6496_v0 }
0x4900   :  { %6159 = vmatpush3.msra.mxu0 %v7623_v9  ;;  %6160 = vmatprep.mubr.msk.f32.mxu0 %vm6497_vm2, %v6496_v0 }
0x4901   :  { %6170 = vmatpush3.msra.mxu1 %v7501_v56  ;;  %6171 = vmatprep.mubr.msk.f32.mxu1 %vm6497_vm2, %v6496_v0 }
0x4902   :  { %6174 = vmatprep.subr.mxu0 %v6496_v0  ;;  %6185 = vmatprep.subr.mxu1 %v6496_v0 }
0x49b9   :  { %v4542_v8 = vpop.f32.mrf.mxu0  ;;  %v4637_v31 = vpop.f32.mrf.mxu1 }
0x49ba   :  { %v4543_v13 = vadd.f32 %v4542_v8, %v4467_v59 }
0x49bb   :  { %v6140_v14 = vpop.f32.mrf.mxu0  ;;  %v6151_v18 = vpop.f32.mrf.mxu1 }
0x49bc   :  { %v4546_v20 = vadd.f32 %v7636_v19, %v4543_v13 }
0x49be   :  { %6446 = vtanh.f32 %v4546_v20  ;;  %v5284_v56 = vmul.f32 -1.442695, %v4546_v20 }
0x49c0   :  { %6448 = vpow2.f32 %v5284_v56 }
0x49cb   :  { %v6447_v16 = vpop.eup %6446 }
0x49cc   :  { %4556 = vrot.lane.b32.xlu0 %v6447_v16, %s6498_s30 }
0x49cd   :  { %v6449_v1 = vpop.eup %6448 }
0x49ce   :  { %v4550_v21 = vadd.f32 1.0, %v6449_v1 }
0x49d0   :  { %6450 = vrcp.f32 %v4550_v21 }
0x49dd   :  { %v6451_v17 = vpop.eup %6450 }
0x49de   :  { %v4554_v34 = vmul.f32 %v6451_v17, %v7512_v45 }
0x4a3e   :  { %v4557_v23 = vpop.permute.xlu0 %4556 }
0x4a3f   :  { %v4559_v25 = vmul.f32 %v6451_v17, %v4557_v23 }
0x4a41   :  { %4561 = vrot.lane.b32.xlu1 %v4559_v25, %s6498_s30 }
0x4ab3   :  { %v4562_v35 = vpop.permute.xlu1 %4561 }
0x4ab4   :  { %v7642_v36 = vadd.f32 %v4562_v35, %v4554_v34  ;;  %v5104_v35 = vld [vmem:[%s7745_s3 + $0x18] sm:$0xff] }
0x4ab6   :  { %6452 = vtanh.f32 %v7642_v36 }
0x4ac3   :  { %v6453_v37 = vpop.eup %6452 }
0x4ac4   :  { %4567 = vrot.lane.b32.xlu0 %v6453_v37, %s6498_s30  ;;  %v5102_v37 = vld [vmem:[%s7745_s3 + $0x8] sm:$0xff] }
0x4b36   :  { %v4568_v39 = vpop.permute.xlu0 %4567 }
0x4b37   :  { %v4570_v40 = vmul.f32 %v6451_v17, %v4568_v39  ;;  %v5101_v39 = vld [vmem:[%s7745_s3] sm:$0xff] }
0x4b39   :  { %4642 = vrot.lane.b32.xlu1 %v4570_v40, %s6499_s5 }
0x4bab   :  { %v4643_v32 = vpop.permute.xlu1 %4642 }
0x4bac   :  { %6161 = vmatmul.mubr.msk.f32.vlgmr.msra.gmra.mxu0 %vm130_vm3, %v4643_v32  ;;  %6172 = vmatmul.mubr.msk.f32.vlgmr.msra.gmra.mxu1 %vm130_vm3, %v4643_v32 }
0x4bad   :  { %6175 = vmatpush3.msra.mxu0 %v7522_v55  ;;  %6186 = vmatpush3.msra.mxu1 %v7528_v43 }
0x4bae   :  { %6176 = vmatprep.subr.mxu0 %v6496_v0  ;;  %6187 = vmatprep.subr.mxu1 %v6496_v0 }
0x4baf   :  { %6177 = vmatpush3.msra.mxu0 %v7536_v29  ;;  %6188 = vmatpush3.msra.mxu1 %v7542_v46 }
0x4bb0   :  { %6178 = vmatprep.subr.mxu0 %v6496_v0  ;;  %6189 = vmatprep.subr.mxu1 %v6496_v0 }
0x4bb1   :  { %6179 = vmatpush3.msra.mxu0 %v7550_v47  ;;  %6190 = vmatpush3.msra.mxu1 %v7556_v2 }
0x4bb2   :  { %6180 = vmatprep.subr.mxu0 %v6496_v0  ;;  %6191 = vmatprep.subr.mxu1 %v6496_v0 }
0x4bb3   :  { %6181 = vmatpush3.msra.mxu0 %v7564_v58  ;;  %6182 = vmatprep.mubr.msk.f32.mxu0 %vm6497_vm2, %v6496_v0 }
0x4bb4   :  { %6192 = vmatpush3.msra.mxu1 %v7572_v48  ;;  %6193 = vmatprep.mubr.msk.f32.mxu1 %vm6497_vm2, %v6496_v0 }
0x4bb5   :  { %6196 = vmatprep.subr.mxu0 %v6496_v0  ;;  %6207 = vmatprep.subr.mxu1 %v5104_v35 }
0x4c6c   :  { %v4712_v49 = vpop.f32.mrf.mxu0  ;;  %v4807_v38 = vpop.f32.mrf.mxu1 }
0x4c6d   :  { %v4713_v42 = vadd.f32 %v4712_v49, %v4637_v31 }
0x4c6e   :  { %v6162_v45 = vpop.f32.mrf.mxu0  ;;  %v6173_v10 = vpop.f32.mrf.mxu1 }
0x4c6f   :  { %v4716_v12 = vadd.f32 %v7671_v24, %v4713_v42  ;;  %v5083_v42 = vrot.slane %v7587_v6, 4  ;;  %v5085_v45 = vrot.slane %v7462_v15, 2 }
0x4c71   :  { %6454 = vtanh.f32 %v4716_v12  ;;  %v5287_v55 = vmul.f32 -1.442695, %v4716_v12 }
0x4c73   :  { %6456 = vpow2.f32 %v5287_v55 }
0x4c7e   :  { %v6455_v33 = vpop.eup %6454 }
0x4c7f   :  { %4726 = vrot.lane.b32.xlu0 %v6455_v33, %s6498_s30 }
0x4c80   :  { %v6457_v43 = vpop.eup %6456 }
0x4c81   :  { %v4720_v29 = vadd.f32 1.0, %v6457_v43 }
0x4c83   :  { %6458 = vrcp.f32 %v4720_v29 }
0x4c90   :  { %v6459_v46 = vpop.eup %6458 }
0x4c91   :  { %v4724_v58 = vmul.f32 %v6459_v46, %v7583_v57 }
0x4cf1   :  { %v4727_v47 = vpop.permute.xlu0 %4726 }
0x4cf2   :  { %v4729_v2 = vmul.f32 %v6459_v46, %v4727_v47 }
0x4cf4   :  { %4731 = vrot.lane.b32.xlu1 %v4729_v2, %s6498_s30 }
0x4d66   :  { %v4732_v48 = vpop.permute.xlu1 %4731 }
0x4d67   :  { %v7677_v11 = vadd.f32 %v4732_v48, %v4724_v58 }
0x4d69   :  { %6460 = vtanh.f32 %v7677_v11 }
0x4d76   :  { %v6461_v59 = vpop.eup %6460 }
0x4d77   :  { %4737 = vrot.lane.b32.xlu0 %v6461_v59, %s6498_s30 }
0x4de9   :  { %v4738_v7 = vpop.permute.xlu0 %4737 }
0x4dea   :  { %v7681_v60 = vmul.f32 %v6459_v46, %v4738_v7 }
0x4dec   :  { %4812 = vrot.lane.b32.xlu1 %v7681_v60, %s6499_s5  ;;  %v5081_v49 = vrot.slane %v7681_v60, 6 }
0x4e5e   :  { %v4813_v61 = vpop.permute.xlu1 %4812 }
0x4e5f   :  { %6183 = vmatmul.mubr.msk.f32.vlgmr.msra.gmra.mxu0 %vm130_vm3, %v4813_v61  ;;  %6194 = vmatmul.mubr.msk.f32.vlgmr.msra.gmra.mxu1 %vm130_vm3, %v4813_v61 }
0x4e60   :  { %6197 = vmatpush3.msra.mxu0 %v7596_v52  ;;  %6204 = vmatprep.mubr.msk.f32.mxu0 %vm6497_vm2, %v6496_v0 }
0x4e61   :  { %6198 = vmatprep.subr.mxu0 %v6496_v0  ;;  %6208 = vmatpush3.msra.mxu1 %v5104_v35 }
0x4e62   :  { %6199 = vmatpush3.msra.mxu0 %v7605_v3 }
0x4e63   :  { %6200 = vmatprep.subr.mxu0 %v6496_v0 }
0x4e64   :  { %6201 = vmatpush3.msra.mxu0 %v7614_v30 }
0x4e65   :  { %6202 = vmatprep.subr.mxu0 %v6496_v0 }
0x4e66   :  { %6203 = vmatpush3.msra.mxu0 %v7623_v9 }
0x4f1f   :  { %v4882_v62 = vpop.f32.mrf.mxu0  ;;  %v4977_v63 = vpop.f32.mrf.mxu1 }
0x4f20   :  { %v4883_v27 = vadd.f32 %v4882_v62, %v4807_v38 }
0x4f21   :  { %v6184_v28 = vpop.f32.mrf.mxu0  ;;  %v6195_v41 = vpop.f32.mrf.mxu1 }
0x4f22   :  { %v4886_v50 = vadd.f32 %v7636_v19, %v4883_v27 }
0x4f24   :  { %6462 = vtanh.f32 %v4886_v50  ;;  %v5290_v53 = vmul.f32 -1.442695, %v4886_v50 }
0x4f26   :  { %6464 = vpow2.f32 %v5290_v53 }
0x4f31   :  { %v6463_v51 = vpop.eup %6462 }
0x4f32   :  { %4896 = vrot.lane.b32.xlu0 %v6463_v51, %s6498_s30 }
0x4f33   :  { %v6465_v54 = vpop.eup %6464 }
0x4f34   :  { %v4890_v5 = vadd.f32 1.0, %v6465_v54 }
0x4f36   :  { %6466 = vrcp.f32 %v4890_v5 }
0x4f43   :  { %v6467_v57 = vpop.eup %6466 }
0x4f44   :  { %v4894_v26 = vmul.f32 %v6467_v57, %v7642_v36  ;;  %v5103_v36 = vld [vmem:[%s7745_s3 + $0x10] sm:$0xff] }
0x4f45   :  { %6209 = vmatprep.subr.mxu1 %v5103_v36 }
0x4f46   :  { %6210 = vmatpush3.msra.mxu1 %v5103_v36 }
0x4f47   :  { %6211 = vmatprep.subr.mxu1 %v5102_v37 }
0x4f48   :  { %6212 = vmatpush3.msra.mxu1 %v5102_v37 }
0x4f49   :  { %6213 = vmatprep.subr.mxu1 %v5101_v39 }
0x4f4a   :  { %6214 = vmatpush3.msra.mxu1 %v5101_v39 }
0x4fa4   :  { %v4897_v0 = vpop.permute.xlu0 %4896 }
0x4fa5   :  { %v4899_v22 = vmul.f32 %v6467_v57, %v4897_v0 }
0x4fa7   :  { %4901 = vrot.lane.b32.xlu1 %v4899_v22, %s6498_s30 }
0x5019   :  { %v4902_v4 = vpop.permute.xlu1 %4901 }
0x501a   :  { %v4904_v52 = vadd.f32 %v4902_v4, %v4894_v26 }
0x501c   :  { %6468 = vtanh.f32 %v4904_v52 }
0x5029   :  { %v6469_v3 = vpop.eup %6468 }
0x502a   :  { %4907 = vrot.lane.b32.xlu0 %v6469_v3, %s6498_s30 }
0x509c   :  { %v4908_v30 = vpop.permute.xlu0 %4907 }
0x509d   :  { %v4910_v9 = vmul.f32 %v6467_v57, %v4908_v30 }
0x509f   :  { %4982 = vrot.lane.b32.xlu1 %v4910_v9, %s6499_s5 }
0x5111   :  { %v4983_v8 = vpop.permute.xlu1 %4982 }
0x5112   :  { %6205 = vmatmul.mubr.msk.f32.vlgmr.msra.gmra.mxu0 %vm130_vm3, %v4983_v8 }
0x51d2   :  { %v5052_v31 = vpop.f32.mrf.mxu0 }
0x51d3   :  { %v5053_v13 = vadd.f32 %v5052_v31, %v4977_v63 }
0x51d4   :  { %v6206_v14 = vpop.f32.mrf.mxu0 }
0x51d5   :  { %v5056_v18 = vadd.f32 %v7671_v24, %v5053_v13 }
0x51d7   :  { %6470 = vtanh.f32 %v5056_v18  ;;  %v5293_v20 = vmul.f32 -1.442695, %v5056_v18 }
0x51d9   :  { %6472 = vpow2.f32 %v5293_v20 }
0x51e4   :  { %v6471_v19 = vpop.eup %6470 }
0x51e5   :  { %5066 = vrot.lane.b32.xlu0 %v6471_v19, %s6498_s30 }
0x51e6   :  { %v6473_v16 = vpop.eup %6472 }
0x51e7   :  { %v5060_v56 = vadd.f32 1.0, %v6473_v16 }
0x51e9   :  { %6474 = vrcp.f32 %v5060_v56 }
0x51f6   :  { %v6475_v1 = vpop.eup %6474 }
0x51f7   :  { %v5064_v23 = vmul.f32 %v6475_v1, %v7677_v11 }
0x5257   :  { %v5067_v21 = vpop.permute.xlu0 %5066 }
0x5258   :  { %v5069_v17 = vmul.f32 %v6475_v1, %v5067_v21 }
0x525a   :  { %5071 = vrot.lane.b32.xlu1 %v5069_v17, %s6498_s30 }
0x52cc   :  { %v5072_v25 = vpop.permute.xlu1 %5071 }
0x52cd   :  { %v5074_v34 = vadd.f32 %v5072_v25, %v5064_v23 }
0x52cf   :  { %6476 = vtanh.f32 %v5074_v34 }
0x52dc   :  { %v6477_v40 = vpop.eup %6476 }
0x52dd   :  { %5077 = vrot.lane.b32.xlu0 %v6477_v40, %s6498_s30 }
0x52e1   :  { %5114 = vrot.lane.b32.xlu0 %v7399_v44, %s6499_s5  ;;  %v5294_v44 = vld [vmem:[%s7745_s3 + $0x20] ss:$0 sm:$0xff] }
0x534f   :  { %v5078_v32 = vpop.permute.xlu0 %5077 }
0x5350   :  { %v5080_v38 = vmul.f32 %v6475_v1, %v5078_v32 }
0x5352   :  { %v5094_v10 = vsel %vm5093_vm4, %v5080_v38, %v5081_v49 }
0x5353   :  { %v5095_v24 = vsel %vm51_vm0, %v5094_v10, %v5083_v42  ;;  %v5115_v55 = vpop.permute.xlu0 %5114 }
0x5354   :  { %v5097_v12 = vsel %vm5096_vm5, %v5095_v24, %v5085_v45 }
0x5355   :  { %5112 = vrot.lane.b32.xlu1 %v5097_v12, %s6499_s5 }
0x53c7   :  { %v5113_v33 = vpop.permute.xlu1 %5112 }
0x53c8   :  { %6215 = vmatprep.mubr.msk.f32.mxu1 %vm130_vm3, %v5113_v33 }
0x53c9   :  { %6216 = vmatmul.mubr.msk.f32.vlgmr.msra.gmra.mxu1 %vm130_vm3, %v5115_v55 }
0x5489   :  { %v6217_v6 = vpop.f32.mrf.mxu1 }
0x548a   :  { %v5192_v15 = vadd.f32 %v6217_v6, %v5294_v44 }
0x548b   :  { %v5186_v43 = vpop.f32.mrf.mxu1 }
0x548c   :  { %5196 = vst.msk [vmem:[%s7746_s4 + $0x8] sm:$0xff] %vm44_vm1, %v5192_v15  ;;  %v5187_v29 = vadd.f32 %v5294_v44, %v5186_v43 }
0x548e   :  { %5195 = vst.msk [vmem:[%s7746_s4] sm:$0xff] %vm44_vm1, %v5187_v29 }

</bundles_post_ra>
